<compile_context>
chip_gen: v7x
topology: tpu7x:2x2x1
jax: 0.10.0
libtpu: 0.0.40
codegen_flags: <defaults>
</compile_context>

<pallas_src>
import functools
import math

import jax
import jax.numpy as jnp
from jax.experimental import pallas as pl
from jax.experimental.pallas import tpu as pltpu  # noqa: F401  (TPU backend)

# ---------------- small synthetic BERT config ----------------
VOCAB = 30
HIDDEN = 32
NUM_HEADS = 4
HEAD_DIM = HIDDEN // NUM_HEADS
INTERMEDIATE = 64
NUM_LAYERS = 2
MAX_POS = 16
TYPE_VOCAB = 2
LN_EPS = 1e-12


# ---------------- the single fused Pallas kernel ----------------

def _bert_fused_kernel(
    ids_ref, ids_col_ref, ttype_col_ref,                       # int inputs
    wemb_ref, pemb_ref, temb_ref, eln_g_ref, eln_b_ref,        # embeddings
    wqkv_ref, bqkv_ref, wo_ref, bo_ref, ln1g_ref, ln1b_ref,    # attn block
    wi_ref, bi_ref, wo2_ref, bo2_ref, ln2g_ref, ln2b_ref,      # ffn block
    wp_ref, bp_ref,                                            # pooler
    seq_ref, pooled_ref,                                       # outputs
    *, B, S):
  H, NH, D = HIDDEN, NUM_HEADS, HEAD_DIM
  BS = B * S
  f32, bf16 = jnp.float32, jnp.bfloat16

  def ln(x, g, b):
    mu = jnp.mean(x, axis=-1, keepdims=True)
    xc = x - mu
    var = jnp.mean(xc * xc, axis=-1, keepdims=True)
    return xc * jax.lax.rsqrt(var + LN_EPS) * g + b

  def gelu(x):
    # TODO(synk): HF BERT uses erf-based gelu; tanh approximation used here.
    c = math.sqrt(2.0 / math.pi)
    return 0.5 * x * (1.0 + jnp.tanh(c * (x + 0.044715 * x * x * x)))

  # ---- embeddings: one-hot gathers on the MXU + position + LayerNorm ----
  ids_col = ids_col_ref[...]                                   # (BS, 1) int32
  ttype_col = ttype_col_ref[...]                               # (BS, 1) int32
  wv_iota = jax.lax.broadcasted_iota(jnp.int32, (BS, VOCAB), 1)
  word_oh = (wv_iota == ids_col).astype(f32)                   # (BS, VOCAB)
  tv_iota = jax.lax.broadcasted_iota(jnp.int32, (BS, TYPE_VOCAB), 1)
  type_oh = (tv_iota == ttype_col).astype(f32)                 # (BS, 2)
  we = jnp.dot(word_oh, wemb_ref[...], preferred_element_type=f32)
  te = jnp.dot(type_oh, temb_ref[...], preferred_element_type=f32)
  pe = jnp.concatenate([pemb_ref[...]] * B, axis=0)            # (BS, H)
  h = ln(we + te + pe, eln_g_ref[...], eln_b_ref[...])         # (BS, H) f32

  # ---- additive attention mask, computed from the ids in-kernel ----
  add_mask = jnp.where(ids_ref[...] != 0, 0.0, -10000.0)       # (B, S) f32

  scale = 1.0 / math.sqrt(D)

  # ---- encoder layers (static unroll; all weights resident in VMEM) ----
  for l in range(NUM_LAYERS):
    # fused QKV projection (lane-dense N = 3H)
    qkv = jnp.dot(h.astype(bf16), wqkv_ref[l],
                  preferred_element_type=f32) + bqkv_ref[l]    # (BS, 3H)
    q = qkv[:, 0:H]
    k = qkv[:, H:2 * H]
    v = qkv[:, 2 * H:3 * H]

    ctx_rows = []
    for b in range(B):
      qb = q[b * S:(b + 1) * S, :].astype(bf16)                # (S, H)
      kb = k[b * S:(b + 1) * S, :].astype(bf16)
      vb = v[b * S:(b + 1) * S, :].astype(bf16)
      mrow = add_mask[b:b + 1, :]                              # (1, S)
      heads = []
      for n in range(NH):
        qh = qb[:, n * D:(n + 1) * D]                          # (S, D)
        kh = kb[:, n * D:(n + 1) * D]
        vh = vb[:, n * D:(n + 1) * D]
        # q @ k^T without materializing a transpose
        s = jax.lax.dot_general(qh, kh, (((1,), (1,)), ((), ())),
                                preferred_element_type=f32) * scale
        s = s + mrow                                           # mask over keys
        m = jnp.max(s, axis=-1, keepdims=True)
        e = jnp.exp(s - m)
        denom = jnp.sum(e, axis=-1, keepdims=True)
        p = (e * pl.reciprocal(denom, approx=True)).astype(bf16)
        heads.append(jnp.dot(p, vh, preferred_element_type=f32))
      ctx_rows.append(jnp.concatenate(heads, axis=-1))         # (S, H)
    ctx = jnp.concatenate(ctx_rows, axis=0)                    # (BS, H)

    # output projection + residual + LN (fused)
    attn_out = jnp.dot(ctx.astype(bf16), wo_ref[l],
                       preferred_element_type=f32) + bo_ref[l]
    h = ln(attn_out + h, ln1g_ref[l], ln1b_ref[l])

    # FFN + residual + LN (fused)
    inter = gelu(jnp.dot(h.astype(bf16), wi_ref[l],
                         preferred_element_type=f32) + bi_ref[l])
    ffn_out = jnp.dot(inter.astype(bf16), wo2_ref[l],
                      preferred_element_type=f32) + bo2_ref[l]
    h = ln(ffn_out + h, ln2g_ref[l], ln2b_ref[l])

  # ---- outputs ----
  seq_ref[...] = h                                             # (BS, H)

  # pooler on the [CLS] row of every batch element
  cls = jnp.concatenate([h[b * S:b * S + 1, :] for b in range(B)], axis=0)
  pooled_ref[...] = jnp.tanh(
      jnp.dot(cls.astype(bf16), wp_ref[...], preferred_element_type=f32)
      + bp_ref[...])


# ---------------- parameter init (deterministic, synthetic) ----------------

def init_params(key):
  f32, bf16 = jnp.float32, jnp.bfloat16

  def nrm(k, shape):
    return 0.02 * jax.random.normal(k, shape, dtype=f32)

  k_word, k_pos, k_type, k_wqkv, k_wo, k_wi, k_wo2, k_wp = jax.random.split(key, 8)
  L = NUM_LAYERS
  return {
      # embeddings stay f32 (exact lookups via one-hot matmul)
      "word_emb": nrm(k_word, (VOCAB, HIDDEN)),
      "pos_emb": nrm(k_pos, (MAX_POS, HIDDEN)),
      "type_emb": nrm(k_type, (TYPE_VOCAB, HIDDEN)),
      "emb_ln_g": jnp.ones((1, HIDDEN), f32),
      "emb_ln_b": jnp.zeros((1, HIDDEN), f32),
      # per-layer weights stacked along a leading layer axis; matmul weights bf16
      "wqkv": nrm(k_wqkv, (L, HIDDEN, 3 * HIDDEN)).astype(bf16),
      "bqkv": jnp.zeros((L, 1, 3 * HIDDEN), f32),
      "wo": nrm(k_wo, (L, HIDDEN, HIDDEN)).astype(bf16),
      "bo": jnp.zeros((L, 1, HIDDEN), f32),
      "ln1_g": jnp.ones((L, 1, HIDDEN), f32),
      "ln1_b": jnp.zeros((L, 1, HIDDEN), f32),
      "wi": nrm(k_wi, (L, HIDDEN, INTERMEDIATE)).astype(bf16),
      "bi": jnp.zeros((L, 1, INTERMEDIATE), f32),
      "wo2": nrm(k_wo2, (L, INTERMEDIATE, HIDDEN)).astype(bf16),
      "bo2": jnp.zeros((L, 1, HIDDEN), f32),
      "ln2_g": jnp.ones((L, 1, HIDDEN), f32),
      "ln2_b": jnp.zeros((L, 1, HIDDEN), f32),
      # pooler
      "wp": nrm(k_wp, (HIDDEN, HIDDEN)).astype(bf16),
      "bp": jnp.zeros((1, HIDDEN), f32),
  }


# ---------------- forward pass (thin glue + one fused pallas_call) ----------------

@jax.jit
def bert_module_forward(params, x_ids, y_ids):
  # --- BertModule.forward glue ---
  input_ids = jnp.concatenate([x_ids, y_ids], axis=-1).astype(jnp.int32)      # (B, S)
  token_type_ids = jnp.concatenate(
      [jnp.zeros_like(x_ids), jnp.ones_like(y_ids)], axis=-1).astype(jnp.int32)

  B, S = input_ids.shape
  assert S <= MAX_POS, "sequence longer than MAX_POS"

  ids_col = input_ids.reshape(B * S, 1)        # column form for one-hot gather
  ttype_col = token_type_ids.reshape(B * S, 1)
  pos_slab = params["pos_emb"][:S]             # (S, H), static slice

  seq_flat, pooled = pl.pallas_call(
      functools.partial(_bert_fused_kernel, B=B, S=S),
      out_shape=(
          jax.ShapeDtypeStruct((B * S, HIDDEN), jnp.float32),
          jax.ShapeDtypeStruct((B, HIDDEN), jnp.float32),
      ),
  )(
      input_ids, ids_col, ttype_col,
      params["word_emb"], pos_slab, params["type_emb"],
      params["emb_ln_g"], params["emb_ln_b"],
      params["wqkv"], params["bqkv"], params["wo"], params["bo"],
      params["ln1_g"], params["ln1_b"],
      params["wi"], params["bi"], params["wo2"], params["bo2"],
      params["ln2_g"], params["ln2_b"],
      params["wp"], params["bp"],
  )

  sequence_output = seq_flat.reshape(B, S, HIDDEN)
  return sequence_output, pooled


if __name__ == "__main__":
  key = jax.random.PRNGKey(0)
  kx, ky, kp = jax.random.split(key, 3)

  # x, y: token-id halves of the pair (B=2, each length 4) -> seq = 8
  x = jax.random.randint(kx, (2, 4), 0, VOCAB, dtype=jnp.int32)
  y = jax.random.randint(ky, (2, 4), 0, VOCAB, dtype=jnp.int32)

  params = init_params(kp)

  seq_out, pooled = bert_module_forward(params, x, y)
  jax.block_until_ready(seq_out)
  jax.block_until_ready(pooled)

  assert seq_out.shape == (2, 8, HIDDEN)
  assert pooled.shape == (2, HIDDEN)
  print("KERNEL_OK")
</pallas_src>

<mosaic_0001>
module attributes {stable_mosaic.version = 11 : i64} {
  func.func @_bert_fused_kernel(%arg0: memref<2x8xi32, #tpu.memory_space<vmem>>, %arg1: memref<16x1xi32, #tpu.memory_space<vmem>>, %arg2: memref<16x1xi32, #tpu.memory_space<vmem>>, %arg3: memref<30x32xf32, #tpu.memory_space<vmem>>, %arg4: memref<8x32xf32, #tpu.memory_space<vmem>>, %arg5: memref<2x32xf32, #tpu.memory_space<vmem>>, %arg6: memref<1x32xf32, #tpu.memory_space<vmem>>, %arg7: memref<1x32xf32, #tpu.memory_space<vmem>>, %arg8: memref<2x32x96xbf16, #tpu.memory_space<vmem>>, %arg9: memref<2x1x96xf32, #tpu.memory_space<vmem>>, %arg10: memref<2x32x32xbf16, #tpu.memory_space<vmem>>, %arg11: memref<2x1x32xf32, #tpu.memory_space<vmem>>, %arg12: memref<2x1x32xf32, #tpu.memory_space<vmem>>, %arg13: memref<2x1x32xf32, #tpu.memory_space<vmem>>, %arg14: memref<2x32x64xbf16, #tpu.memory_space<vmem>>, %arg15: memref<2x1x64xf32, #tpu.memory_space<vmem>>, %arg16: memref<2x64x32xbf16, #tpu.memory_space<vmem>>, %arg17: memref<2x1x32xf32, #tpu.memory_space<vmem>>, %arg18: memref<2x1x32xf32, #tpu.memory_space<vmem>>, %arg19: memref<2x1x32xf32, #tpu.memory_space<vmem>>, %arg20: memref<32x32xbf16, #tpu.memory_space<vmem>>, %arg21: memref<1x32xf32, #tpu.memory_space<vmem>>, %arg22: memref<16x32xf32, #tpu.memory_space<vmem>>, %arg23: memref<2x32xf32, #tpu.memory_space<vmem>>) attributes {dimension_semantics = [], scalar_prefetch = 0 : i64, scratch_operands = 0 : i64, tpu.core_type = #tpu.core_type<tc>} {
    %c0 = arith.constant 0 : index
    %c0_0 = arith.constant 0 : index
    %0 = vector.load %arg1[%c0, %c0_0] : memref<16x1xi32, #tpu.memory_space<vmem>>, vector<16x1xi32>
    %c0_1 = arith.constant 0 : index
    %c0_2 = arith.constant 0 : index
    %1 = vector.load %arg2[%c0_1, %c0_2] : memref<16x1xi32, #tpu.memory_space<vmem>>, vector<16x1xi32>
    %2 = tpu.iota {dimensions = array<i32: 1>} : vector<16x30xi32>
    %3 = vector.broadcast %0 : vector<16x1xi32> to vector<16x30xi32>
    %4 = arith.cmpi eq, %2, %3 : vector<16x30xi32>
    %5 = arith.extui %4 : vector<16x30xi1> to vector<16x30xi32>
    %6 = arith.sitofp %5 : vector<16x30xi32> to vector<16x30xf32>
    %7 = tpu.iota {dimensions = array<i32: 1>} : vector<16x2xi32>
    %8 = vector.broadcast %1 : vector<16x1xi32> to vector<16x2xi32>
    %9 = arith.cmpi eq, %7, %8 : vector<16x2xi32>
    %10 = arith.extui %9 : vector<16x2xi1> to vector<16x2xi32>
    %11 = arith.sitofp %10 : vector<16x2xi32> to vector<16x2xf32>
    %c0_3 = arith.constant 0 : index
    %c0_4 = arith.constant 0 : index
    %12 = vector.load %arg3[%c0_3, %c0_4] : memref<30x32xf32, #tpu.memory_space<vmem>>, vector<30x32xf32>
    %cst = arith.constant dense<0.000000e+00> : vector<16x32xf32>
    %13 = tpu.matmul %6, %12, %cst {dimension_numbers = #tpu.dot_dimension_numbers<[1], [0], [0], [1], [0, 0, 1, 1], [], []>} : vector<16x30xf32>, vector<30x32xf32>, vector<16x32xf32> -> vector<16x32xf32>
    %c0_5 = arith.constant 0 : index
    %c0_6 = arith.constant 0 : index
    %14 = vector.load %arg5[%c0_5, %c0_6] : memref<2x32xf32, #tpu.memory_space<vmem>>, vector<2x32xf32>
    %cst_7 = arith.constant dense<0.000000e+00> : vector<16x32xf32>
    %15 = tpu.matmul %11, %14, %cst_7 {dimension_numbers = #tpu.dot_dimension_numbers<[1], [0], [0], [1], [0, 0, 1, 1], [], []>} : vector<16x2xf32>, vector<2x32xf32>, vector<16x32xf32> -> vector<16x32xf32>
    %c0_8 = arith.constant 0 : index
    %c0_9 = arith.constant 0 : index
    %16 = vector.load %arg4[%c0_8, %c0_9] : memref<8x32xf32, #tpu.memory_space<vmem>>, vector<8x32xf32>
    %17 = tpu.concatenate %16, %16 in 0 : vector<8x32xf32>, vector<8x32xf32> -> vector<16x32xf32>
    %18 = arith.addf %13, %15 : vector<16x32xf32>
    %19 = arith.addf %18, %17 : vector<16x32xf32>
    %c0_10 = arith.constant 0 : index
    %c0_11 = arith.constant 0 : index
    %20 = vector.load %arg6[%c0_10, %c0_11] : memref<1x32xf32, #tpu.memory_space<vmem>>, vector<1x32xf32>
    %c0_12 = arith.constant 0 : index
    %c0_13 = arith.constant 0 : index
    %21 = vector.load %arg7[%c0_12, %c0_13] : memref<1x32xf32, #tpu.memory_space<vmem>>, vector<1x32xf32>
    %cst_14 = arith.constant dense<0.000000e+00> : vector<16xf32>
    %22 = vector.multi_reduction <add>, %19, %cst_14 [1] : vector<16x32xf32> to vector<16xf32>
    %23 = vector.shape_cast %22 : vector<16xf32> to vector<16x1xf32>
    %cst_15 = arith.constant 3.200000e+01 : f32
    %24 = vector.broadcast %cst_15 : f32 to vector<16x1xf32>
    %25 = arith.divf %23, %24 : vector<16x1xf32>
    %26 = vector.broadcast %25 : vector<16x1xf32> to vector<16x32xf32>
    %27 = arith.subf %19, %26 : vector<16x32xf32>
    %28 = arith.mulf %27, %27 : vector<16x32xf32>
    %cst_16 = arith.constant dense<0.000000e+00> : vector<16xf32>
    %29 = vector.multi_reduction <add>, %28, %cst_16 [1] : vector<16x32xf32> to vector<16xf32>
    %30 = vector.shape_cast %29 : vector<16xf32> to vector<16x1xf32>
    %cst_17 = arith.constant 3.200000e+01 : f32
    %31 = vector.broadcast %cst_17 : f32 to vector<16x1xf32>
    %32 = arith.divf %30, %31 : vector<16x1xf32>
    %cst_18 = arith.constant 9.99999996E-13 : f32
    %33 = vector.broadcast %cst_18 : f32 to vector<16x1xf32>
    %34 = arith.addf %32, %33 : vector<16x1xf32>
    %35 = math.rsqrt %34 : vector<16x1xf32>
    %36 = vector.broadcast %35 : vector<16x1xf32> to vector<16x32xf32>
    %37 = arith.mulf %27, %36 : vector<16x32xf32>
    %38 = vector.broadcast %20 : vector<1x32xf32> to vector<16x32xf32>
    %39 = arith.mulf %37, %38 : vector<16x32xf32>
    %40 = vector.broadcast %21 : vector<1x32xf32> to vector<16x32xf32>
    %41 = arith.addf %39, %40 : vector<16x32xf32>
    %c0_19 = arith.constant 0 : index
    %c0_20 = arith.constant 0 : index
    %42 = vector.load %arg0[%c0_19, %c0_20] : memref<2x8xi32, #tpu.memory_space<vmem>>, vector<2x8xi32>
    %c0_i32 = arith.constant 0 : i32
    %43 = vector.broadcast %c0_i32 : i32 to vector<2x8xi32>
    %44 = arith.cmpi ne, %42, %43 : vector<2x8xi32>
    %cst_21 = arith.constant 0.000000e+00 : f32
    %cst_22 = arith.constant -1.000000e+04 : f32
    %45 = vector.broadcast %cst_21 : f32 to vector<2x8xf32>
    %46 = vector.broadcast %cst_22 : f32 to vector<2x8xf32>
    %47 = arith.select %44, %45, %46 : vector<2x8xi1>, vector<2x8xf32>
    %48 = arith.truncf %41 : vector<16x32xf32> to vector<16x32xbf16>
    %c0_23 = arith.constant 0 : index
    %c0_24 = arith.constant 0 : index
    %c0_25 = arith.constant 0 : index
    %49 = vector.load %arg8[%c0_23, %c0_24, %c0_25] : memref<2x32x96xbf16, #tpu.memory_space<vmem>>, vector<1x32x96xbf16>
    %50 = vector.shape_cast %49 : vector<1x32x96xbf16> to vector<32x96xbf16>
    %cst_26 = arith.constant dense<0.000000e+00> : vector<16x96xf32>
    %51 = tpu.matmul %48, %50, %cst_26 {dimension_numbers = #tpu.dot_dimension_numbers<[1], [0], [0], [1], [0, 0, 1, 1], [], []>} : vector<16x32xbf16>, vector<32x96xbf16>, vector<16x96xf32> -> vector<16x96xf32>
    %c0_27 = arith.constant 0 : index
    %c0_28 = arith.constant 0 : index
    %c0_29 = arith.constant 0 : index
    %52 = vector.load %arg9[%c0_27, %c0_28, %c0_29] : memref<2x1x96xf32, #tpu.memory_space<vmem>>, vector<1x1x96xf32>
    %53 = vector.shape_cast %52 : vector<1x1x96xf32> to vector<1x96xf32>
    %54 = vector.broadcast %53 : vector<1x96xf32> to vector<16x96xf32>
    %55 = arith.addf %51, %54 : vector<16x96xf32>
    %56 = vector.extract_strided_slice %55 {offsets = [0, 0], sizes = [16, 32], strides = [1, 1]} : vector<16x96xf32> to vector<16x32xf32>
    %57 = vector.extract_strided_slice %55 {offsets = [0, 32], sizes = [16, 32], strides = [1, 1]} : vector<16x96xf32> to vector<16x32xf32>
    %58 = vector.extract_strided_slice %55 {offsets = [0, 64], sizes = [16, 32], strides = [1, 1]} : vector<16x96xf32> to vector<16x32xf32>
    %59 = vector.extract_strided_slice %56 {offsets = [0, 0], sizes = [8, 32], strides = [1, 1]} : vector<16x32xf32> to vector<8x32xf32>
    %60 = arith.truncf %59 : vector<8x32xf32> to vector<8x32xbf16>
    %61 = vector.extract_strided_slice %57 {offsets = [0, 0], sizes = [8, 32], strides = [1, 1]} : vector<16x32xf32> to vector<8x32xf32>
    %62 = arith.truncf %61 : vector<8x32xf32> to vector<8x32xbf16>
    %63 = vector.extract_strided_slice %58 {offsets = [0, 0], sizes = [8, 32], strides = [1, 1]} : vector<16x32xf32> to vector<8x32xf32>
    %64 = arith.truncf %63 : vector<8x32xf32> to vector<8x32xbf16>
    %65 = vector.extract_strided_slice %47 {offsets = [0, 0], sizes = [1, 8], strides = [1, 1]} : vector<2x8xf32> to vector<1x8xf32>
    %66 = vector.extract_strided_slice %60 {offsets = [0, 0], sizes = [8, 8], strides = [1, 1]} : vector<8x32xbf16> to vector<8x8xbf16>
    %67 = vector.extract_strided_slice %62 {offsets = [0, 0], sizes = [8, 8], strides = [1, 1]} : vector<8x32xbf16> to vector<8x8xbf16>
    %68 = vector.extract_strided_slice %64 {offsets = [0, 0], sizes = [8, 8], strides = [1, 1]} : vector<8x32xbf16> to vector<8x8xbf16>
    %cst_30 = arith.constant dense<0.000000e+00> : vector<8x8xf32>
    %69 = tpu.matmul %66, %67, %cst_30 {dimension_numbers = #tpu.dot_dimension_numbers<[1], [1], [0], [0], [0, 0, 1, 0], [], []>} : vector<8x8xbf16>, vector<8x8xbf16>, vector<8x8xf32> -> vector<8x8xf32>
    %cst_31 = arith.constant 0.353553385 : f32
    %70 = vector.broadcast %cst_31 : f32 to vector<8x8xf32>
    %71 = arith.mulf %69, %70 : vector<8x8xf32>
    %72 = vector.broadcast %65 : vector<1x8xf32> to vector<8x8xf32>
    %73 = arith.addf %71, %72 : vector<8x8xf32>
    %cst_32 = arith.constant dense<0xFF800000> : vector<8xf32>
    %74 = vector.multi_reduction <maximumf>, %73, %cst_32 [1] : vector<8x8xf32> to vector<8xf32>
    %75 = vector.shape_cast %74 : vector<8xf32> to vector<8x1xf32>
    %76 = vector.broadcast %75 : vector<8x1xf32> to vector<8x8xf32>
    %77 = arith.subf %73, %76 : vector<8x8xf32>
    %78 = math.exp %77 : vector<8x8xf32>
    %cst_33 = arith.constant dense<0.000000e+00> : vector<8xf32>
    %79 = vector.multi_reduction <add>, %78, %cst_33 [1] : vector<8x8xf32> to vector<8xf32>
    %80 = vector.shape_cast %79 : vector<8xf32> to vector<8x1xf32>
    %81 = tpu.reciprocal %80 {approx = true} : vector<8x1xf32> -> vector<8x1xf32>
    %82 = vector.broadcast %81 : vector<8x1xf32> to vector<8x8xf32>
    %83 = arith.mulf %78, %82 : vector<8x8xf32>
    %84 = arith.truncf %83 : vector<8x8xf32> to vector<8x8xbf16>
    %cst_34 = arith.constant dense<0.000000e+00> : vector<8x8xf32>
    %85 = tpu.matmul %84, %68, %cst_34 {dimension_numbers = #tpu.dot_dimension_numbers<[1], [0], [0], [1], [0, 0, 1, 1], [], []>} : vector<8x8xbf16>, vector<8x8xbf16>, vector<8x8xf32> -> vector<8x8xf32>
    %86 = vector.extract_strided_slice %60 {offsets = [0, 8], sizes = [8, 8], strides = [1, 1]} : vector<8x32xbf16> to vector<8x8xbf16>
    %87 = vector.extract_strided_slice %62 {offsets = [0, 8], sizes = [8, 8], strides = [1, 1]} : vector<8x32xbf16> to vector<8x8xbf16>
    %88 = vector.extract_strided_slice %64 {offsets = [0, 8], sizes = [8, 8], strides = [1, 1]} : vector<8x32xbf16> to vector<8x8xbf16>
    %cst_35 = arith.constant dense<0.000000e+00> : vector<8x8xf32>
    %89 = tpu.matmul %86, %87, %cst_35 {dimension_numbers = #tpu.dot_dimension_numbers<[1], [1], [0], [0], [0, 0, 1, 0], [], []>} : vector<8x8xbf16>, vector<8x8xbf16>, vector<8x8xf32> -> vector<8x8xf32>
    %cst_36 = arith.constant 0.353553385 : f32
    %90 = vector.broadcast %cst_36 : f32 to vector<8x8xf32>
    %91 = arith.mulf %89, %90 : vector<8x8xf32>
    %92 = vector.broadcast %65 : vector<1x8xf32> to vector<8x8xf32>
    %93 = arith.addf %91, %92 : vector<8x8xf32>
    %cst_37 = arith.constant dense<0xFF800000> : vector<8xf32>
    %94 = vector.multi_reduction <maximumf>, %93, %cst_37 [1] : vector<8x8xf32> to vector<8xf32>
    %95 = vector.shape_cast %94 : vector<8xf32> to vector<8x1xf32>
    %96 = vector.broadcast %95 : vector<8x1xf32> to vector<8x8xf32>
    %97 = arith.subf %93, %96 : vector<8x8xf32>
    %98 = math.exp %97 : vector<8x8xf32>
    %cst_38 = arith.constant dense<0.000000e+00> : vector<8xf32>
    %99 = vector.multi_reduction <add>, %98, %cst_38 [1] : vector<8x8xf32> to vector<8xf32>
    %100 = vector.shape_cast %99 : vector<8xf32> to vector<8x1xf32>
    %101 = tpu.reciprocal %100 {approx = true} : vector<8x1xf32> -> vector<8x1xf32>
    %102 = vector.broadcast %101 : vector<8x1xf32> to vector<8x8xf32>
    %103 = arith.mulf %98, %102 : vector<8x8xf32>
    %104 = arith.truncf %103 : vector<8x8xf32> to vector<8x8xbf16>
    %cst_39 = arith.constant dense<0.000000e+00> : vector<8x8xf32>
    %105 = tpu.matmul %104, %88, %cst_39 {dimension_numbers = #tpu.dot_dimension_numbers<[1], [0], [0], [1], [0, 0, 1, 1], [], []>} : vector<8x8xbf16>, vector<8x8xbf16>, vector<8x8xf32> -> vector<8x8xf32>
    %106 = vector.extract_strided_slice %60 {offsets = [0, 16], sizes = [8, 8], strides = [1, 1]} : vector<8x32xbf16> to vector<8x8xbf16>
    %107 = vector.extract_strided_slice %62 {offsets = [0, 16], sizes = [8, 8], strides = [1, 1]} : vector<8x32xbf16> to vector<8x8xbf16>
    %108 = vector.extract_strided_slice %64 {offsets = [0, 16], sizes = [8, 8], strides = [1, 1]} : vector<8x32xbf16> to vector<8x8xbf16>
    %cst_40 = arith.constant dense<0.000000e+00> : vector<8x8xf32>
    %109 = tpu.matmul %106, %107, %cst_40 {dimension_numbers = #tpu.dot_dimension_numbers<[1], [1], [0], [0], [0, 0, 1, 0], [], []>} : vector<8x8xbf16>, vector<8x8xbf16>, vector<8x8xf32> -> vector<8x8xf32>
    %cst_41 = arith.constant 0.353553385 : f32
    %110 = vector.broadcast %cst_41 : f32 to vector<8x8xf32>
    %111 = arith.mulf %109, %110 : vector<8x8xf32>
    %112 = vector.broadcast %65 : vector<1x8xf32> to vector<8x8xf32>
    %113 = arith.addf %111, %112 : vector<8x8xf32>
    %cst_42 = arith.constant dense<0xFF800000> : vector<8xf32>
    %114 = vector.multi_reduction <maximumf>, %113, %cst_42 [1] : vector<8x8xf32> to vector<8xf32>
    %115 = vector.shape_cast %114 : vector<8xf32> to vector<8x1xf32>
    %116 = vector.broadcast %115 : vector<8x1xf32> to vector<8x8xf32>
    %117 = arith.subf %113, %116 : vector<8x8xf32>
    %118 = math.exp %117 : vector<8x8xf32>
    %cst_43 = arith.constant dense<0.000000e+00> : vector<8xf32>
    %119 = vector.multi_reduction <add>, %118, %cst_43 [1] : vector<8x8xf32> to vector<8xf32>
    %120 = vector.shape_cast %119 : vector<8xf32> to vector<8x1xf32>
    %121 = tpu.reciprocal %120 {approx = true} : vector<8x1xf32> -> vector<8x1xf32>
    %122 = vector.broadcast %121 : vector<8x1xf32> to vector<8x8xf32>
    %123 = arith.mulf %118, %122 : vector<8x8xf32>
    %124 = arith.truncf %123 : vector<8x8xf32> to vector<8x8xbf16>
    %cst_44 = arith.constant dense<0.000000e+00> : vector<8x8xf32>
    %125 = tpu.matmul %124, %108, %cst_44 {dimension_numbers = #tpu.dot_dimension_numbers<[1], [0], [0], [1], [0, 0, 1, 1], [], []>} : vector<8x8xbf16>, vector<8x8xbf16>, vector<8x8xf32> -> vector<8x8xf32>
    %126 = vector.extract_strided_slice %60 {offsets = [0, 24], sizes = [8, 8], strides = [1, 1]} : vector<8x32xbf16> to vector<8x8xbf16>
    %127 = vector.extract_strided_slice %62 {offsets = [0, 24], sizes = [8, 8], strides = [1, 1]} : vector<8x32xbf16> to vector<8x8xbf16>
    %128 = vector.extract_strided_slice %64 {offsets = [0, 24], sizes = [8, 8], strides = [1, 1]} : vector<8x32xbf16> to vector<8x8xbf16>
    %cst_45 = arith.constant dense<0.000000e+00> : vector<8x8xf32>
    %129 = tpu.matmul %126, %127, %cst_45 {dimension_numbers = #tpu.dot_dimension_numbers<[1], [1], [0], [0], [0, 0, 1, 0], [], []>} : vector<8x8xbf16>, vector<8x8xbf16>, vector<8x8xf32> -> vector<8x8xf32>
    %cst_46 = arith.constant 0.353553385 : f32
    %130 = vector.broadcast %cst_46 : f32 to vector<8x8xf32>
    %131 = arith.mulf %129, %130 : vector<8x8xf32>
    %132 = vector.broadcast %65 : vector<1x8xf32> to vector<8x8xf32>
    %133 = arith.addf %131, %132 : vector<8x8xf32>
    %cst_47 = arith.constant dense<0xFF800000> : vector<8xf32>
    %134 = vector.multi_reduction <maximumf>, %133, %cst_47 [1] : vector<8x8xf32> to vector<8xf32>
    %135 = vector.shape_cast %134 : vector<8xf32> to vector<8x1xf32>
    %136 = vector.broadcast %135 : vector<8x1xf32> to vector<8x8xf32>
    %137 = arith.subf %133, %136 : vector<8x8xf32>
    %138 = math.exp %137 : vector<8x8xf32>
    %cst_48 = arith.constant dense<0.000000e+00> : vector<8xf32>
    %139 = vector.multi_reduction <add>, %138, %cst_48 [1] : vector<8x8xf32> to vector<8xf32>
    %140 = vector.shape_cast %139 : vector<8xf32> to vector<8x1xf32>
    %141 = tpu.reciprocal %140 {approx = true} : vector<8x1xf32> -> vector<8x1xf32>
    %142 = vector.broadcast %141 : vector<8x1xf32> to vector<8x8xf32>
    %143 = arith.mulf %138, %142 : vector<8x8xf32>
    %144 = arith.truncf %143 : vector<8x8xf32> to vector<8x8xbf16>
    %cst_49 = arith.constant dense<0.000000e+00> : vector<8x8xf32>
    %145 = tpu.matmul %144, %128, %cst_49 {dimension_numbers = #tpu.dot_dimension_numbers<[1], [0], [0], [1], [0, 0, 1, 1], [], []>} : vector<8x8xbf16>, vector<8x8xbf16>, vector<8x8xf32> -> vector<8x8xf32>
    %146 = tpu.concatenate %85, %105, %125, %145 in 1 : vector<8x8xf32>, vector<8x8xf32>, vector<8x8xf32>, vector<8x8xf32> -> vector<8x32xf32>
    %147 = vector.extract_strided_slice %56 {offsets = [8, 0], sizes = [8, 32], strides = [1, 1]} : vector<16x32xf32> to vector<8x32xf32>
    %148 = arith.truncf %147 : vector<8x32xf32> to vector<8x32xbf16>
    %149 = vector.extract_strided_slice %57 {offsets = [8, 0], sizes = [8, 32], strides = [1, 1]} : vector<16x32xf32> to vector<8x32xf32>
    %150 = arith.truncf %149 : vector<8x32xf32> to vector<8x32xbf16>
    %151 = vector.extract_strided_slice %58 {offsets = [8, 0], sizes = [8, 32], strides = [1, 1]} : vector<16x32xf32> to vector<8x32xf32>
    %152 = arith.truncf %151 : vector<8x32xf32> to vector<8x32xbf16>
    %153 = vector.extract_strided_slice %47 {offsets = [1, 0], sizes = [1, 8], strides = [1, 1]} : vector<2x8xf32> to vector<1x8xf32>
    %154 = vector.extract_strided_slice %148 {offsets = [0, 0], sizes = [8, 8], strides = [1, 1]} : vector<8x32xbf16> to vector<8x8xbf16>
    %155 = vector.extract_strided_slice %150 {offsets = [0, 0], sizes = [8, 8], strides = [1, 1]} : vector<8x32xbf16> to vector<8x8xbf16>
    %156 = vector.extract_strided_slice %152 {offsets = [0, 0], sizes = [8, 8], strides = [1, 1]} : vector<8x32xbf16> to vector<8x8xbf16>
    %cst_50 = arith.constant dense<0.000000e+00> : vector<8x8xf32>
    %157 = tpu.matmul %154, %155, %cst_50 {dimension_numbers = #tpu.dot_dimension_numbers<[1], [1], [0], [0], [0, 0, 1, 0], [], []>} : vector<8x8xbf16>, vector<8x8xbf16>, vector<8x8xf32> -> vector<8x8xf32>
    %cst_51 = arith.constant 0.353553385 : f32
    %158 = vector.broadcast %cst_51 : f32 to vector<8x8xf32>
    %159 = arith.mulf %157, %158 : vector<8x8xf32>
    %160 = vector.broadcast %153 : vector<1x8xf32> to vector<8x8xf32>
    %161 = arith.addf %159, %160 : vector<8x8xf32>
    %cst_52 = arith.constant dense<0xFF800000> : vector<8xf32>
    %162 = vector.multi_reduction <maximumf>, %161, %cst_52 [1] : vector<8x8xf32> to vector<8xf32>
    %163 = vector.shape_cast %162 : vector<8xf32> to vector<8x1xf32>
    %164 = vector.broadcast %163 : vector<8x1xf32> to vector<8x8xf32>
    %165 = arith.subf %161, %164 : vector<8x8xf32>
    %166 = math.exp %165 : vector<8x8xf32>
    %cst_53 = arith.constant dense<0.000000e+00> : vector<8xf32>
    %167 = vector.multi_reduction <add>, %166, %cst_53 [1] : vector<8x8xf32> to vector<8xf32>
    %168 = vector.shape_cast %167 : vector<8xf32> to vector<8x1xf32>
    %169 = tpu.reciprocal %168 {approx = true} : vector<8x1xf32> -> vector<8x1xf32>
    %170 = vector.broadcast %169 : vector<8x1xf32> to vector<8x8xf32>
    %171 = arith.mulf %166, %170 : vector<8x8xf32>
    %172 = arith.truncf %171 : vector<8x8xf32> to vector<8x8xbf16>
    %cst_54 = arith.constant dense<0.000000e+00> : vector<8x8xf32>
    %173 = tpu.matmul %172, %156, %cst_54 {dimension_numbers = #tpu.dot_dimension_numbers<[1], [0], [0], [1], [0, 0, 1, 1], [], []>} : vector<8x8xbf16>, vector<8x8xbf16>, vector<8x8xf32> -> vector<8x8xf32>
    %174 = vector.extract_strided_slice %148 {offsets = [0, 8], sizes = [8, 8], strides = [1, 1]} : vector<8x32xbf16> to vector<8x8xbf16>
    %175 = vector.extract_strided_slice %150 {offsets = [0, 8], sizes = [8, 8], strides = [1, 1]} : vector<8x32xbf16> to vector<8x8xbf16>
    %176 = vector.extract_strided_slice %152 {offsets = [0, 8], sizes = [8, 8], strides = [1, 1]} : vector<8x32xbf16> to vector<8x8xbf16>
    %cst_55 = arith.constant dense<0.000000e+00> : vector<8x8xf32>
    %177 = tpu.matmul %174, %175, %cst_55 {dimension_numbers = #tpu.dot_dimension_numbers<[1], [1], [0], [0], [0, 0, 1, 0], [], []>} : vector<8x8xbf16>, vector<8x8xbf16>, vector<8x8xf32> -> vector<8x8xf32>
    %cst_56 = arith.constant 0.353553385 : f32
    %178 = vector.broadcast %cst_56 : f32 to vector<8x8xf32>
    %179 = arith.mulf %177, %178 : vector<8x8xf32>
    %180 = vector.broadcast %153 : vector<1x8xf32> to vector<8x8xf32>
    %181 = arith.addf %179, %180 : vector<8x8xf32>
    %cst_57 = arith.constant dense<0xFF800000> : vector<8xf32>
    %182 = vector.multi_reduction <maximumf>, %181, %cst_57 [1] : vector<8x8xf32> to vector<8xf32>
    %183 = vector.shape_cast %182 : vector<8xf32> to vector<8x1xf32>
    %184 = vector.broadcast %183 : vector<8x1xf32> to vector<8x8xf32>
    %185 = arith.subf %181, %184 : vector<8x8xf32>
    %186 = math.exp %185 : vector<8x8xf32>
    %cst_58 = arith.constant dense<0.000000e+00> : vector<8xf32>
    %187 = vector.multi_reduction <add>, %186, %cst_58 [1] : vector<8x8xf32> to vector<8xf32>
    %188 = vector.shape_cast %187 : vector<8xf32> to vector<8x1xf32>
    %189 = tpu.reciprocal %188 {approx = true} : vector<8x1xf32> -> vector<8x1xf32>
    %190 = vector.broadcast %189 : vector<8x1xf32> to vector<8x8xf32>
    %191 = arith.mulf %186, %190 : vector<8x8xf32>
    %192 = arith.truncf %191 : vector<8x8xf32> to vector<8x8xbf16>
    %cst_59 = arith.constant dense<0.000000e+00> : vector<8x8xf32>
    %193 = tpu.matmul %192, %176, %cst_59 {dimension_numbers = #tpu.dot_dimension_numbers<[1], [0], [0], [1], [0, 0, 1, 1], [], []>} : vector<8x8xbf16>, vector<8x8xbf16>, vector<8x8xf32> -> vector<8x8xf32>
    %194 = vector.extract_strided_slice %148 {offsets = [0, 16], sizes = [8, 8], strides = [1, 1]} : vector<8x32xbf16> to vector<8x8xbf16>
    %195 = vector.extract_strided_slice %150 {offsets = [0, 16], sizes = [8, 8], strides = [1, 1]} : vector<8x32xbf16> to vector<8x8xbf16>
    %196 = vector.extract_strided_slice %152 {offsets = [0, 16], sizes = [8, 8], strides = [1, 1]} : vector<8x32xbf16> to vector<8x8xbf16>
    %cst_60 = arith.constant dense<0.000000e+00> : vector<8x8xf32>
    %197 = tpu.matmul %194, %195, %cst_60 {dimension_numbers = #tpu.dot_dimension_numbers<[1], [1], [0], [0], [0, 0, 1, 0], [], []>} : vector<8x8xbf16>, vector<8x8xbf16>, vector<8x8xf32> -> vector<8x8xf32>
    %cst_61 = arith.constant 0.353553385 : f32
    %198 = vector.broadcast %cst_61 : f32 to vector<8x8xf32>
    %199 = arith.mulf %197, %198 : vector<8x8xf32>
    %200 = vector.broadcast %153 : vector<1x8xf32> to vector<8x8xf32>
    %201 = arith.addf %199, %200 : vector<8x8xf32>
    %cst_62 = arith.constant dense<0xFF800000> : vector<8xf32>
    %202 = vector.multi_reduction <maximumf>, %201, %cst_62 [1] : vector<8x8xf32> to vector<8xf32>
    %203 = vector.shape_cast %202 : vector<8xf32> to vector<8x1xf32>
    %204 = vector.broadcast %203 : vector<8x1xf32> to vector<8x8xf32>
    %205 = arith.subf %201, %204 : vector<8x8xf32>
    %206 = math.exp %205 : vector<8x8xf32>
    %cst_63 = arith.constant dense<0.000000e+00> : vector<8xf32>
    %207 = vector.multi_reduction <add>, %206, %cst_63 [1] : vector<8x8xf32> to vector<8xf32>
    %208 = vector.shape_cast %207 : vector<8xf32> to vector<8x1xf32>
    %209 = tpu.reciprocal %208 {approx = true} : vector<8x1xf32> -> vector<8x1xf32>
    %210 = vector.broadcast %209 : vector<8x1xf32> to vector<8x8xf32>
    %211 = arith.mulf %206, %210 : vector<8x8xf32>
    %212 = arith.truncf %211 : vector<8x8xf32> to vector<8x8xbf16>
    %cst_64 = arith.constant dense<0.000000e+00> : vector<8x8xf32>
    %213 = tpu.matmul %212, %196, %cst_64 {dimension_numbers = #tpu.dot_dimension_numbers<[1], [0], [0], [1], [0, 0, 1, 1], [], []>} : vector<8x8xbf16>, vector<8x8xbf16>, vector<8x8xf32> -> vector<8x8xf32>
    %214 = vector.extract_strided_slice %148 {offsets = [0, 24], sizes = [8, 8], strides = [1, 1]} : vector<8x32xbf16> to vector<8x8xbf16>
    %215 = vector.extract_strided_slice %150 {offsets = [0, 24], sizes = [8, 8], strides = [1, 1]} : vector<8x32xbf16> to vector<8x8xbf16>
    %216 = vector.extract_strided_slice %152 {offsets = [0, 24], sizes = [8, 8], strides = [1, 1]} : vector<8x32xbf16> to vector<8x8xbf16>
    %cst_65 = arith.constant dense<0.000000e+00> : vector<8x8xf32>
    %217 = tpu.matmul %214, %215, %cst_65 {dimension_numbers = #tpu.dot_dimension_numbers<[1], [1], [0], [0], [0, 0, 1, 0], [], []>} : vector<8x8xbf16>, vector<8x8xbf16>, vector<8x8xf32> -> vector<8x8xf32>
    %cst_66 = arith.constant 0.353553385 : f32
    %218 = vector.broadcast %cst_66 : f32 to vector<8x8xf32>
    %219 = arith.mulf %217, %218 : vector<8x8xf32>
    %220 = vector.broadcast %153 : vector<1x8xf32> to vector<8x8xf32>
    %221 = arith.addf %219, %220 : vector<8x8xf32>
    %cst_67 = arith.constant dense<0xFF800000> : vector<8xf32>
    %222 = vector.multi_reduction <maximumf>, %221, %cst_67 [1] : vector<8x8xf32> to vector<8xf32>
    %223 = vector.shape_cast %222 : vector<8xf32> to vector<8x1xf32>
    %224 = vector.broadcast %223 : vector<8x1xf32> to vector<8x8xf32>
    %225 = arith.subf %221, %224 : vector<8x8xf32>
    %226 = math.exp %225 : vector<8x8xf32>
    %cst_68 = arith.constant dense<0.000000e+00> : vector<8xf32>
    %227 = vector.multi_reduction <add>, %226, %cst_68 [1] : vector<8x8xf32> to vector<8xf32>
    %228 = vector.shape_cast %227 : vector<8xf32> to vector<8x1xf32>
    %229 = tpu.reciprocal %228 {approx = true} : vector<8x1xf32> -> vector<8x1xf32>
    %230 = vector.broadcast %229 : vector<8x1xf32> to vector<8x8xf32>
    %231 = arith.mulf %226, %230 : vector<8x8xf32>
    %232 = arith.truncf %231 : vector<8x8xf32> to vector<8x8xbf16>
    %cst_69 = arith.constant dense<0.000000e+00> : vector<8x8xf32>
    %233 = tpu.matmul %232, %216, %cst_69 {dimension_numbers = #tpu.dot_dimension_numbers<[1], [0], [0], [1], [0, 0, 1, 1], [], []>} : vector<8x8xbf16>, vector<8x8xbf16>, vector<8x8xf32> -> vector<8x8xf32>
    %234 = tpu.concatenate %173, %193, %213, %233 in 1 : vector<8x8xf32>, vector<8x8xf32>, vector<8x8xf32>, vector<8x8xf32> -> vector<8x32xf32>
    %235 = tpu.concatenate %146, %234 in 0 : vector<8x32xf32>, vector<8x32xf32> -> vector<16x32xf32>
    %236 = arith.truncf %235 : vector<16x32xf32> to vector<16x32xbf16>
    %c0_70 = arith.constant 0 : index
    %c0_71 = arith.constant 0 : index
    %c0_72 = arith.constant 0 : index
    %237 = vector.load %arg10[%c0_70, %c0_71, %c0_72] : memref<2x32x32xbf16, #tpu.memory_space<vmem>>, vector<1x32x32xbf16>
    %238 = vector.shape_cast %237 : vector<1x32x32xbf16> to vector<32x32xbf16>
    %cst_73 = arith.constant dense<0.000000e+00> : vector<16x32xf32>
    %239 = tpu.matmul %236, %238, %cst_73 {dimension_numbers = #tpu.dot_dimension_numbers<[1], [0], [0], [1], [0, 0, 1, 1], [], []>} : vector<16x32xbf16>, vector<32x32xbf16>, vector<16x32xf32> -> vector<16x32xf32>
    %c0_74 = arith.constant 0 : index
    %c0_75 = arith.constant 0 : index
    %c0_76 = arith.constant 0 : index
    %240 = vector.load %arg11[%c0_74, %c0_75, %c0_76] : memref<2x1x32xf32, #tpu.memory_space<vmem>>, vector<1x1x32xf32>
    %241 = vector.shape_cast %240 : vector<1x1x32xf32> to vector<1x32xf32>
    %242 = vector.broadcast %241 : vector<1x32xf32> to vector<16x32xf32>
    %243 = arith.addf %239, %242 : vector<16x32xf32>
    %244 = arith.addf %243, %41 : vector<16x32xf32>
    %c0_77 = arith.constant 0 : index
    %c0_78 = arith.constant 0 : index
    %c0_79 = arith.constant 0 : index
    %245 = vector.load %arg12[%c0_77, %c0_78, %c0_79] : memref<2x1x32xf32, #tpu.memory_space<vmem>>, vector<1x1x32xf32>
    %246 = vector.shape_cast %245 : vector<1x1x32xf32> to vector<1x32xf32>
    %c0_80 = arith.constant 0 : index
    %c0_81 = arith.constant 0 : index
    %c0_82 = arith.constant 0 : index
    %247 = vector.load %arg13[%c0_80, %c0_81, %c0_82] : memref<2x1x32xf32, #tpu.memory_space<vmem>>, vector<1x1x32xf32>
    %248 = vector.shape_cast %247 : vector<1x1x32xf32> to vector<1x32xf32>
    %cst_83 = arith.constant dense<0.000000e+00> : vector<16xf32>
    %249 = vector.multi_reduction <add>, %244, %cst_83 [1] : vector<16x32xf32> to vector<16xf32>
    %250 = vector.shape_cast %249 : vector<16xf32> to vector<16x1xf32>
    %cst_84 = arith.constant 3.200000e+01 : f32
    %251 = vector.broadcast %cst_84 : f32 to vector<16x1xf32>
    %252 = arith.divf %250, %251 : vector<16x1xf32>
    %253 = vector.broadcast %252 : vector<16x1xf32> to vector<16x32xf32>
    %254 = arith.subf %244, %253 : vector<16x32xf32>
    %255 = arith.mulf %254, %254 : vector<16x32xf32>
    %cst_85 = arith.constant dense<0.000000e+00> : vector<16xf32>
    %256 = vector.multi_reduction <add>, %255, %cst_85 [1] : vector<16x32xf32> to vector<16xf32>
    %257 = vector.shape_cast %256 : vector<16xf32> to vector<16x1xf32>
    %cst_86 = arith.constant 3.200000e+01 : f32
    %258 = vector.broadcast %cst_86 : f32 to vector<16x1xf32>
    %259 = arith.divf %257, %258 : vector<16x1xf32>
    %cst_87 = arith.constant 9.99999996E-13 : f32
    %260 = vector.broadcast %cst_87 : f32 to vector<16x1xf32>
    %261 = arith.addf %259, %260 : vector<16x1xf32>
    %262 = math.rsqrt %261 : vector<16x1xf32>
    %263 = vector.broadcast %262 : vector<16x1xf32> to vector<16x32xf32>
    %264 = arith.mulf %254, %263 : vector<16x32xf32>
    %265 = vector.broadcast %246 : vector<1x32xf32> to vector<16x32xf32>
    %266 = arith.mulf %264, %265 : vector<16x32xf32>
    %267 = vector.broadcast %248 : vector<1x32xf32> to vector<16x32xf32>
    %268 = arith.addf %266, %267 : vector<16x32xf32>
    %269 = arith.truncf %268 : vector<16x32xf32> to vector<16x32xbf16>
    %c0_88 = arith.constant 0 : index
    %c0_89 = arith.constant 0 : index
    %c0_90 = arith.constant 0 : index
    %270 = vector.load %arg14[%c0_88, %c0_89, %c0_90] : memref<2x32x64xbf16, #tpu.memory_space<vmem>>, vector<1x32x64xbf16>
    %271 = vector.shape_cast %270 : vector<1x32x64xbf16> to vector<32x64xbf16>
    %cst_91 = arith.constant dense<0.000000e+00> : vector<16x64xf32>
    %272 = tpu.matmul %269, %271, %cst_91 {dimension_numbers = #tpu.dot_dimension_numbers<[1], [0], [0], [1], [0, 0, 1, 1], [], []>} : vector<16x32xbf16>, vector<32x64xbf16>, vector<16x64xf32> -> vector<16x64xf32>
    %c0_92 = arith.constant 0 : index
    %c0_93 = arith.constant 0 : index
    %c0_94 = arith.constant 0 : index
    %273 = vector.load %arg15[%c0_92, %c0_93, %c0_94] : memref<2x1x64xf32, #tpu.memory_space<vmem>>, vector<1x1x64xf32>
    %274 = vector.shape_cast %273 : vector<1x1x64xf32> to vector<1x64xf32>
    %275 = vector.broadcast %274 : vector<1x64xf32> to vector<16x64xf32>
    %276 = arith.addf %272, %275 : vector<16x64xf32>
    %cst_95 = arith.constant 5.000000e-01 : f32
    %277 = vector.broadcast %cst_95 : f32 to vector<16x64xf32>
    %278 = arith.mulf %277, %276 : vector<16x64xf32>
    %cst_96 = arith.constant 4.471500e-02 : f32
    %279 = vector.broadcast %cst_96 : f32 to vector<16x64xf32>
    %280 = arith.mulf %279, %276 : vector<16x64xf32>
    %281 = arith.mulf %280, %276 : vector<16x64xf32>
    %282 = arith.mulf %281, %276 : vector<16x64xf32>
    %283 = arith.addf %276, %282 : vector<16x64xf32>
    %cst_97 = arith.constant 0.797884583 : f32
    %284 = vector.broadcast %cst_97 : f32 to vector<16x64xf32>
    %285 = arith.mulf %284, %283 : vector<16x64xf32>
    %286 = math.tanh %285 : vector<16x64xf32>
    %cst_98 = arith.constant 1.000000e+00 : f32
    %287 = vector.broadcast %cst_98 : f32 to vector<16x64xf32>
    %288 = arith.addf %287, %286 : vector<16x64xf32>
    %289 = arith.mulf %278, %288 : vector<16x64xf32>
    %290 = arith.truncf %289 : vector<16x64xf32> to vector<16x64xbf16>
    %c0_99 = arith.constant 0 : index
    %c0_100 = arith.constant 0 : index
    %c0_101 = arith.constant 0 : index
    %291 = vector.load %arg16[%c0_99, %c0_100, %c0_101] : memref<2x64x32xbf16, #tpu.memory_space<vmem>>, vector<1x64x32xbf16>
    %292 = vector.shape_cast %291 : vector<1x64x32xbf16> to vector<64x32xbf16>
    %cst_102 = arith.constant dense<0.000000e+00> : vector<16x32xf32>
    %293 = tpu.matmul %290, %292, %cst_102 {dimension_numbers = #tpu.dot_dimension_numbers<[1], [0], [0], [1], [0, 0, 1, 1], [], []>} : vector<16x64xbf16>, vector<64x32xbf16>, vector<16x32xf32> -> vector<16x32xf32>
    %c0_103 = arith.constant 0 : index
    %c0_104 = arith.constant 0 : index
    %c0_105 = arith.constant 0 : index
    %294 = vector.load %arg17[%c0_103, %c0_104, %c0_105] : memref<2x1x32xf32, #tpu.memory_space<vmem>>, vector<1x1x32xf32>
    %295 = vector.shape_cast %294 : vector<1x1x32xf32> to vector<1x32xf32>
    %296 = vector.broadcast %295 : vector<1x32xf32> to vector<16x32xf32>
    %297 = arith.addf %293, %296 : vector<16x32xf32>
    %298 = arith.addf %297, %268 : vector<16x32xf32>
    %c0_106 = arith.constant 0 : index
    %c0_107 = arith.constant 0 : index
    %c0_108 = arith.constant 0 : index
    %299 = vector.load %arg18[%c0_106, %c0_107, %c0_108] : memref<2x1x32xf32, #tpu.memory_space<vmem>>, vector<1x1x32xf32>
    %300 = vector.shape_cast %299 : vector<1x1x32xf32> to vector<1x32xf32>
    %c0_109 = arith.constant 0 : index
    %c0_110 = arith.constant 0 : index
    %c0_111 = arith.constant 0 : index
    %301 = vector.load %arg19[%c0_109, %c0_110, %c0_111] : memref<2x1x32xf32, #tpu.memory_space<vmem>>, vector<1x1x32xf32>
    %302 = vector.shape_cast %301 : vector<1x1x32xf32> to vector<1x32xf32>
    %cst_112 = arith.constant dense<0.000000e+00> : vector<16xf32>
    %303 = vector.multi_reduction <add>, %298, %cst_112 [1] : vector<16x32xf32> to vector<16xf32>
    %304 = vector.shape_cast %303 : vector<16xf32> to vector<16x1xf32>
    %cst_113 = arith.constant 3.200000e+01 : f32
    %305 = vector.broadcast %cst_113 : f32 to vector<16x1xf32>
    %306 = arith.divf %304, %305 : vector<16x1xf32>
    %307 = vector.broadcast %306 : vector<16x1xf32> to vector<16x32xf32>
    %308 = arith.subf %298, %307 : vector<16x32xf32>
    %309 = arith.mulf %308, %308 : vector<16x32xf32>
    %cst_114 = arith.constant dense<0.000000e+00> : vector<16xf32>
    %310 = vector.multi_reduction <add>, %309, %cst_114 [1] : vector<16x32xf32> to vector<16xf32>
    %311 = vector.shape_cast %310 : vector<16xf32> to vector<16x1xf32>
    %cst_115 = arith.constant 3.200000e+01 : f32
    %312 = vector.broadcast %cst_115 : f32 to vector<16x1xf32>
    %313 = arith.divf %311, %312 : vector<16x1xf32>
    %cst_116 = arith.constant 9.99999996E-13 : f32
    %314 = vector.broadcast %cst_116 : f32 to vector<16x1xf32>
    %315 = arith.addf %313, %314 : vector<16x1xf32>
    %316 = math.rsqrt %315 : vector<16x1xf32>
    %317 = vector.broadcast %316 : vector<16x1xf32> to vector<16x32xf32>
    %318 = arith.mulf %308, %317 : vector<16x32xf32>
    %319 = vector.broadcast %300 : vector<1x32xf32> to vector<16x32xf32>
    %320 = arith.mulf %318, %319 : vector<16x32xf32>
    %321 = vector.broadcast %302 : vector<1x32xf32> to vector<16x32xf32>
    %322 = arith.addf %320, %321 : vector<16x32xf32>
    %323 = arith.truncf %322 : vector<16x32xf32> to vector<16x32xbf16>
    %c1 = arith.constant 1 : index
    %c0_117 = arith.constant 0 : index
    %c0_118 = arith.constant 0 : index
    %324 = vector.load %arg8[%c1, %c0_117, %c0_118] : memref<2x32x96xbf16, #tpu.memory_space<vmem>>, vector<1x32x96xbf16>
    %325 = vector.shape_cast %324 : vector<1x32x96xbf16> to vector<32x96xbf16>
    %cst_119 = arith.constant dense<0.000000e+00> : vector<16x96xf32>
    %326 = tpu.matmul %323, %325, %cst_119 {dimension_numbers = #tpu.dot_dimension_numbers<[1], [0], [0], [1], [0, 0, 1, 1], [], []>} : vector<16x32xbf16>, vector<32x96xbf16>, vector<16x96xf32> -> vector<16x96xf32>
    %c1_120 = arith.constant 1 : index
    %c0_121 = arith.constant 0 : index
    %c0_122 = arith.constant 0 : index
    %327 = vector.load %arg9[%c1_120, %c0_121, %c0_122] : memref<2x1x96xf32, #tpu.memory_space<vmem>>, vector<1x1x96xf32>
    %328 = vector.shape_cast %327 : vector<1x1x96xf32> to vector<1x96xf32>
    %329 = vector.broadcast %328 : vector<1x96xf32> to vector<16x96xf32>
    %330 = arith.addf %326, %329 : vector<16x96xf32>
    %331 = vector.extract_strided_slice %330 {offsets = [0, 0], sizes = [16, 32], strides = [1, 1]} : vector<16x96xf32> to vector<16x32xf32>
    %332 = vector.extract_strided_slice %330 {offsets = [0, 32], sizes = [16, 32], strides = [1, 1]} : vector<16x96xf32> to vector<16x32xf32>
    %333 = vector.extract_strided_slice %330 {offsets = [0, 64], sizes = [16, 32], strides = [1, 1]} : vector<16x96xf32> to vector<16x32xf32>
    %334 = vector.extract_strided_slice %331 {offsets = [0, 0], sizes = [8, 32], strides = [1, 1]} : vector<16x32xf32> to vector<8x32xf32>
    %335 = arith.truncf %334 : vector<8x32xf32> to vector<8x32xbf16>
    %336 = vector.extract_strided_slice %332 {offsets = [0, 0], sizes = [8, 32], strides = [1, 1]} : vector<16x32xf32> to vector<8x32xf32>
    %337 = arith.truncf %336 : vector<8x32xf32> to vector<8x32xbf16>
    %338 = vector.extract_strided_slice %333 {offsets = [0, 0], sizes = [8, 32], strides = [1, 1]} : vector<16x32xf32> to vector<8x32xf32>
    %339 = arith.truncf %338 : vector<8x32xf32> to vector<8x32xbf16>
    %340 = vector.extract_strided_slice %47 {offsets = [0, 0], sizes = [1, 8], strides = [1, 1]} : vector<2x8xf32> to vector<1x8xf32>
    %341 = vector.extract_strided_slice %335 {offsets = [0, 0], sizes = [8, 8], strides = [1, 1]} : vector<8x32xbf16> to vector<8x8xbf16>
    %342 = vector.extract_strided_slice %337 {offsets = [0, 0], sizes = [8, 8], strides = [1, 1]} : vector<8x32xbf16> to vector<8x8xbf16>
    %343 = vector.extract_strided_slice %339 {offsets = [0, 0], sizes = [8, 8], strides = [1, 1]} : vector<8x32xbf16> to vector<8x8xbf16>
    %cst_123 = arith.constant dense<0.000000e+00> : vector<8x8xf32>
    %344 = tpu.matmul %341, %342, %cst_123 {dimension_numbers = #tpu.dot_dimension_numbers<[1], [1], [0], [0], [0, 0, 1, 0], [], []>} : vector<8x8xbf16>, vector<8x8xbf16>, vector<8x8xf32> -> vector<8x8xf32>
    %cst_124 = arith.constant 0.353553385 : f32
    %345 = vector.broadcast %cst_124 : f32 to vector<8x8xf32>
    %346 = arith.mulf %344, %345 : vector<8x8xf32>
    %347 = vector.broadcast %340 : vector<1x8xf32> to vector<8x8xf32>
    %348 = arith.addf %346, %347 : vector<8x8xf32>
    %cst_125 = arith.constant dense<0xFF800000> : vector<8xf32>
    %349 = vector.multi_reduction <maximumf>, %348, %cst_125 [1] : vector<8x8xf32> to vector<8xf32>
    %350 = vector.shape_cast %349 : vector<8xf32> to vector<8x1xf32>
    %351 = vector.broadcast %350 : vector<8x1xf32> to vector<8x8xf32>
    %352 = arith.subf %348, %351 : vector<8x8xf32>
    %353 = math.exp %352 : vector<8x8xf32>
    %cst_126 = arith.constant dense<0.000000e+00> : vector<8xf32>
    %354 = vector.multi_reduction <add>, %353, %cst_126 [1] : vector<8x8xf32> to vector<8xf32>
    %355 = vector.shape_cast %354 : vector<8xf32> to vector<8x1xf32>
    %356 = tpu.reciprocal %355 {approx = true} : vector<8x1xf32> -> vector<8x1xf32>
    %357 = vector.broadcast %356 : vector<8x1xf32> to vector<8x8xf32>
    %358 = arith.mulf %353, %357 : vector<8x8xf32>
    %359 = arith.truncf %358 : vector<8x8xf32> to vector<8x8xbf16>
    %cst_127 = arith.constant dense<0.000000e+00> : vector<8x8xf32>
    %360 = tpu.matmul %359, %343, %cst_127 {dimension_numbers = #tpu.dot_dimension_numbers<[1], [0], [0], [1], [0, 0, 1, 1], [], []>} : vector<8x8xbf16>, vector<8x8xbf16>, vector<8x8xf32> -> vector<8x8xf32>
    %361 = vector.extract_strided_slice %335 {offsets = [0, 8], sizes = [8, 8], strides = [1, 1]} : vector<8x32xbf16> to vector<8x8xbf16>
    %362 = vector.extract_strided_slice %337 {offsets = [0, 8], sizes = [8, 8], strides = [1, 1]} : vector<8x32xbf16> to vector<8x8xbf16>
    %363 = vector.extract_strided_slice %339 {offsets = [0, 8], sizes = [8, 8], strides = [1, 1]} : vector<8x32xbf16> to vector<8x8xbf16>
    %cst_128 = arith.constant dense<0.000000e+00> : vector<8x8xf32>
    %364 = tpu.matmul %361, %362, %cst_128 {dimension_numbers = #tpu.dot_dimension_numbers<[1], [1], [0], [0], [0, 0, 1, 0], [], []>} : vector<8x8xbf16>, vector<8x8xbf16>, vector<8x8xf32> -> vector<8x8xf32>
    %cst_129 = arith.constant 0.353553385 : f32
    %365 = vector.broadcast %cst_129 : f32 to vector<8x8xf32>
    %366 = arith.mulf %364, %365 : vector<8x8xf32>
    %367 = vector.broadcast %340 : vector<1x8xf32> to vector<8x8xf32>
    %368 = arith.addf %366, %367 : vector<8x8xf32>
    %cst_130 = arith.constant dense<0xFF800000> : vector<8xf32>
    %369 = vector.multi_reduction <maximumf>, %368, %cst_130 [1] : vector<8x8xf32> to vector<8xf32>
    %370 = vector.shape_cast %369 : vector<8xf32> to vector<8x1xf32>
    %371 = vector.broadcast %370 : vector<8x1xf32> to vector<8x8xf32>
    %372 = arith.subf %368, %371 : vector<8x8xf32>
    %373 = math.exp %372 : vector<8x8xf32>
    %cst_131 = arith.constant dense<0.000000e+00> : vector<8xf32>
    %374 = vector.multi_reduction <add>, %373, %cst_131 [1] : vector<8x8xf32> to vector<8xf32>
    %375 = vector.shape_cast %374 : vector<8xf32> to vector<8x1xf32>
    %376 = tpu.reciprocal %375 {approx = true} : vector<8x1xf32> -> vector<8x1xf32>
    %377 = vector.broadcast %376 : vector<8x1xf32> to vector<8x8xf32>
    %378 = arith.mulf %373, %377 : vector<8x8xf32>
    %379 = arith.truncf %378 : vector<8x8xf32> to vector<8x8xbf16>
    %cst_132 = arith.constant dense<0.000000e+00> : vector<8x8xf32>
    %380 = tpu.matmul %379, %363, %cst_132 {dimension_numbers = #tpu.dot_dimension_numbers<[1], [0], [0], [1], [0, 0, 1, 1], [], []>} : vector<8x8xbf16>, vector<8x8xbf16>, vector<8x8xf32> -> vector<8x8xf32>
    %381 = vector.extract_strided_slice %335 {offsets = [0, 16], sizes = [8, 8], strides = [1, 1]} : vector<8x32xbf16> to vector<8x8xbf16>
    %382 = vector.extract_strided_slice %337 {offsets = [0, 16], sizes = [8, 8], strides = [1, 1]} : vector<8x32xbf16> to vector<8x8xbf16>
    %383 = vector.extract_strided_slice %339 {offsets = [0, 16], sizes = [8, 8], strides = [1, 1]} : vector<8x32xbf16> to vector<8x8xbf16>
    %cst_133 = arith.constant dense<0.000000e+00> : vector<8x8xf32>
    %384 = tpu.matmul %381, %382, %cst_133 {dimension_numbers = #tpu.dot_dimension_numbers<[1], [1], [0], [0], [0, 0, 1, 0], [], []>} : vector<8x8xbf16>, vector<8x8xbf16>, vector<8x8xf32> -> vector<8x8xf32>
    %cst_134 = arith.constant 0.353553385 : f32
    %385 = vector.broadcast %cst_134 : f32 to vector<8x8xf32>
    %386 = arith.mulf %384, %385 : vector<8x8xf32>
    %387 = vector.broadcast %340 : vector<1x8xf32> to vector<8x8xf32>
    %388 = arith.addf %386, %387 : vector<8x8xf32>
    %cst_135 = arith.constant dense<0xFF800000> : vector<8xf32>
    %389 = vector.multi_reduction <maximumf>, %388, %cst_135 [1] : vector<8x8xf32> to vector<8xf32>
    %390 = vector.shape_cast %389 : vector<8xf32> to vector<8x1xf32>
    %391 = vector.broadcast %390 : vector<8x1xf32> to vector<8x8xf32>
    %392 = arith.subf %388, %391 : vector<8x8xf32>
    %393 = math.exp %392 : vector<8x8xf32>
    %cst_136 = arith.constant dense<0.000000e+00> : vector<8xf32>
    %394 = vector.multi_reduction <add>, %393, %cst_136 [1] : vector<8x8xf32> to vector<8xf32>
    %395 = vector.shape_cast %394 : vector<8xf32> to vector<8x1xf32>
    %396 = tpu.reciprocal %395 {approx = true} : vector<8x1xf32> -> vector<8x1xf32>
    %397 = vector.broadcast %396 : vector<8x1xf32> to vector<8x8xf32>
    %398 = arith.mulf %393, %397 : vector<8x8xf32>
    %399 = arith.truncf %398 : vector<8x8xf32> to vector<8x8xbf16>
    %cst_137 = arith.constant dense<0.000000e+00> : vector<8x8xf32>
    %400 = tpu.matmul %399, %383, %cst_137 {dimension_numbers = #tpu.dot_dimension_numbers<[1], [0], [0], [1], [0, 0, 1, 1], [], []>} : vector<8x8xbf16>, vector<8x8xbf16>, vector<8x8xf32> -> vector<8x8xf32>
    %401 = vector.extract_strided_slice %335 {offsets = [0, 24], sizes = [8, 8], strides = [1, 1]} : vector<8x32xbf16> to vector<8x8xbf16>
    %402 = vector.extract_strided_slice %337 {offsets = [0, 24], sizes = [8, 8], strides = [1, 1]} : vector<8x32xbf16> to vector<8x8xbf16>
    %403 = vector.extract_strided_slice %339 {offsets = [0, 24], sizes = [8, 8], strides = [1, 1]} : vector<8x32xbf16> to vector<8x8xbf16>
    %cst_138 = arith.constant dense<0.000000e+00> : vector<8x8xf32>
    %404 = tpu.matmul %401, %402, %cst_138 {dimension_numbers = #tpu.dot_dimension_numbers<[1], [1], [0], [0], [0, 0, 1, 0], [], []>} : vector<8x8xbf16>, vector<8x8xbf16>, vector<8x8xf32> -> vector<8x8xf32>
    %cst_139 = arith.constant 0.353553385 : f32
    %405 = vector.broadcast %cst_139 : f32 to vector<8x8xf32>
    %406 = arith.mulf %404, %405 : vector<8x8xf32>
    %407 = vector.broadcast %340 : vector<1x8xf32> to vector<8x8xf32>
    %408 = arith.addf %406, %407 : vector<8x8xf32>
    %cst_140 = arith.constant dense<0xFF800000> : vector<8xf32>
    %409 = vector.multi_reduction <maximumf>, %408, %cst_140 [1] : vector<8x8xf32> to vector<8xf32>
    %410 = vector.shape_cast %409 : vector<8xf32> to vector<8x1xf32>
    %411 = vector.broadcast %410 : vector<8x1xf32> to vector<8x8xf32>
    %412 = arith.subf %408, %411 : vector<8x8xf32>
    %413 = math.exp %412 : vector<8x8xf32>
    %cst_141 = arith.constant dense<0.000000e+00> : vector<8xf32>
    %414 = vector.multi_reduction <add>, %413, %cst_141 [1] : vector<8x8xf32> to vector<8xf32>
    %415 = vector.shape_cast %414 : vector<8xf32> to vector<8x1xf32>
    %416 = tpu.reciprocal %415 {approx = true} : vector<8x1xf32> -> vector<8x1xf32>
    %417 = vector.broadcast %416 : vector<8x1xf32> to vector<8x8xf32>
    %418 = arith.mulf %413, %417 : vector<8x8xf32>
    %419 = arith.truncf %418 : vector<8x8xf32> to vector<8x8xbf16>
    %cst_142 = arith.constant dense<0.000000e+00> : vector<8x8xf32>
    %420 = tpu.matmul %419, %403, %cst_142 {dimension_numbers = #tpu.dot_dimension_numbers<[1], [0], [0], [1], [0, 0, 1, 1], [], []>} : vector<8x8xbf16>, vector<8x8xbf16>, vector<8x8xf32> -> vector<8x8xf32>
    %421 = tpu.concatenate %360, %380, %400, %420 in 1 : vector<8x8xf32>, vector<8x8xf32>, vector<8x8xf32>, vector<8x8xf32> -> vector<8x32xf32>
    %422 = vector.extract_strided_slice %331 {offsets = [8, 0], sizes = [8, 32], strides = [1, 1]} : vector<16x32xf32> to vector<8x32xf32>
    %423 = arith.truncf %422 : vector<8x32xf32> to vector<8x32xbf16>
    %424 = vector.extract_strided_slice %332 {offsets = [8, 0], sizes = [8, 32], strides = [1, 1]} : vector<16x32xf32> to vector<8x32xf32>
    %425 = arith.truncf %424 : vector<8x32xf32> to vector<8x32xbf16>
    %426 = vector.extract_strided_slice %333 {offsets = [8, 0], sizes = [8, 32], strides = [1, 1]} : vector<16x32xf32> to vector<8x32xf32>
    %427 = arith.truncf %426 : vector<8x32xf32> to vector<8x32xbf16>
    %428 = vector.extract_strided_slice %47 {offsets = [1, 0], sizes = [1, 8], strides = [1, 1]} : vector<2x8xf32> to vector<1x8xf32>
    %429 = vector.extract_strided_slice %423 {offsets = [0, 0], sizes = [8, 8], strides = [1, 1]} : vector<8x32xbf16> to vector<8x8xbf16>
    %430 = vector.extract_strided_slice %425 {offsets = [0, 0], sizes = [8, 8], strides = [1, 1]} : vector<8x32xbf16> to vector<8x8xbf16>
    %431 = vector.extract_strided_slice %427 {offsets = [0, 0], sizes = [8, 8], strides = [1, 1]} : vector<8x32xbf16> to vector<8x8xbf16>
    %cst_143 = arith.constant dense<0.000000e+00> : vector<8x8xf32>
    %432 = tpu.matmul %429, %430, %cst_143 {dimension_numbers = #tpu.dot_dimension_numbers<[1], [1], [0], [0], [0, 0, 1, 0], [], []>} : vector<8x8xbf16>, vector<8x8xbf16>, vector<8x8xf32> -> vector<8x8xf32>
    %cst_144 = arith.constant 0.353553385 : f32
    %433 = vector.broadcast %cst_144 : f32 to vector<8x8xf32>
    %434 = arith.mulf %432, %433 : vector<8x8xf32>
    %435 = vector.broadcast %428 : vector<1x8xf32> to vector<8x8xf32>
    %436 = arith.addf %434, %435 : vector<8x8xf32>
    %cst_145 = arith.constant dense<0xFF800000> : vector<8xf32>
    %437 = vector.multi_reduction <maximumf>, %436, %cst_145 [1] : vector<8x8xf32> to vector<8xf32>
    %438 = vector.shape_cast %437 : vector<8xf32> to vector<8x1xf32>
    %439 = vector.broadcast %438 : vector<8x1xf32> to vector<8x8xf32>
    %440 = arith.subf %436, %439 : vector<8x8xf32>
    %441 = math.exp %440 : vector<8x8xf32>
    %cst_146 = arith.constant dense<0.000000e+00> : vector<8xf32>
    %442 = vector.multi_reduction <add>, %441, %cst_146 [1] : vector<8x8xf32> to vector<8xf32>
    %443 = vector.shape_cast %442 : vector<8xf32> to vector<8x1xf32>
    %444 = tpu.reciprocal %443 {approx = true} : vector<8x1xf32> -> vector<8x1xf32>
    %445 = vector.broadcast %444 : vector<8x1xf32> to vector<8x8xf32>
    %446 = arith.mulf %441, %445 : vector<8x8xf32>
    %447 = arith.truncf %446 : vector<8x8xf32> to vector<8x8xbf16>
    %cst_147 = arith.constant dense<0.000000e+00> : vector<8x8xf32>
    %448 = tpu.matmul %447, %431, %cst_147 {dimension_numbers = #tpu.dot_dimension_numbers<[1], [0], [0], [1], [0, 0, 1, 1], [], []>} : vector<8x8xbf16>, vector<8x8xbf16>, vector<8x8xf32> -> vector<8x8xf32>
    %449 = vector.extract_strided_slice %423 {offsets = [0, 8], sizes = [8, 8], strides = [1, 1]} : vector<8x32xbf16> to vector<8x8xbf16>
    %450 = vector.extract_strided_slice %425 {offsets = [0, 8], sizes = [8, 8], strides = [1, 1]} : vector<8x32xbf16> to vector<8x8xbf16>
    %451 = vector.extract_strided_slice %427 {offsets = [0, 8], sizes = [8, 8], strides = [1, 1]} : vector<8x32xbf16> to vector<8x8xbf16>
    %cst_148 = arith.constant dense<0.000000e+00> : vector<8x8xf32>
    %452 = tpu.matmul %449, %450, %cst_148 {dimension_numbers = #tpu.dot_dimension_numbers<[1], [1], [0], [0], [0, 0, 1, 0], [], []>} : vector<8x8xbf16>, vector<8x8xbf16>, vector<8x8xf32> -> vector<8x8xf32>
    %cst_149 = arith.constant 0.353553385 : f32
    %453 = vector.broadcast %cst_149 : f32 to vector<8x8xf32>
    %454 = arith.mulf %452, %453 : vector<8x8xf32>
    %455 = vector.broadcast %428 : vector<1x8xf32> to vector<8x8xf32>
    %456 = arith.addf %454, %455 : vector<8x8xf32>
    %cst_150 = arith.constant dense<0xFF800000> : vector<8xf32>
    %457 = vector.multi_reduction <maximumf>, %456, %cst_150 [1] : vector<8x8xf32> to vector<8xf32>
    %458 = vector.shape_cast %457 : vector<8xf32> to vector<8x1xf32>
    %459 = vector.broadcast %458 : vector<8x1xf32> to vector<8x8xf32>
    %460 = arith.subf %456, %459 : vector<8x8xf32>
    %461 = math.exp %460 : vector<8x8xf32>
    %cst_151 = arith.constant dense<0.000000e+00> : vector<8xf32>
    %462 = vector.multi_reduction <add>, %461, %cst_151 [1] : vector<8x8xf32> to vector<8xf32>
    %463 = vector.shape_cast %462 : vector<8xf32> to vector<8x1xf32>
    %464 = tpu.reciprocal %463 {approx = true} : vector<8x1xf32> -> vector<8x1xf32>
    %465 = vector.broadcast %464 : vector<8x1xf32> to vector<8x8xf32>
    %466 = arith.mulf %461, %465 : vector<8x8xf32>
    %467 = arith.truncf %466 : vector<8x8xf32> to vector<8x8xbf16>
    %cst_152 = arith.constant dense<0.000000e+00> : vector<8x8xf32>
    %468 = tpu.matmul %467, %451, %cst_152 {dimension_numbers = #tpu.dot_dimension_numbers<[1], [0], [0], [1], [0, 0, 1, 1], [], []>} : vector<8x8xbf16>, vector<8x8xbf16>, vector<8x8xf32> -> vector<8x8xf32>
    %469 = vector.extract_strided_slice %423 {offsets = [0, 16], sizes = [8, 8], strides = [1, 1]} : vector<8x32xbf16> to vector<8x8xbf16>
    %470 = vector.extract_strided_slice %425 {offsets = [0, 16], sizes = [8, 8], strides = [1, 1]} : vector<8x32xbf16> to vector<8x8xbf16>
    %471 = vector.extract_strided_slice %427 {offsets = [0, 16], sizes = [8, 8], strides = [1, 1]} : vector<8x32xbf16> to vector<8x8xbf16>
    %cst_153 = arith.constant dense<0.000000e+00> : vector<8x8xf32>
    %472 = tpu.matmul %469, %470, %cst_153 {dimension_numbers = #tpu.dot_dimension_numbers<[1], [1], [0], [0], [0, 0, 1, 0], [], []>} : vector<8x8xbf16>, vector<8x8xbf16>, vector<8x8xf32> -> vector<8x8xf32>
    %cst_154 = arith.constant 0.353553385 : f32
    %473 = vector.broadcast %cst_154 : f32 to vector<8x8xf32>
    %474 = arith.mulf %472, %473 : vector<8x8xf32>
    %475 = vector.broadcast %428 : vector<1x8xf32> to vector<8x8xf32>
    %476 = arith.addf %474, %475 : vector<8x8xf32>
    %cst_155 = arith.constant dense<0xFF800000> : vector<8xf32>
    %477 = vector.multi_reduction <maximumf>, %476, %cst_155 [1] : vector<8x8xf32> to vector<8xf32>
    %478 = vector.shape_cast %477 : vector<8xf32> to vector<8x1xf32>
    %479 = vector.broadcast %478 : vector<8x1xf32> to vector<8x8xf32>
    %480 = arith.subf %476, %479 : vector<8x8xf32>
    %481 = math.exp %480 : vector<8x8xf32>
    %cst_156 = arith.constant dense<0.000000e+00> : vector<8xf32>
    %482 = vector.multi_reduction <add>, %481, %cst_156 [1] : vector<8x8xf32> to vector<8xf32>
    %483 = vector.shape_cast %482 : vector<8xf32> to vector<8x1xf32>
    %484 = tpu.reciprocal %483 {approx = true} : vector<8x1xf32> -> vector<8x1xf32>
    %485 = vector.broadcast %484 : vector<8x1xf32> to vector<8x8xf32>
    %486 = arith.mulf %481, %485 : vector<8x8xf32>
    %487 = arith.truncf %486 : vector<8x8xf32> to vector<8x8xbf16>
    %cst_157 = arith.constant dense<0.000000e+00> : vector<8x8xf32>
    %488 = tpu.matmul %487, %471, %cst_157 {dimension_numbers = #tpu.dot_dimension_numbers<[1], [0], [0], [1], [0, 0, 1, 1], [], []>} : vector<8x8xbf16>, vector<8x8xbf16>, vector<8x8xf32> -> vector<8x8xf32>
    %489 = vector.extract_strided_slice %423 {offsets = [0, 24], sizes = [8, 8], strides = [1, 1]} : vector<8x32xbf16> to vector<8x8xbf16>
    %490 = vector.extract_strided_slice %425 {offsets = [0, 24], sizes = [8, 8], strides = [1, 1]} : vector<8x32xbf16> to vector<8x8xbf16>
    %491 = vector.extract_strided_slice %427 {offsets = [0, 24], sizes = [8, 8], strides = [1, 1]} : vector<8x32xbf16> to vector<8x8xbf16>
    %cst_158 = arith.constant dense<0.000000e+00> : vector<8x8xf32>
    %492 = tpu.matmul %489, %490, %cst_158 {dimension_numbers = #tpu.dot_dimension_numbers<[1], [1], [0], [0], [0, 0, 1, 0], [], []>} : vector<8x8xbf16>, vector<8x8xbf16>, vector<8x8xf32> -> vector<8x8xf32>
    %cst_159 = arith.constant 0.353553385 : f32
    %493 = vector.broadcast %cst_159 : f32 to vector<8x8xf32>
    %494 = arith.mulf %492, %493 : vector<8x8xf32>
    %495 = vector.broadcast %428 : vector<1x8xf32> to vector<8x8xf32>
    %496 = arith.addf %494, %495 : vector<8x8xf32>
    %cst_160 = arith.constant dense<0xFF800000> : vector<8xf32>
    %497 = vector.multi_reduction <maximumf>, %496, %cst_160 [1] : vector<8x8xf32> to vector<8xf32>
    %498 = vector.shape_cast %497 : vector<8xf32> to vector<8x1xf32>
    %499 = vector.broadcast %498 : vector<8x1xf32> to vector<8x8xf32>
    %500 = arith.subf %496, %499 : vector<8x8xf32>
    %501 = math.exp %500 : vector<8x8xf32>
    %cst_161 = arith.constant dense<0.000000e+00> : vector<8xf32>
    %502 = vector.multi_reduction <add>, %501, %cst_161 [1] : vector<8x8xf32> to vector<8xf32>
    %503 = vector.shape_cast %502 : vector<8xf32> to vector<8x1xf32>
    %504 = tpu.reciprocal %503 {approx = true} : vector<8x1xf32> -> vector<8x1xf32>
    %505 = vector.broadcast %504 : vector<8x1xf32> to vector<8x8xf32>
    %506 = arith.mulf %501, %505 : vector<8x8xf32>
    %507 = arith.truncf %506 : vector<8x8xf32> to vector<8x8xbf16>
    %cst_162 = arith.constant dense<0.000000e+00> : vector<8x8xf32>
    %508 = tpu.matmul %507, %491, %cst_162 {dimension_numbers = #tpu.dot_dimension_numbers<[1], [0], [0], [1], [0, 0, 1, 1], [], []>} : vector<8x8xbf16>, vector<8x8xbf16>, vector<8x8xf32> -> vector<8x8xf32>
    %509 = tpu.concatenate %448, %468, %488, %508 in 1 : vector<8x8xf32>, vector<8x8xf32>, vector<8x8xf32>, vector<8x8xf32> -> vector<8x32xf32>
    %510 = tpu.concatenate %421, %509 in 0 : vector<8x32xf32>, vector<8x32xf32> -> vector<16x32xf32>
    %511 = arith.truncf %510 : vector<16x32xf32> to vector<16x32xbf16>
    %c1_163 = arith.constant 1 : index
    %c0_164 = arith.constant 0 : index
    %c0_165 = arith.constant 0 : index
    %512 = vector.load %arg10[%c1_163, %c0_164, %c0_165] : memref<2x32x32xbf16, #tpu.memory_space<vmem>>, vector<1x32x32xbf16>
    %513 = vector.shape_cast %512 : vector<1x32x32xbf16> to vector<32x32xbf16>
    %cst_166 = arith.constant dense<0.000000e+00> : vector<16x32xf32>
    %514 = tpu.matmul %511, %513, %cst_166 {dimension_numbers = #tpu.dot_dimension_numbers<[1], [0], [0], [1], [0, 0, 1, 1], [], []>} : vector<16x32xbf16>, vector<32x32xbf16>, vector<16x32xf32> -> vector<16x32xf32>
    %c1_167 = arith.constant 1 : index
    %c0_168 = arith.constant 0 : index
    %c0_169 = arith.constant 0 : index
    %515 = vector.load %arg11[%c1_167, %c0_168, %c0_169] : memref<2x1x32xf32, #tpu.memory_space<vmem>>, vector<1x1x32xf32>
    %516 = vector.shape_cast %515 : vector<1x1x32xf32> to vector<1x32xf32>
    %517 = vector.broadcast %516 : vector<1x32xf32> to vector<16x32xf32>
    %518 = arith.addf %514, %517 : vector<16x32xf32>
    %519 = arith.addf %518, %322 : vector<16x32xf32>
    %c1_170 = arith.constant 1 : index
    %c0_171 = arith.constant 0 : index
    %c0_172 = arith.constant 0 : index
    %520 = vector.load %arg12[%c1_170, %c0_171, %c0_172] : memref<2x1x32xf32, #tpu.memory_space<vmem>>, vector<1x1x32xf32>
    %521 = vector.shape_cast %520 : vector<1x1x32xf32> to vector<1x32xf32>
    %c1_173 = arith.constant 1 : index
    %c0_174 = arith.constant 0 : index
    %c0_175 = arith.constant 0 : index
    %522 = vector.load %arg13[%c1_173, %c0_174, %c0_175] : memref<2x1x32xf32, #tpu.memory_space<vmem>>, vector<1x1x32xf32>
    %523 = vector.shape_cast %522 : vector<1x1x32xf32> to vector<1x32xf32>
    %cst_176 = arith.constant dense<0.000000e+00> : vector<16xf32>
    %524 = vector.multi_reduction <add>, %519, %cst_176 [1] : vector<16x32xf32> to vector<16xf32>
    %525 = vector.shape_cast %524 : vector<16xf32> to vector<16x1xf32>
    %cst_177 = arith.constant 3.200000e+01 : f32
    %526 = vector.broadcast %cst_177 : f32 to vector<16x1xf32>
    %527 = arith.divf %525, %526 : vector<16x1xf32>
    %528 = vector.broadcast %527 : vector<16x1xf32> to vector<16x32xf32>
    %529 = arith.subf %519, %528 : vector<16x32xf32>
    %530 = arith.mulf %529, %529 : vector<16x32xf32>
    %cst_178 = arith.constant dense<0.000000e+00> : vector<16xf32>
    %531 = vector.multi_reduction <add>, %530, %cst_178 [1] : vector<16x32xf32> to vector<16xf32>
    %532 = vector.shape_cast %531 : vector<16xf32> to vector<16x1xf32>
    %cst_179 = arith.constant 3.200000e+01 : f32
    %533 = vector.broadcast %cst_179 : f32 to vector<16x1xf32>
    %534 = arith.divf %532, %533 : vector<16x1xf32>
    %cst_180 = arith.constant 9.99999996E-13 : f32
    %535 = vector.broadcast %cst_180 : f32 to vector<16x1xf32>
    %536 = arith.addf %534, %535 : vector<16x1xf32>
    %537 = math.rsqrt %536 : vector<16x1xf32>
    %538 = vector.broadcast %537 : vector<16x1xf32> to vector<16x32xf32>
    %539 = arith.mulf %529, %538 : vector<16x32xf32>
    %540 = vector.broadcast %521 : vector<1x32xf32> to vector<16x32xf32>
    %541 = arith.mulf %539, %540 : vector<16x32xf32>
    %542 = vector.broadcast %523 : vector<1x32xf32> to vector<16x32xf32>
    %543 = arith.addf %541, %542 : vector<16x32xf32>
    %544 = arith.truncf %543 : vector<16x32xf32> to vector<16x32xbf16>
    %c1_181 = arith.constant 1 : index
    %c0_182 = arith.constant 0 : index
    %c0_183 = arith.constant 0 : index
    %545 = vector.load %arg14[%c1_181, %c0_182, %c0_183] : memref<2x32x64xbf16, #tpu.memory_space<vmem>>, vector<1x32x64xbf16>
    %546 = vector.shape_cast %545 : vector<1x32x64xbf16> to vector<32x64xbf16>
    %cst_184 = arith.constant dense<0.000000e+00> : vector<16x64xf32>
    %547 = tpu.matmul %544, %546, %cst_184 {dimension_numbers = #tpu.dot_dimension_numbers<[1], [0], [0], [1], [0, 0, 1, 1], [], []>} : vector<16x32xbf16>, vector<32x64xbf16>, vector<16x64xf32> -> vector<16x64xf32>
    %c1_185 = arith.constant 1 : index
    %c0_186 = arith.constant 0 : index
    %c0_187 = arith.constant 0 : index
    %548 = vector.load %arg15[%c1_185, %c0_186, %c0_187] : memref<2x1x64xf32, #tpu.memory_space<vmem>>, vector<1x1x64xf32>
    %549 = vector.shape_cast %548 : vector<1x1x64xf32> to vector<1x64xf32>
    %550 = vector.broadcast %549 : vector<1x64xf32> to vector<16x64xf32>
    %551 = arith.addf %547, %550 : vector<16x64xf32>
    %cst_188 = arith.constant 5.000000e-01 : f32
    %552 = vector.broadcast %cst_188 : f32 to vector<16x64xf32>
    %553 = arith.mulf %552, %551 : vector<16x64xf32>
    %cst_189 = arith.constant 4.471500e-02 : f32
    %554 = vector.broadcast %cst_189 : f32 to vector<16x64xf32>
    %555 = arith.mulf %554, %551 : vector<16x64xf32>
    %556 = arith.mulf %555, %551 : vector<16x64xf32>
    %557 = arith.mulf %556, %551 : vector<16x64xf32>
    %558 = arith.addf %551, %557 : vector<16x64xf32>
    %cst_190 = arith.constant 0.797884583 : f32
    %559 = vector.broadcast %cst_190 : f32 to vector<16x64xf32>
    %560 = arith.mulf %559, %558 : vector<16x64xf32>
    %561 = math.tanh %560 : vector<16x64xf32>
    %cst_191 = arith.constant 1.000000e+00 : f32
    %562 = vector.broadcast %cst_191 : f32 to vector<16x64xf32>
    %563 = arith.addf %562, %561 : vector<16x64xf32>
    %564 = arith.mulf %553, %563 : vector<16x64xf32>
    %565 = arith.truncf %564 : vector<16x64xf32> to vector<16x64xbf16>
    %c1_192 = arith.constant 1 : index
    %c0_193 = arith.constant 0 : index
    %c0_194 = arith.constant 0 : index
    %566 = vector.load %arg16[%c1_192, %c0_193, %c0_194] : memref<2x64x32xbf16, #tpu.memory_space<vmem>>, vector<1x64x32xbf16>
    %567 = vector.shape_cast %566 : vector<1x64x32xbf16> to vector<64x32xbf16>
    %cst_195 = arith.constant dense<0.000000e+00> : vector<16x32xf32>
    %568 = tpu.matmul %565, %567, %cst_195 {dimension_numbers = #tpu.dot_dimension_numbers<[1], [0], [0], [1], [0, 0, 1, 1], [], []>} : vector<16x64xbf16>, vector<64x32xbf16>, vector<16x32xf32> -> vector<16x32xf32>
    %c1_196 = arith.constant 1 : index
    %c0_197 = arith.constant 0 : index
    %c0_198 = arith.constant 0 : index
    %569 = vector.load %arg17[%c1_196, %c0_197, %c0_198] : memref<2x1x32xf32, #tpu.memory_space<vmem>>, vector<1x1x32xf32>
    %570 = vector.shape_cast %569 : vector<1x1x32xf32> to vector<1x32xf32>
    %571 = vector.broadcast %570 : vector<1x32xf32> to vector<16x32xf32>
    %572 = arith.addf %568, %571 : vector<16x32xf32>
    %573 = arith.addf %572, %543 : vector<16x32xf32>
    %c1_199 = arith.constant 1 : index
    %c0_200 = arith.constant 0 : index
    %c0_201 = arith.constant 0 : index
    %574 = vector.load %arg18[%c1_199, %c0_200, %c0_201] : memref<2x1x32xf32, #tpu.memory_space<vmem>>, vector<1x1x32xf32>
    %575 = vector.shape_cast %574 : vector<1x1x32xf32> to vector<1x32xf32>
    %c1_202 = arith.constant 1 : index
    %c0_203 = arith.constant 0 : index
    %c0_204 = arith.constant 0 : index
    %576 = vector.load %arg19[%c1_202, %c0_203, %c0_204] : memref<2x1x32xf32, #tpu.memory_space<vmem>>, vector<1x1x32xf32>
    %577 = vector.shape_cast %576 : vector<1x1x32xf32> to vector<1x32xf32>
    %cst_205 = arith.constant dense<0.000000e+00> : vector<16xf32>
    %578 = vector.multi_reduction <add>, %573, %cst_205 [1] : vector<16x32xf32> to vector<16xf32>
    %579 = vector.shape_cast %578 : vector<16xf32> to vector<16x1xf32>
    %cst_206 = arith.constant 3.200000e+01 : f32
    %580 = vector.broadcast %cst_206 : f32 to vector<16x1xf32>
    %581 = arith.divf %579, %580 : vector<16x1xf32>
    %582 = vector.broadcast %581 : vector<16x1xf32> to vector<16x32xf32>
    %583 = arith.subf %573, %582 : vector<16x32xf32>
    %584 = arith.mulf %583, %583 : vector<16x32xf32>
    %cst_207 = arith.constant dense<0.000000e+00> : vector<16xf32>
    %585 = vector.multi_reduction <add>, %584, %cst_207 [1] : vector<16x32xf32> to vector<16xf32>
    %586 = vector.shape_cast %585 : vector<16xf32> to vector<16x1xf32>
    %cst_208 = arith.constant 3.200000e+01 : f32
    %587 = vector.broadcast %cst_208 : f32 to vector<16x1xf32>
    %588 = arith.divf %586, %587 : vector<16x1xf32>
    %cst_209 = arith.constant 9.99999996E-13 : f32
    %589 = vector.broadcast %cst_209 : f32 to vector<16x1xf32>
    %590 = arith.addf %588, %589 : vector<16x1xf32>
    %591 = math.rsqrt %590 : vector<16x1xf32>
    %592 = vector.broadcast %591 : vector<16x1xf32> to vector<16x32xf32>
    %593 = arith.mulf %583, %592 : vector<16x32xf32>
    %594 = vector.broadcast %575 : vector<1x32xf32> to vector<16x32xf32>
    %595 = arith.mulf %593, %594 : vector<16x32xf32>
    %596 = vector.broadcast %577 : vector<1x32xf32> to vector<16x32xf32>
    %597 = arith.addf %595, %596 : vector<16x32xf32>
    %c0_210 = arith.constant 0 : index
    %c0_211 = arith.constant 0 : index
    %598 = vector.load %arg22[%c0_210, %c0_211] : memref<16x32xf32, #tpu.memory_space<vmem>>, vector<16x32xf32>
    tpu.vector_store %arg22[%c0_210, %c0_211], %597 {strides = array<i32>} : memref<16x32xf32, #tpu.memory_space<vmem>>, vector<16x32xf32>,
    %599 = vector.extract_strided_slice %597 {offsets = [0, 0], sizes = [1, 32], strides = [1, 1]} : vector<16x32xf32> to vector<1x32xf32>
    %600 = vector.extract_strided_slice %597 {offsets = [8, 0], sizes = [1, 32], strides = [1, 1]} : vector<16x32xf32> to vector<1x32xf32>
    %601 = tpu.concatenate %599, %600 in 0 : vector<1x32xf32>, vector<1x32xf32> -> vector<2x32xf32>
    %602 = arith.truncf %601 : vector<2x32xf32> to vector<2x32xbf16>
    %c0_212 = arith.constant 0 : index
    %c0_213 = arith.constant 0 : index
    %603 = vector.load %arg20[%c0_212, %c0_213] : memref<32x32xbf16, #tpu.memory_space<vmem>>, vector<32x32xbf16>
    %cst_214 = arith.constant dense<0.000000e+00> : vector<2x32xf32>
    %604 = tpu.matmul %602, %603, %cst_214 {dimension_numbers = #tpu.dot_dimension_numbers<[1], [0], [0], [1], [0, 0, 1, 1], [], []>} : vector<2x32xbf16>, vector<32x32xbf16>, vector<2x32xf32> -> vector<2x32xf32>
    %c0_215 = arith.constant 0 : index
    %c0_216 = arith.constant 0 : index
    %605 = vector.load %arg21[%c0_215, %c0_216] : memref<1x32xf32, #tpu.memory_space<vmem>>, vector<1x32xf32>
    %606 = vector.broadcast %605 : vector<1x32xf32> to vector<2x32xf32>
    %607 = arith.addf %604, %606 : vector<2x32xf32>
    %608 = math.tanh %607 : vector<2x32xf32>
    %c0_217 = arith.constant 0 : index
    %c0_218 = arith.constant 0 : index
    %609 = vector.load %arg23[%c0_217, %c0_218] : memref<2x32xf32, #tpu.memory_space<vmem>>, vector<2x32xf32>
    tpu.vector_store %arg23[%c0_217, %c0_218], %608 {strides = array<i32>} : memref<2x32xf32, #tpu.memory_space<vmem>>, vector<2x32xf32>,
    return
  }
}

</mosaic_0001>

<bundles_post_ra>
// kernel: bert_module_forward.1
= control target key start
LH: loop header
LB: loop body
LE: loop exit
PB: predicated region body
PF: predicated region fallthrough
CT: control target
= control target key end

     0   :  { %s5264_s0 = inlined_call_operand.vmem [shape: s32[2,8], index: 0, kind: input, shape index: {}]   ;;  %s5265_s1 = inlined_call_operand.vmem [shape: s32[16,1], index: 1, kind: input, shape index: {}]   ;;  %s5266_s2 = inlined_call_operand.vmem [shape: s32[16,1], index: 2, kind: input, shape index: {}]   ;;  %s5267_s3 = inlined_call_operand.vmem [shape: f32[30,32], index: 3, kind: input, shape index: {}]   ;;  %s5268_s4 = inlined_call_operand.vmem [shape: f32[8,32], index: 4, kind: input, shape index: {}]   ;;  %s5269_s5 = inlined_call_operand.hbm [shape: f32[2,32], index: 5, kind: input, shape index: {}]   ;;  %s5270_s6 = inlined_call_operand.hbm [shape: f32[1,32], index: 6, kind: input, shape index: {}]   ;;  %s5271_s7 = inlined_call_operand.hbm [shape: f32[1,32], index: 7, kind: input, shape index: {}]   ;;  %s5272_s8 = inlined_call_operand.vmem [shape: bf16[2,32,96], index: 8, kind: input, shape index: {}]   ;;  %s5273_s9 = inlined_call_operand.hbm [shape: f32[2,1,96], index: 9, kind: input, shape index: {}]   ;;  %s5274_s10 = inlined_call_operand.vmem [shape: bf16[2,32,32], index: 10, kind: input, shape index: {}]   ;;  %s5275_s11 = inlined_call_operand.hbm [shape: f32[2,1,32], index: 11, kind: input, shape index: {}]   ;;  %s5276_s12 = inlined_call_operand.hbm [shape: f32[2,1,32], index: 12, kind: input, shape index: {}]   ;;  %s5277_s13 = inlined_call_operand.hbm [shape: f32[2,1,32], index: 13, kind: input, shape index: {}]   ;;  %s5278_s14 = inlined_call_operand.vmem [shape: bf16[2,32,64], index: 14, kind: input, shape index: {}]   ;;  %s5279_s15 = inlined_call_operand.hbm [shape: f32[2,1,64], index: 15, kind: input, shape index: {}]   ;;  %s5280_s16 = inlined_call_operand.vmem [shape: bf16[2,64,32], index: 16, kind: input, shape index: {}]   ;;  %s5281_s17 = inlined_call_operand.hbm [shape: f32[2,1,32], index: 17, kind: input, shape index: {}]   ;;  %s5282_s18 = inlined_call_operand.hbm [shape: f32[2,1,32], index: 18, kind: input, shape index: {}]   ;;  %s5283_s19 = inlined_call_operand.hbm [shape: f32[2,1,32], index: 19, kind: input, shape index: {}]   ;;  %s5284_s20 = inlined_call_operand.vmem [shape: bf16[32,32], index: 20, kind: input, shape index: {}]   ;;  %s5285_s21 = inlined_call_operand.hbm [shape: f32[1,32], index: 21, kind: input, shape index: {}]   ;;  %s5286_s22 = inlined_call_operand.hbm [shape: f32[16,32], index: 22, kind: output, shape index: {0}]   ;;  %s5287_s23 = inlined_call_operand.hbm [shape: f32[2,32], index: 23, kind: output, shape index: {1}]  }
   0x1   :  { %5295 = sst [smem:[#allocation34_spill]] %s5264_s0 }
   0x2   :  { %5296 = sst [smem:[#allocation35_spill]] %s5265_s1 }
   0x3   :  { %5297 = sst [smem:[#allocation36_spill]] %s5266_s2 }
   0x4   :  { %5298 = sst [smem:[#allocation37_spill]] %s5267_s3 }
   0x5   :  { %5299 = sst [smem:[#allocation38_spill]] %s5268_s4 }
   0x6   :  { %5300 = sst [smem:[#allocation39_spill]] %s5269_s5 }
   0x7   :  { %5301 = sst [smem:[#allocation40_spill]] %s5270_s6 }
   0x8   :  { %5302 = sst [smem:[#allocation41_spill]] %s5271_s7 }
   0x9   :  { %5303 = sst [smem:[#allocation42_spill]] %s5287_s23 }
   0xa   :  { %29 = vsyncpa [#allocation3], 0 }
   0xb   :  { %30 = vsyncpa [#allocation6], 0 }
   0xc   :  { %31 = vsyncpa [#allocation9], 0 }
   0xd   :  { %32 = vsyncpa [#allocation12], 0 }
   0xe   :  { %33 = vsyncpa [#allocation15], 0 }
   0xf   :  { %34 = vsyncpa [#allocation18], 0 }
  0x10   :  { %35 = vsyncpa [#allocation21], 0 }
  0x11   :  { %36 = vsyncpa [#allocation4], 0 }
  0x12   :  { %37 = vsyncpa [#allocation24], 0  ;;  %s4302_s4 = smov [#allocation5]   ;;  %s4303_s24 = smov [#allocation8]  }
  0x13   :  { %s64_s30 = sshll.u32 %s4302_s4, 4  ;;  %s85_s25 = sshll.u32 %s4303_s24, 4  ;;  %s65_s30 = int_to_ptr.vmem [resolvable:$true] %s64_s30  ;;  %s4457_s25 = int_to_ptr.vmem [resolvable:$true] %s85_s25 }
  0x14   :  { %s5304_s26 = sld [smem:[#allocation40_spill]] }
  0x1a   :  { %s3976_s2 = scalar_lea.hbm %s5304_s26, 16 }
  0x1b   :  { %p3977_p0 = scmp.ne.s32.totalorder %s5304_s26, %s3976_s2  ;;  %p3980_p1 = scmp.lt.u32.totalorder %s3976_s2, %s5304_s26 }
  0x1d   :  { %p3982_p2 = pnand %p3980_p1, %p3977_p0 }
  0x1f   :  { %3985 = shalt.err (!%p3982_p2)
}
  0x20   :  { %s3986_s29 = scalar_lea.vmem %s65_s30, 16  ;;  %s3990_s3 = scalar_lea.vmem %s65_s30, 32 }
  0x21   :  { %p3987_p3 = scmp.ne.s32.totalorder %s65_s30, %s3986_s29  ;;  %p3991_p4 = scmp.lt.s32.totalorder %s65_s30, %s65_s30 }
  0x22   :  { %p3992_p5 = scmp.lt.s32.totalorder %s3990_s3, %s3986_s29 }
  0x24   :  { %p3993_p6 = por %p3992_p5, %p3991_p4 }
  0x26   :  { %p3994_p7 = pnand %p3993_p6, %p3987_p3 }
  0x28   :  { %3997 = shalt.err (!%p3994_p7)
}
  0x29   :  { %67 = dma.hbm_to_vmem [thread:$0]  %s5304_s26, 16, %s65_s30, [#allocation6]  }
  0x2a   :  { %s3998_s1 = scalar_lea.hbm %s5273_s9, 32 }
  0x2b   :  { %p3999_p8 = scmp.ne.s32.totalorder %s5273_s9, %s3998_s1  ;;  %p4002_p9 = scmp.lt.u32.totalorder %s3998_s1, %s5273_s9 }
  0x2d   :  { %p4004_p10 = pnand %p4002_p9, %p3999_p8 }
  0x2f   :  { %4007 = shalt.err (!%p4004_p10)
}
  0x30   :  { %s4008_s28 = scalar_lea.vmem %s4457_s25, 32  ;;  %p4013_p12 = scmp.lt.s32.totalorder %s4457_s25, %s4457_s25 }
  0x31   :  { %p4009_p11 = scmp.ne.s32.totalorder %s4457_s25, %s4008_s28  ;;  %p4014_p13 = scmp.lt.s32.totalorder %s4008_s28, %s4008_s28 }
  0x33   :  { %p4015_p0 = por %p4014_p13, %p4013_p12 }
  0x35   :  { %p4016_p1 = pnand %p4015_p0, %p4009_p11 }
  0x37   :  { %4019 = shalt.err (!%p4016_p1)
}
  0x38   :  { %s4304_s30 = smov 16   ;;  %s4305_s26 = smov 1  }
  0x39   :  { %91 = dma.hbm_to_vmem [thread:$0]  %s5273_s9, 32, %s4457_s25, [#allocation9], %s4304_s30, %s4304_s30, %s4305_s26  }
  0x3a   :  { %s4306_s0 = smov [#allocation11]   ;;  %s4307_s24 = smov [#allocation14]  }
  0x3b   :  { %s111_s4 = sshll.u32 %s4306_s0, 4  ;;  %s137_s5 = sshll.u32 %s4307_s24, 4  ;;  %s112_s4 = int_to_ptr.vmem [resolvable:$true] %s111_s4  ;;  %s4491_s5 = int_to_ptr.vmem [resolvable:$true] %s137_s5 }
  0x3c   :  { %s4020_s2 = scalar_lea.hbm %s5276_s12, 32 }
  0x3d   :  { %p4021_p2 = scmp.ne.s32.totalorder %s5276_s12, %s4020_s2  ;;  %p4024_p3 = scmp.lt.u32.totalorder %s4020_s2, %s5276_s12 }
  0x3f   :  { %p4026_p4 = pnand %p4024_p3, %p4021_p2 }
  0x41   :  { %4029 = shalt.err (!%p4026_p4)
}
  0x42   :  { %s4030_s9 = scalar_lea.vmem %s112_s4, 32  ;;  %p4035_p6 = scmp.lt.s32.totalorder %s112_s4, %s112_s4 }
  0x43   :  { %p4031_p5 = scmp.ne.s32.totalorder %s112_s4, %s4030_s9  ;;  %p4036_p7 = scmp.lt.s32.totalorder %s4030_s9, %s4030_s9 }
  0x45   :  { %p4037_p8 = por %p4036_p7, %p4035_p6 }
  0x47   :  { %p4038_p9 = pnand %p4037_p8, %p4031_p5 }
  0x49   :  { %4041 = shalt.err (!%p4038_p9)
}
  0x4a   :  { %117 = dma.hbm_to_vmem [thread:$0]  %s5276_s12, 32, %s112_s4, [#allocation12], %s4304_s30, %s4304_s30, %s4305_s26  }
  0x4b   :  { %s4042_s23 = scalar_lea.hbm %s5279_s15, 32 }
  0x4c   :  { %p4043_p10 = scmp.ne.s32.totalorder %s5279_s15, %s4042_s23  ;;  %p4046_p11 = scmp.lt.u32.totalorder %s4042_s23, %s5279_s15 }
  0x4e   :  { %p4048_p12 = pnand %p4046_p11, %p4043_p10 }
  0x50   :  { %4051 = shalt.err (!%p4048_p12)
}
  0x51   :  { %s4052_s27 = scalar_lea.vmem %s4491_s5, 32  ;;  %p4057_p0 = scmp.lt.s32.totalorder %s4491_s5, %s4491_s5 }
  0x52   :  { %p4053_p13 = scmp.ne.s32.totalorder %s4491_s5, %s4052_s27  ;;  %p4058_p1 = scmp.lt.s32.totalorder %s4052_s27, %s4052_s27 }
  0x54   :  { %p4059_p2 = por %p4058_p1, %p4057_p0 }
  0x56   :  { %p4060_p3 = pnand %p4059_p2, %p4053_p13 }
  0x58   :  { %4063 = shalt.err (!%p4060_p3)
}
  0x59   :  { %143 = dma.hbm_to_vmem [thread:$0]  %s5279_s15, 32, %s4491_s5, [#allocation15], %s4304_s30, %s4304_s30, %s4305_s26  }
  0x5a   :  { %s4308_s7 = smov [#allocation17]   ;;  %s4309_s9 = smov [#allocation2]  }
  0x5b   :  { %s163_s28 = sshll.u32 %s4308_s7, 4  ;;  %s54_s25 = sshll.u32 %s4309_s9, 4  ;;  %s164_s28 = int_to_ptr.vmem [resolvable:$true] %s163_s28  ;;  %s55_s25 = int_to_ptr.vmem [resolvable:$true] %s54_s25 }
  0x5c   :  { %s4064_s0 = scalar_lea.hbm %s5282_s18, 32 }
  0x5d   :  { %p4065_p4 = scmp.ne.s32.totalorder %s5282_s18, %s4064_s0  ;;  %p4068_p5 = scmp.lt.u32.totalorder %s4064_s0, %s5282_s18 }
  0x5f   :  { %p4070_p6 = pnand %p4068_p5, %p4065_p4 }
  0x61   :  { %4073 = shalt.err (!%p4070_p6)
}
  0x62   :  { %s4074_s15 = scalar_lea.vmem %s164_s28, 32  ;;  %p4079_p8 = scmp.lt.s32.totalorder %s164_s28, %s164_s28 }
  0x63   :  { %p4075_p7 = scmp.ne.s32.totalorder %s164_s28, %s4074_s15  ;;  %p4080_p9 = scmp.lt.s32.totalorder %s4074_s15, %s4074_s15 }
  0x65   :  { %p4081_p10 = por %p4080_p9, %p4079_p8 }
  0x67   :  { %p4082_p11 = pnand %p4081_p10, %p4075_p7 }
  0x69   :  { %4085 = shalt.err (!%p4082_p11)
}
  0x6a   :  { %169 = dma.hbm_to_vmem [thread:$0]  %s5282_s18, 32, %s164_s28, [#allocation18], %s4304_s30, %s4304_s30, %s4305_s26  }
  0x6b   :  { %s5305_s4 = sld [smem:[#allocation39_spill]] }
  0x71   :  { %s4086_s7 = scalar_lea.hbm %s5305_s4, 32 }
  0x72   :  { %p4087_p12 = scmp.ne.s32.totalorder %s5305_s4, %s4086_s7  ;;  %p4090_p13 = scmp.lt.u32.totalorder %s4086_s7, %s5305_s4 }
  0x74   :  { %p4092_p0 = pnand %p4090_p13, %p4087_p12 }
  0x76   :  { %4095 = shalt.err (!%p4092_p0)
}
  0x77   :  { %s4096_s23 = scalar_lea.vmem %s55_s25, 32  ;;  %p4101_p2 = scmp.lt.s32.totalorder %s55_s25, %s55_s25 }
  0x78   :  { %p4097_p1 = scmp.ne.s32.totalorder %s55_s25, %s4096_s23  ;;  %p4102_p3 = scmp.lt.s32.totalorder %s4096_s23, %s4096_s23 }
  0x7a   :  { %p4103_p4 = por %p4102_p3, %p4101_p2 }
  0x7c   :  { %p4104_p5 = pnand %p4103_p4, %p4097_p1 }
  0x7e   :  { %4107 = shalt.err (!%p4104_p5)
}
  0x7f   :  { %57 = dma.hbm_to_vmem [thread:$0]  %s5305_s4, 32, %s55_s25, [#allocation3]  }
  0x80   :  { %s4310_s24 = smov [#allocation7]   ;;  %s4311_s6 = smov [#allocation10]  }
  0x81   :  { %s74_s1 = sshll.u32 %s4310_s24, 4  ;;  %s99_s15 = sshll.u32 %s4311_s6, 4  ;;  %s75_s1 = int_to_ptr.vmem [resolvable:$true] %s74_s1  ;;  %s4555_s15 = int_to_ptr.vmem [resolvable:$true] %s99_s15 }
  0x82   :  { %s5306_s27 = sld [smem:[#allocation41_spill]] }
  0x88   :  { %s4108_s12 = scalar_lea.hbm %s5306_s27, 16 }
  0x89   :  { %p4109_p6 = scmp.ne.s32.totalorder %s5306_s27, %s4108_s12  ;;  %p4112_p7 = scmp.lt.u32.totalorder %s4108_s12, %s5306_s27 }
  0x8b   :  { %p4114_p8 = pnand %p4112_p7, %p4109_p6 }
  0x8d   :  { %4117 = shalt.err (!%p4114_p8)
}
  0x8e   :  { %s4118_s25 = scalar_lea.vmem %s75_s1, 16  ;;  %s4122_s4 = scalar_lea.vmem %s75_s1, 32 }
  0x8f   :  { %p4119_p9 = scmp.ne.s32.totalorder %s75_s1, %s4118_s25  ;;  %p4123_p10 = scmp.lt.s32.totalorder %s75_s1, %s75_s1 }
  0x90   :  { %p4124_p11 = scmp.lt.s32.totalorder %s4122_s4, %s4118_s25 }
  0x92   :  { %p4125_p12 = por %p4124_p11, %p4123_p10 }
  0x94   :  { %p4126_p13 = pnand %p4125_p12, %p4119_p9 }
  0x96   :  { %4129 = shalt.err (!%p4126_p13)
}
  0x97   :  { %77 = dma.hbm_to_vmem [thread:$0]  %s5306_s27, 16, %s75_s1, [#allocation6]  }
  0x98   :  { %s4130_s24 = scalar_lea.hbm %s5275_s11, 32 }
  0x99   :  { %p4131_p0 = scmp.ne.s32.totalorder %s5275_s11, %s4130_s24  ;;  %p4134_p1 = scmp.lt.u32.totalorder %s4130_s24, %s5275_s11 }
  0x9b   :  { %p4136_p2 = pnand %p4134_p1, %p4131_p0 }
  0x9d   :  { %4139 = shalt.err (!%p4136_p2)
}
  0x9e   :  { %s4140_s7 = scalar_lea.vmem %s4555_s15, 32  ;;  %p4145_p4 = scmp.lt.s32.totalorder %s4555_s15, %s4555_s15 }
  0x9f   :  { %p4141_p3 = scmp.ne.s32.totalorder %s4555_s15, %s4140_s7  ;;  %p4146_p5 = scmp.lt.s32.totalorder %s4140_s7, %s4140_s7 }
  0xa1   :  { %p4147_p6 = por %p4146_p5, %p4145_p4 }
  0xa3   :  { %p4148_p7 = pnand %p4147_p6, %p4141_p3 }
  0xa5   :  { %4151 = shalt.err (!%p4148_p7)
}
  0xa6   :  { %105 = dma.hbm_to_vmem [thread:$0]  %s5275_s11, 32, %s4555_s15, [#allocation9], %s4304_s30, %s4304_s30, %s4305_s26  }
  0xa7   :  { %s4312_s9 = smov [#allocation13]   ;;  %s4313_s3 = smov [#allocation16]  }
  0xa8   :  { %s123_s29 = sshll.u32 %s4312_s9, 4  ;;  %s151_s25 = sshll.u32 %s4313_s3, 4  ;;  %s124_s29 = int_to_ptr.vmem [resolvable:$true] %s123_s29  ;;  %s4589_s25 = int_to_ptr.vmem [resolvable:$true] %s151_s25 }
  0xa9   :  { %s4152_s23 = scalar_lea.hbm %s5277_s13, 32 }
  0xaa   :  { %p4153_p8 = scmp.ne.s32.totalorder %s5277_s13, %s4152_s23  ;;  %p4156_p9 = scmp.lt.u32.totalorder %s4152_s23, %s5277_s13 }
  0xac   :  { %p4158_p10 = pnand %p4156_p9, %p4153_p8 }
  0xae   :  { %4161 = shalt.err (!%p4158_p10)
}
  0xaf   :  { %s4162_s11 = scalar_lea.vmem %s124_s29, 32  ;;  %p4167_p12 = scmp.lt.s32.totalorder %s124_s29, %s124_s29 }
  0xb0   :  { %p4163_p11 = scmp.ne.s32.totalorder %s124_s29, %s4162_s11  ;;  %p4168_p13 = scmp.lt.s32.totalorder %s4162_s11, %s4162_s11 }
  0xb2   :  { %p4169_p0 = por %p4168_p13, %p4167_p12 }
  0xb4   :  { %p4170_p1 = pnand %p4169_p0, %p4163_p11 }
  0xb6   :  { %4173 = shalt.err (!%p4170_p1)
}
  0xb7   :  { %129 = dma.hbm_to_vmem [thread:$0]  %s5277_s13, 32, %s124_s29, [#allocation12], %s4304_s30, %s4304_s30, %s4305_s26  }
  0xb8   :  { %s4174_s7 = scalar_lea.hbm %s5281_s17, 32 }
  0xb9   :  { %p4175_p2 = scmp.ne.s32.totalorder %s5281_s17, %s4174_s7  ;;  %p4178_p3 = scmp.lt.u32.totalorder %s4174_s7, %s5281_s17 }
  0xbb   :  { %p4180_p4 = pnand %p4178_p3, %p4175_p2 }
  0xbd   :  { %4183 = shalt.err (!%p4180_p4)
}
  0xbe   :  { %s4184_s4 = scalar_lea.vmem %s4589_s25, 32  ;;  %p4189_p6 = scmp.lt.s32.totalorder %s4589_s25, %s4589_s25 }
  0xbf   :  { %p4185_p5 = scmp.ne.s32.totalorder %s4589_s25, %s4184_s4  ;;  %p4190_p7 = scmp.lt.s32.totalorder %s4184_s4, %s4184_s4 }
  0xc1   :  { %p4191_p8 = por %p4190_p7, %p4189_p6 }
  0xc3   :  { %p4192_p9 = pnand %p4191_p8, %p4185_p5 }
  0xc5   :  { %4195 = shalt.err (!%p4192_p9)
}
  0xc6   :  { %157 = dma.hbm_to_vmem [thread:$0]  %s5281_s17, 32, %s4589_s25, [#allocation15], %s4304_s30, %s4304_s30, %s4305_s26  }
  0xc7   :  { %s4314_s0 = smov [#allocation19]   ;;  %s4315_s18 = smov [#allocation20]  }
  0xc8   :  { %s175_s23 = sshll.u32 %s4314_s0, 4  ;;  %s190_s28 = sshll.u32 %s4315_s18, 4  ;;  %s176_s23 = int_to_ptr.vmem [resolvable:$true] %s175_s23  ;;  %s191_s28 = int_to_ptr.vmem [resolvable:$true] %s190_s28 }
  0xc9   :  { %s4196_s11 = scalar_lea.hbm %s5283_s19, 32 }
  0xca   :  { %p4197_p10 = scmp.ne.s32.totalorder %s5283_s19, %s4196_s11  ;;  %p4200_p11 = scmp.lt.u32.totalorder %s4196_s11, %s5283_s19 }
  0xcc   :  { %p4202_p12 = pnand %p4200_p11, %p4197_p10 }
  0xce   :  { %4205 = shalt.err (!%p4202_p12)
}
  0xcf   :  { %s4206_s17 = scalar_lea.vmem %s176_s23, 32  ;;  %p4211_p0 = scmp.lt.s32.totalorder %s176_s23, %s176_s23 }
  0xd0   :  { %p4207_p13 = scmp.ne.s32.totalorder %s176_s23, %s4206_s17  ;;  %p4212_p1 = scmp.lt.s32.totalorder %s4206_s17, %s4206_s17 }
  0xd2   :  { %p4213_p2 = por %p4212_p1, %p4211_p0 }
  0xd4   :  { %p4214_p3 = pnand %p4213_p2, %p4207_p13 }
  0xd6   :  { %4217 = shalt.err (!%p4214_p3)
}
  0xd7   :  { %181 = dma.hbm_to_vmem [thread:$0]  %s5283_s19, 32, %s176_s23, [#allocation18], %s4304_s30, %s4304_s30, %s4305_s26  }
  0xd8   :  { %s4218_s9 = scalar_lea.hbm %s5285_s21, 16 }
  0xd9   :  { %p4219_p4 = scmp.ne.s32.totalorder %s5285_s21, %s4218_s9  ;;  %p4222_p5 = scmp.lt.u32.totalorder %s4218_s9, %s5285_s21 }
  0xdb   :  { %p4224_p6 = pnand %p4222_p5, %p4219_p4 }
  0xdd   :  { %4227 = shalt.err (!%p4224_p6)
}
  0xde   :  { %s4228_s0 = scalar_lea.vmem %s191_s28, 16  ;;  %s4232_s18 = scalar_lea.vmem %s191_s28, 32 }
  0xdf   :  { %p4229_p7 = scmp.ne.s32.totalorder %s191_s28, %s4228_s0  ;;  %p4233_p8 = scmp.lt.s32.totalorder %s191_s28, %s191_s28 }
  0xe0   :  { %p4234_p9 = scmp.lt.s32.totalorder %s4232_s18, %s4228_s0 }
  0xe2   :  { %p4235_p10 = por %p4234_p9, %p4233_p8 }
  0xe4   :  { %p4236_p11 = pnand %p4235_p10, %p4229_p7 }
  0xe6   :  { %4239 = shalt.err (!%p4236_p11)
}
  0xe7   :  { %193 = dma.hbm_to_vmem [thread:$0]  %s5285_s21, 16, %s191_s28, [#allocation21]  }
  0xe8   :  { %4284 = dma.done.wait [#allocation3], 32  }
  0xe9   :  { %4285 = vsyncadd [#allocation3], 4294967264 }
  0xea   :  { %4286 = dma.done.wait [#allocation6], 32  }
  0xeb   :  { %4287 = vsyncadd [#allocation6], 4294967264 }
  0xec   :  { %4288 = dma.done.wait [#allocation9], 64  }
  0xed   :  { %4289 = vsyncadd [#allocation9], 4294967232 }
  0xee   :  { %4290 = dma.done.wait [#allocation12], 64  }
  0xef   :  { %4291 = vsyncadd [#allocation12], 4294967232 }
  0xf0   :  { %4292 = dma.done.wait [#allocation15], 64  }
  0xf1   :  { %4293 = vsyncadd [#allocation15], 4294967232 }
  0xf2   :  { %4294 = dma.done.wait [#allocation18], 64  }
  0xf3   :  { %4295 = vsyncadd [#allocation18], 4294967232 }
  0xf4   :  { %4296 = dma.done.wait [#allocation21], 16  }
  0xf5   :  { %4297 = vsyncadd [#allocation21], 4294967280  ;;  %v4316_v0 = vmov 0   ;;  %s5307_s21 = sld [smem:[#allocation36_spill]]  ;;  %s5308_s11 = sld [smem:[#allocation35_spill]]  ;;  %v235_v4 = vlaneseq  ;;  %v4317_v6 = vmov 0.0  }
  0xf6   :  { %3828 = vset.pattern.permute.xlu0 %v4316_v0  ;;  %3829 = vset.pattern.permute.xlu1 %v4316_v0  ;;  %s5309_s7 = sld [smem:[#allocation34_spill]]  ;;  %v265_v9 = vld [vmem:[#allocation2] sm:$0x3]  ;;  %vm273_vm1 = vcmask 1041408   ;;  %s5310_s9 = sld [smem:[#allocation37_spill]]  ;;  %v4318_v12 = vmov -10000.0  }
  0xf7   :  { %3509 = vmatprep.subr.bf16.mxu1 %v4317_v6  ;;  %v4669_v8 = vshrl.u32 %v235_v4, 7  ;;  %3493 = vmatprep.subr.msk.mxu0 %vm273_vm1, %v265_v9  ;;  %v236_v17 = vand.u32 127, %v235_v4  ;;  %vm266_vm2 = vcmask 15360   ;;  %vm360_vm5 = vcmask 1045504   ;;  %s5311_s23 = sld [smem:[#allocation38_spill]]  ;;  %v3860_v46 = vld [vmem:[%s5272_s8] sm:$0xff]  }
  0xf8   :  { %3494 = vmatpush3.msk.msra.mxu0 %vm273_vm1, %v265_v9  ;;  %vm353_vm7 = vcmask 244736   ;;  %vm4319_vm8 = vmmov 1   ;;  %vm443_vm11 = vcmask 261120   ;;  %vm4320_vm12 = vmmov 0   ;;  %3510 = vmatpush3.bf16.msra.mxu1 %v3860_v46  ;;  %v3861_v47 = vld [vmem:[%s5272_s8 + $0x8] sm:$0xff]   ;;  %s4322_s15 = smov 88  }
  0xf9   :  { %v1082_v14 = vsub.s32 1, %v4669_v8  ;;  %vm3786_vm9 = vmpackc.low %vm360_vm5, %vm4319_vm8  ;;  %3513 = vmatprep.mubr.msk.bf16.mxu1 %vm4320_vm12, %v4317_v6  ;;  %3511 = vmatprep.subr.bf16.mxu1 %v4317_v6  ;;  %v3287_v56 = vld [vmem:[#allocation5] ss:$0 sm:$0xff]  ;;  %v3288_v60 = vld [vmem:[#allocation7] ss:$0 sm:$0xff]  ;;  %s4323_s5 = smov 120  }
  0xfa   :  { %s4324_s2 = smov 80   ;;  %s4325_s12 = smov 112   ;;  %vm562_vm13 = vcmask 64512   ;;  %vm632_vm14 = vcmask 1043456   ;;  %vm1025_vm15 = vcmask 130048   ;;  %vm1736_vm1 = vcmask 523264  }
  0xfb   :  { %v233_v1 = vld [vmem:[%s5307_s21] sm:$0xff]  ;;  %v234_v3 = vld [vmem:[%s5307_s21 + $0x8] sm:$0xff]  ;;  %s4326_s17 = smov 104   ;;  %s4327_s25 = smov 72  }
  0xfc   :  { %v231_v2 = vld [vmem:[%s5308_s11] sm:$0xff]  ;;  %250 = vperm.xlu0 %3828, %v233_v1   ;;  %v232_v5 = vld [vmem:[%s5308_s11 + $0x8] sm:$0xff]  ;;  %v263_v21 = vld [vmem:[%s5310_s9 + $0x10] sm:$0xff]  ;;  %3512 = vmatpush3.bf16.msra.mxu1 %v3861_v47  ;;  %s4321_s11 = smov 96   ;;  %s4329_s1 = smov 56  }
  0xfd   :  { %238 = vperm.xlu1 %3829, %v231_v2   ;;  %v487_v7 = vld [vmem:[%s5309_s7] sm:$0x3]  ;;  %v262_v11 = vld [vmem:[%s5310_s9 + $0x8] sm:$0xff]  ;;  %v264_v22 = vld [vmem:[%s5310_s9 + $0x18] sm:$0x3f]  ;;  %3517 = vmatprep.subr.bf16.mxu1 %v4317_v6  ;;  %s4328_s7 = smov 64  }
  0xfe   :  { %vm488_vm0 = vcmp.ne.s32.totalorder %v487_v7, 0  ;;  %v261_v10 = vld [vmem:[%s5310_s9] sm:$0xff]  ;;  %v3785_v25 = vpack.c.bf16 %v264_v22, %v263_v21  ;;  %s4330_s27 = smov 48   ;;  %s4331_s9 = smov 40  }
  0xff   :  { %v4677_v13 = vsel %vm488_vm0, 0.0, %v4318_v12  ;;  %v3781_v15 = vpack.c.bf16 %v262_v11, %v261_v10  ;;  %v352_v29 = vld [vmem:[%s5311_s23] sm:$0xff]  ;;  %s4332_s13 = smov 8   ;;  %s4333_s18 = smov 24   ;;  %vm1027_vm0 = vcmask 195584  }
 0x100   :  { %253 = vperm.xlu0 %3828, %v234_v3   ;;  %v4681_v16 = vrot.slane %v4677_v13, %v1082_v14  ;;  %v3289_v1 = vld [vmem:[#allocation8] ss:$0 sm:$0xff] }
 0x101   :  { %241 = vperm.xlu1 %3829, %v232_v5   ;;  %3782 = vmatprep.subr.bf16.mxu0 %v3781_v15 }
 0x17b   :  { %v251_v18 = vpop.permute.xlu0 %250 }
 0x17c   :  { %vm255_vm3 = vcmp.eq.s32.totalorder %v236_v17, %v251_v18  ;;  %v239_v19 = vpop.permute.xlu1 %238 }
 0x17d   :  { %v3279_v20 = vsel %vm255_vm3, 1.0, %v4317_v6  ;;  %vm243_vm4 = vcmp.eq.s32.totalorder %v236_v17, %v239_v19 }
 0x17e   :  { %3495 = vmatprep.mubr.msk.f32.mxu0 %vm266_vm2, %v3279_v20  ;;  %v3277_v24 = vsel %vm243_vm4, 1.0, %v4317_v6 }
 0x17f   :  { %v254_v23 = vpop.permute.xlu0 %253 }
 0x180   :  { %vm256_vm6 = vcmp.eq.s32.totalorder %v236_v17, %v254_v23  ;;  %v242_v27 = vpop.permute.xlu1 %241 }
 0x181   :  { %v3280_v26 = vsel %vm256_vm6, 1.0, %v4317_v6  ;;  %vm244_vm10 = vcmp.eq.s32.totalorder %v236_v17, %v242_v27 }
 0x182   :  { %3496 = vmatmul.mubr.msk.f32.vlgmr.msra.gmra.mrb[0].mxu0 %vm266_vm2, %v3280_v26  ;;  %v3278_v28 = vsel %vm244_vm10, 1.0, %v4317_v6  ;;  %vm3168_vm2 = vcmask 1040384  }
 0x183   :  { %3784 = vmatpush3.bf16.msra.mxu0 %v3781_v15  ;;  %3506 = vmatprep.mubr.msk.f32.mxu0 %vm353_vm7, %v3277_v24  ;;  %v612_v15 = vsub.s32 0, %v4669_v8 }
 0x184   :  { %3787 = vmatprep.subr.msk.bf16.mxu0 %vm3786_vm9, %v3785_v25 }
 0x185   :  { %v4754_v17 = vrot.slane %v4677_v13, %v612_v15 }
 0x187   :  { %3790 = vmatpush3.bf16.msk.msra.mxu0 %vm3786_vm9, %v3785_v25 }
 0x188   :  { %3523 = vmatprep.subr.bf16.mxu0 %v4317_v6 }
 0x18a   :  { %3507 = vmatmul.mubr.msk.f32.vlgmr.msra.gmra.mrb[0].mxu0 %vm353_vm7, %v3278_v28 }
 0x18b   :  { %3525 = vmatprep.mubr.msk.bf16.mxu0 %vm4320_vm12, %v4317_v6 }
 0x25d   :  { %v3508_v30 = vpop.f32.mrb[0].mxu0 }
 0x25e   :  { %v440_v31 = vadd.f32 %v3508_v30, %v352_v29  ;;  %v430_v32 = vpop.f32.mrb[1].mxu0 }
 0x25f   :  { %v439_v33 = vadd.f32 %v430_v32, %v352_v29 }
 0x260   :  { %v447_v34 = vsel %vm443_vm11, %v440_v31, 0.0 }
 0x261   :  { %448 = vadd.xlane.f32.xlu1 %v447_v34  ;;  %v444_v35 = vsel %vm443_vm11, %v439_v33, 0.0 }
 0x262   :  { %445 = vadd.xlane.f32.xlu0 %v444_v35 }
 0x2ee   :  { %v449_v36 = vpop.xlane.xlu1 %448 }
 0x2ef   :  { %v452_v37 = vmul.f32 0.03125, %v449_v36  ;;  %v446_v38 = vpop.xlane.xlu0 %445 }
 0x2f0   :  { %v451_v39 = vmul.f32 0.03125, %v446_v38 }
 0x2f1   :  { %v454_v40 = vsub.f32 %v440_v31, %v452_v37 }
 0x2f2   :  { %v453_v41 = vsub.f32 %v439_v33, %v451_v39 }
 0x2f3   :  { %v456_v44 = vmul.f32 %v454_v40, %v454_v40 }
 0x2f4   :  { %v455_v42 = vmul.f32 %v453_v41, %v453_v41 }
 0x2f5   :  { %v460_v45 = vsel %vm443_vm11, %v456_v44, 0.0 }
 0x2f6   :  { %v457_v43 = vsel %vm443_vm11, %v455_v42, 0.0 }
 0x2f7   :  { %458 = vadd.xlane.f32.xlu0 %v457_v43 }
 0x2fb   :  { %461 = vadd.xlane.f32.xlu0 %v460_v45 }
 0x384   :  { %v459_v48 = vpop.xlane.xlu0 %458 }
 0x385   :  { %v463_v49 = vmul.f32 0.03125, %v459_v48 }
 0x387   :  { %v465_v50 = vadd.f32 1e-12, %v463_v49 }
 0x388   :  { %v462_v51 = vpop.xlane.xlu0 %461 }
 0x389   :  { %3882 = vrsqrt.f32 %v465_v50  ;;  %v464_v52 = vmul.f32 0.03125, %v462_v51 }
 0x38b   :  { %v466_v53 = vadd.f32 1e-12, %v464_v52 }
 0x38d   :  { %3884 = vrsqrt.f32 %v466_v53 }
 0x393   :  { %v3883_v54 = vpop.eup %3882 }
 0x394   :  { %v469_v55 = vmul.f32 %v3883_v54, %v453_v41 }
 0x396   :  { %v477_v59 = vmul.f32 %v3287_v56, %v469_v55 }
 0x397   :  { %v3885_v57 = vpop.eup %3884 }
 0x398   :  { %v470_v58 = vmul.f32 %v3885_v57, %v454_v40  ;;  %v4715_v62 = vadd.f32 %v3288_v60, %v477_v59 }
 0x39a   :  { %v478_v61 = vmul.f32 %v3287_v56, %v470_v58 }
 0x39c   :  { %v4717_v63 = vadd.f32 %v3288_v60, %v478_v61 }
 0x39e   :  { %v490_v0 = vpack.c.bf16 %v4717_v63, %v4715_v62 }
 0x3a0   :  { %3514 = vmatmul.mubr.msk.bf16.vlgmr.msra.gmra.mrb[0].mxu1 %vm443_vm11, %v490_v0 }
 0x3a1   :  { %3519 = vmatprep.mubr.msk.bf16.mxu1 %vm4320_vm12, %v4317_v6 }
 0x473   :  { %v551_v2 = vpop.f32.mrb[0].mxu1 }
 0x474   :  { %v552_v3 = vadd.f32 %v3289_v1, %v551_v2  ;;  %v3515_v4 = vpop.f32.mrb[1].mxu1 }
 0x475   :  { %v554_v5 = vpop.f32.mrb[2].mxu1 }
 0x476   :  { %v4724_v7 = vpack.c.bf16 %v552_v3, %v552_v3  ;;  %v3516_v9 = vpop.f32.mrb[3].mxu1  ;;  %v555_v10 = vadd.f32 %v3289_v1, %v554_v5 }
 0x478   :  { %560 = vrot.lane.b32.xlu1 %v4724_v7, %s4321_s11  ;;  %v4738_v11 = vpack.c.bf16 %v555_v10, %v555_v10 }
 0x47c   :  { %678 = vrot.lane.b32.xlu1 %v4724_v7, %s4322_s15 }
 0x480   :  { %676 = vrot.lane.b32.xlu1 %v4724_v7, %s4323_s5 }
 0x484   :  { %790 = vrot.lane.b32.xlu1 %v4724_v7, %s4324_s2 }
 0x488   :  { %788 = vrot.lane.b32.xlu1 %v4724_v7, %s4325_s12 }
 0x48c   :  { %900 = vrot.lane.b32.xlu1 %v4724_v7, %s4326_s17 }
 0x490   :  { %1147 = vrot.lane.b32.xlu1 %v4738_v11, %s4322_s15 }
 0x494   :  { %1259 = vrot.lane.b32.xlu1 %v4738_v11, %s4324_s2 }
 0x498   :  { %1371 = vrot.lane.b32.xlu1 %v4738_v11, %s4327_s25 }
 0x4ea   :  { %v561_v12 = vpop.permute.xlu1 %560 }
 0x4eb   :  { %v567_v14 = vsel %vm562_vm13, %v561_v12, 0 }
 0x4ec   :  { %3518 = vmatpush3.bf16.xpose.msra.mxu1 %v567_v14 }
 0x4ed   :  { %3535 = vmatprep.subr.bf16.mxu1 %v4317_v6 }
 0x4ee   :  { %v679_v31 = vpop.permute.xlu1 %678 }
 0x4ef   :  { %v684_v36 = vsel %vm562_vm13, %v679_v31, 0 }
 0x4f2   :  { %v677_v35 = vpop.permute.xlu1 %676 }
 0x4f3   :  { %3520 = vmatmul.mubr.msk.bf16.vlgmr.msra.gmra.mrb[4].mxu1 %vm562_vm13, %v4724_v7 }
 0x4f4   :  { %3537 = vmatprep.mubr.msk.bf16.mxu1 %vm4320_vm12, %v4317_v6 }
 0x4f6   :  { %v791_v37 = vpop.permute.xlu1 %790 }
 0x4f7   :  { %v796_v38 = vsel %vm562_vm13, %v791_v37, 0 }
 0x4fa   :  { %v789_v40 = vpop.permute.xlu1 %788 }
 0x4fe   :  { %v901_v43 = vpop.permute.xlu1 %900 }
 0x502   :  { %v1148_v45 = vpop.permute.xlu1 %1147 }
 0x503   :  { %v1153_v46 = vsel %vm562_vm13, %v1148_v45, 0 }
 0x506   :  { %v1260_v47 = vpop.permute.xlu1 %1259 }
 0x507   :  { %v1265_v49 = vsel %vm562_vm13, %v1260_v47, 0 }
 0x50a   :  { %v1372_v50 = vpop.permute.xlu1 %1371 }
 0x50b   :  { %v1377_v52 = vsel %vm562_vm13, %v1372_v50, 0 }
 0x5c6   :  { %v603_v18 = vpop.f32.mrb[4].mxu1 }
 0x5c7   :  { %v609_v19 = vmul.f32 0.35355338, %v603_v18  ;;  %v3521_v20 = vpop.f32.mrb[5].mxu1 }
 0x5c8   :  { %v606_v21 = vpop.f32.mrb[6].mxu1 }
 0x5c9   :  { %v3522_v22 = vpop.f32.mrb[7].mxu1  ;;  %v614_v23 = vadd.f32 %v4754_v17, %v609_v19 }
 0x5cb   :  { %v615_v24 = vsel %vm562_vm13, %v614_v23, -inf }
 0x5cc   :  { %616 = vmax.xlane.f32.xlu0 %v615_v24 }
 0x659   :  { %v617_v25 = vpop.xlane.xlu0 %616 }
 0x65a   :  { %v618_v26 = vsub.f32 %v614_v23, %v617_v25 }
 0x65c   :  { %v619_v27 = vmul.f32 1.442695, %v618_v26 }
 0x65e   :  { %3886 = vpow2.f32 %v619_v27 }
 0x668   :  { %v3887_v28 = vpop.eup %3886 }
 0x669   :  { %v621_v8 = vsel %vm562_vm13, %v3887_v28, 0.0 }
 0x66a   :  { %622 = vadd.xlane.f32.xlu0 %v621_v8 }
 0x680   :  { %627 = vrot.lane.b32.xlu0 %v4724_v7, %s4328_s7 }
 0x684   :  { %902 = vrot.lane.b32.xlu0 %v4724_v7, %s4327_s25 }
 0x688   :  { %1031 = vrot.lane.b32.xlu0 %v4738_v11, %s4321_s11 }
 0x68c   :  { %1145 = vrot.lane.b32.xlu0 %v4738_v11, %s4323_s5 }
 0x690   :  { %1257 = vrot.lane.b32.xlu0 %v4738_v11, %s4325_s12 }
 0x694   :  { %1369 = vrot.lane.b32.xlu0 %v4738_v11, %s4326_s17 }
 0x6f7   :  { %v623_v13 = vpop.xlane.xlu0 %622 }
 0x6f8   :  { %3888 = vrcp.f32 %v623_v13 }
 0x6fb   :  { %v628_v29 = vpop.permute.xlu0 %627 }
 0x6fc   :  { %v634_v30 = vsel %vm632_vm14, %v628_v29, 0 }
 0x6fd   :  { %3524 = vmatpush3.bf16.msra.mxu0 %v634_v30 }
 0x6fe   :  { %3529 = vmatprep.subr.bf16.mxu0 %v4317_v6 }
 0x6ff   :  { %v903_v39 = vpop.permute.xlu0 %902 }
 0x700   :  { %v908_v41 = vsel %vm562_vm13, %v903_v39, 0 }
 0x702   :  { %v3889_v32 = vpop.eup %3888 }
 0x703   :  { %v625_v33 = vmul.f32 %v3889_v32, %v3887_v28  ;;  %v1032_v42 = vpop.permute.xlu0 %1031 }
 0x704   :  { %v1037_v44 = vsel %vm562_vm13, %v1032_v42, 0 }
 0x705   :  { %v626_v34 = vpack.c.bf16 %v625_v33, %v625_v33 }
 0x707   :  { %3526 = vmatmul.mubr.msk.bf16.vlgmr.msra.gmra.mrb[4].mxu0 %vm562_vm13, %v626_v34  ;;  %v1146_v48 = vpop.permute.xlu0 %1145 }
 0x708   :  { %3530 = vmatpush3.bf16.xpose.msra.mxu0 %v684_v36  ;;  %3531 = vmatprep.mubr.msk.bf16.mxu0 %vm4320_vm12, %v4317_v6 }
 0x709   :  { %3541 = vmatprep.subr.bf16.mxu0 %v4317_v6 }
 0x70b   :  { %v1258_v51 = vpop.permute.xlu0 %1257 }
 0x70f   :  { %3532 = vmatmul.mubr.msk.bf16.vlgmr.msra.gmra.mrb[8].mxu0 %vm562_vm13, %v677_v35  ;;  %v1370_v53 = vpop.permute.xlu0 %1369 }
 0x710   :  { %3542 = vmatpush3.bf16.xpose.msra.mxu0 %v796_v38  ;;  %3543 = vmatprep.mubr.msk.bf16.mxu0 %vm4320_vm12, %v4317_v6 }
 0x711   :  { %3553 = vmatprep.subr.bf16.mxu0 %v4317_v6 }
 0x717   :  { %3544 = vmatmul.mubr.msk.bf16.vlgmr.msra.gmra.mrb[12].mxu0 %vm562_vm13, %v789_v40 }
 0x718   :  { %3554 = vmatpush3.bf16.xpose.msra.mxu0 %v908_v41  ;;  %3555 = vmatprep.mubr.msk.bf16.mxu0 %vm4320_vm12, %v4317_v6 }
 0x719   :  { %3565 = vmatprep.subr.bf16.mxu0 %v4317_v6 }
 0x71f   :  { %3556 = vmatmul.mubr.msk.bf16.vlgmr.msra.gmra.mrb[16].mxu0 %vm562_vm13, %v901_v43 }
 0x720   :  { %3566 = vmatpush3.bf16.xpose.msra.mxu0 %v1037_v44  ;;  %3567 = vmatprep.mubr.msk.bf16.mxu0 %vm4320_vm12, %v4317_v6 }
 0x721   :  { %3577 = vmatprep.subr.bf16.mxu0 %v4317_v6 }
 0x727   :  { %3568 = vmatmul.mubr.msk.bf16.vlgmr.msra.gmra.mrb[20].mxu0 %vm562_vm13, %v4738_v11 }
 0x728   :  { %3578 = vmatpush3.bf16.xpose.msra.mxu0 %v1153_v46  ;;  %3579 = vmatprep.mubr.msk.bf16.mxu0 %vm4320_vm12, %v4317_v6 }
 0x729   :  { %3589 = vmatprep.subr.bf16.mxu0 %v4317_v6 }
 0x72f   :  { %3580 = vmatmul.mubr.msk.bf16.vlgmr.msra.gmra.mrb[24].mxu0 %vm562_vm13, %v1146_v48 }
 0x730   :  { %3590 = vmatpush3.bf16.xpose.msra.mxu0 %v1265_v49  ;;  %3591 = vmatprep.mubr.msk.bf16.mxu0 %vm4320_vm12, %v4317_v6 }
 0x731   :  { %3601 = vmatprep.subr.bf16.mxu0 %v4317_v6 }
 0x737   :  { %3592 = vmatmul.mubr.msk.bf16.vlgmr.msra.gmra.mrb[28].mxu0 %vm562_vm13, %v1258_v51 }
 0x738   :  { %3602 = vmatpush3.bf16.xpose.msra.mxu0 %v1377_v52  ;;  %3603 = vmatprep.mubr.msk.bf16.mxu0 %vm4320_vm12, %v4317_v6 }
 0x739   :  { %3613 = vmatprep.subr.bf16.mxu0 %v4317_v6 }
 0x73f   :  { %3604 = vmatmul.mubr.msk.bf16.vlgmr.msra.gmra.mrb[32].mxu0 %vm562_vm13, %v1370_v53 }
 0x740   :  { %3617 = vmatprep.mubr.msk.bf16.mxu0 %vm4320_vm12, %v4317_v6 }
 0x7da   :  { %v4812_v54 = vpop.f32.mrb[4].mxu0 }
 0x7db   :  { %v3527_v55 = vpop.f32.mrb[5].mxu0 }
 0x7dc   :  { %v673_v56 = vpop.f32.mrb[6].mxu0 }
 0x7dd   :  { %v3528_v57 = vpop.f32.mrb[7].mxu0 }
 0x7e2   :  { %v720_v58 = vpop.f32.mrb[8].mxu0 }
 0x7e3   :  { %v726_v59 = vmul.f32 0.35355338, %v720_v58  ;;  %v3533_v60 = vpop.f32.mrb[9].mxu0 }
 0x7e4   :  { %v723_v61 = vpop.f32.mrb[10].mxu0 }
 0x7e5   :  { %v3534_v0 = vpop.f32.mrb[11].mxu0  ;;  %v727_v1 = vadd.f32 %v726_v59, %v4754_v17 }
 0x7e7   :  { %v728_v2 = vsel %vm562_vm13, %v727_v1, -inf }
 0x7e8   :  { %729 = vmax.xlane.f32.xlu1 %v728_v2 }
 0x7ea   :  { %v832_v3 = vpop.f32.mrb[12].mxu0 }
 0x7eb   :  { %v838_v4 = vmul.f32 0.35355338, %v832_v3  ;;  %v3545_v5 = vpop.f32.mrb[13].mxu0 }
 0x7ec   :  { %v835_v9 = vpop.f32.mrb[14].mxu0 }
 0x7ed   :  { %v3546_v10 = vpop.f32.mrb[15].mxu0  ;;  %v839_v12 = vadd.f32 %v838_v4, %v4754_v17 }
 0x7ef   :  { %v840_v14 = vsel %vm562_vm13, %v839_v12, -inf }
 0x7f0   :  { %841 = vmax.xlane.f32.xlu0 %v840_v14 }
 0x7f2   :  { %v944_v15 = vpop.f32.mrb[16].mxu0 }
 0x7f3   :  { %v950_v18 = vmul.f32 0.35355338, %v944_v15  ;;  %v3557_v19 = vpop.f32.mrb[17].mxu0 }
 0x7f4   :  { %v947_v20 = vpop.f32.mrb[18].mxu0 }
 0x7f5   :  { %v3558_v21 = vpop.f32.mrb[19].mxu0  ;;  %v951_v22 = vadd.f32 %v950_v18, %v4754_v17 }
 0x7f7   :  { %v952_v23 = vsel %vm562_vm13, %v951_v22, -inf }
 0x7f8   :  { %953 = vmax.xlane.f32.xlu0 %v952_v23 }
 0x7fa   :  { %v1073_v24 = vpop.f32.mrb[20].mxu0 }
 0x7fb   :  { %v1079_v25 = vmul.f32 0.35355338, %v1073_v24  ;;  %v3569_v26 = vpop.f32.mrb[21].mxu0 }
 0x7fc   :  { %v1076_v27 = vpop.f32.mrb[22].mxu0 }
 0x7fd   :  { %v3570_v28 = vpop.f32.mrb[23].mxu0  ;;  %v4821_v8 = vadd.f32 %v4681_v16, %v1079_v25 }
 0x7ff   :  { %v1085_v13 = vsel %vm562_vm13, %v4821_v8, -inf }
 0x800   :  { %1086 = vmax.xlane.f32.xlu1 %v1085_v13 }
 0x802   :  { %v1189_v29 = vpop.f32.mrb[24].mxu0 }
 0x803   :  { %v1195_v30 = vmul.f32 0.35355338, %v1189_v29  ;;  %v3581_v31 = vpop.f32.mrb[25].mxu0 }
 0x804   :  { %v1192_v32 = vpop.f32.mrb[26].mxu0 }
 0x805   :  { %v3582_v33 = vpop.f32.mrb[27].mxu0  ;;  %v1196_v34 = vadd.f32 %v1195_v30, %v4681_v16 }
 0x807   :  { %v1197_v35 = vsel %vm562_vm13, %v1196_v34, -inf }
 0x808   :  { %1198 = vmax.xlane.f32.xlu0 %v1197_v35 }
 0x80a   :  { %v1301_v36 = vpop.f32.mrb[28].mxu0 }
 0x80b   :  { %v1307_v37 = vmul.f32 0.35355338, %v1301_v36  ;;  %v3593_v38 = vpop.f32.mrb[29].mxu0 }
 0x80c   :  { %v1304_v39 = vpop.f32.mrb[30].mxu0 }
 0x80d   :  { %v3594_v40 = vpop.f32.mrb[31].mxu0  ;;  %v1308_v41 = vadd.f32 %v1307_v37, %v4681_v16 }
 0x80f   :  { %v1309_v42 = vsel %vm562_vm13, %v1308_v41, -inf }
 0x810   :  { %1310 = vmax.xlane.f32.xlu1 %v1309_v42 }
 0x812   :  { %v1413_v43 = vpop.f32.mrb[32].mxu0 }
 0x813   :  { %v1419_v44 = vmul.f32 0.35355338, %v1413_v43  ;;  %v3605_v45 = vpop.f32.mrb[33].mxu0 }
 0x814   :  { %v1416_v46 = vpop.f32.mrb[34].mxu0 }
 0x815   :  { %v3606_v47 = vpop.f32.mrb[35].mxu0  ;;  %v1420_v48 = vadd.f32 %v1419_v44, %v4681_v16 }
 0x817   :  { %v1421_v49 = vsel %vm562_vm13, %v1420_v48, -inf }
 0x818   :  { %1422 = vmax.xlane.f32.xlu0 %v1421_v49 }
 0x821   :  { %740 = vrot.lane.b32.xlu1 %v4724_v7, %s4329_s1 }
 0x82e   :  { %852 = vrot.lane.b32.xlu0 %v4724_v7, %s4330_s27 }
 0x875   :  { %v730_v50 = vpop.xlane.xlu1 %729 }
 0x876   :  { %v731_v51 = vsub.f32 %v727_v1, %v730_v50 }
 0x878   :  { %v732_v52 = vmul.f32 1.442695, %v731_v51 }
 0x87a   :  { %3890 = vpow2.f32 %v732_v52 }
 0x87d   :  { %v842_v53 = vpop.xlane.xlu0 %841 }
 0x87e   :  { %v843_v55 = vsub.f32 %v839_v12, %v842_v53 }
 0x880   :  { %v844_v56 = vmul.f32 1.442695, %v843_v55 }
 0x882   :  { %3892 = vpow2.f32 %v844_v56 }
 0x884   :  { %v3891_v57 = vpop.eup %3890 }
 0x885   :  { %v954_v58 = vpop.xlane.xlu0 %953  ;;  %v734_v59 = vsel %vm562_vm13, %v3891_v57, 0.0 }
 0x886   :  { %v955_v60 = vsub.f32 %v951_v22, %v954_v58  ;;  %735 = vadd.xlane.f32.xlu1 %v734_v59 }
 0x888   :  { %v956_v61 = vmul.f32 1.442695, %v955_v60 }
 0x88a   :  { %3894 = vpow2.f32 %v956_v61 }
 0x88c   :  { %v3893_v0 = vpop.eup %3892 }
 0x88d   :  { %v846_v2 = vsel %vm562_vm13, %v3893_v0, 0.0  ;;  %v1087_v4 = vpop.xlane.xlu1 %1086 }
 0x88e   :  { %847 = vadd.xlane.f32.xlu0 %v846_v2  ;;  %v1088_v12 = vsub.f32 %v4821_v8, %v1087_v4 }
 0x890   :  { %v1089_v15 = vmul.f32 1.442695, %v1088_v12 }
 0x892   :  { %3896 = vpow2.f32 %v1089_v15 }
 0x894   :  { %v4837_v3 = vpop.eup %3894 }
 0x895   :  { %v958_v1 = vsel %vm562_vm13, %v4837_v3, 0.0  ;;  %v1199_v14 = vpop.xlane.xlu0 %1198 }
 0x896   :  { %959 = vadd.xlane.f32.xlu1 %v958_v1  ;;  %v1200_v18 = vsub.f32 %v1196_v34, %v1199_v14 }
 0x898   :  { %v1201_v21 = vmul.f32 1.442695, %v1200_v18 }
 0x89a   :  { %3898 = vpow2.f32 %v1201_v21 }
 0x89d   :  { %v1311_v5 = vpop.xlane.xlu1 %1310 }
 0x89e   :  { %v1312_v20 = vsub.f32 %v1308_v41, %v1311_v5 }
 0x8a0   :  { %v1313_v23 = vmul.f32 1.442695, %v1312_v20 }
 0x8a1   :  { %v741_v9 = vpop.permute.xlu1 %740 }
 0x8a2   :  { %v746_v10 = vsel %vm632_vm14, %v741_v9, 0  ;;  %3900 = vpow2.f32 %v1313_v23 }
 0x8a3   :  { %3536 = vmatpush3.bf16.msra.mxu1 %v746_v10 }
 0x8a4   :  { %964 = vrot.lane.b32.xlu0 %v4724_v7, %s4331_s9  ;;  %3547 = vmatprep.subr.bf16.mxu1 %v4317_v6  ;;  %v3897_v7 = vpop.eup %3896 }
 0x8a5   :  { %v1423_v19 = vpop.xlane.xlu0 %1422  ;;  %v1091_v25 = vsel %vm562_vm13, %v3897_v7, 0.0  ;;  %v3899_v26 = vpop.eup %3898 }
 0x8a6   :  { %v1424_v22 = vsub.f32 %v1420_v48, %v1423_v19  ;;  %v1203_v28 = vsel %vm562_vm13, %v3899_v26, 0.0 }
 0x8a7   :  { %1097 = vrot.lane.b32.xlu1 %v4738_v11, %s4328_s7 }
 0x8a8   :  { %v1425_v24 = vmul.f32 1.442695, %v1424_v22 }
 0x8a9   :  { %v853_v31 = vpop.permute.xlu0 %852 }
 0x8aa   :  { %3902 = vpow2.f32 %v1425_v24  ;;  %v858_v36 = vsel %vm632_vm14, %v853_v31, 0 }
 0x8ac   :  { %v4849_v27 = vpop.eup %3900 }
 0x8ad   :  { %v1315_v13 = vsel %vm562_vm13, %v4849_v27, 0.0 }
 0x8b4   :  { %v4852_v8 = vpop.eup %3902 }
 0x8b5   :  { %v1427_v29 = vsel %vm562_vm13, %v4852_v8, 0.0 }
 0x8c3   :  { %1092 = vadd.xlane.f32.xlu0 %v1091_v25 }
 0x8c7   :  { %1204 = vadd.xlane.f32.xlu0 %v1203_v28 }
 0x8cb   :  { %1316 = vadd.xlane.f32.xlu1 %v1315_v13  ;;  %1428 = vadd.xlane.f32.xlu0 %v1427_v29  ;;  %v3862_v29 = vld [vmem:[%s5274_s10] sm:$0xff]  }
 0x8cc   :  { %3614 = vmatpush3.bf16.msra.mxu0 %v3862_v29 }
 0x8cd   :  { %3615 = vmatprep.subr.bf16.mxu0 %v4317_v6 }
 0x8dc   :  { %1321 = vrot.lane.b32.xlu1 %v4738_v11, %s4330_s27 }
 0x8e0   :  { %1433 = vrot.lane.b32.xlu1 %v4738_v11, %s4331_s9 }
 0x8e1   :  { %1209 = vrot.lane.b32.xlu0 %v4738_v11, %s4329_s1 }
 0x913   :  { %v736_v30 = vpop.xlane.xlu1 %735 }
 0x914   :  { %3904 = vrcp.f32 %v736_v30 }
 0x91b   :  { %v848_v32 = vpop.xlane.xlu0 %847 }
 0x91c   :  { %3906 = vrcp.f32 %v848_v32 }
 0x91e   :  { %v3905_v33 = vpop.eup %3904 }
 0x91f   :  { %v738_v34 = vmul.f32 %v3905_v33, %v3891_v57  ;;  %v965_v39 = vpop.permute.xlu0 %964 }
 0x920   :  { %v970_v41 = vsel %vm632_vm14, %v965_v39, 0 }
 0x921   :  { %v739_v35 = vpack.c.bf16 %v738_v34, %v738_v34  ;;  %v3863_v34 = vld [vmem:[%s5274_s10 + $0x8] sm:$0xff]  }
 0x922   :  { %3616 = vmatpush3.bf16.msra.mxu0 %v3863_v34 }
 0x923   :  { %3538 = vmatmul.mubr.msk.bf16.vlgmr.msra.gmra.mrb[8].mxu1 %vm562_vm13, %v739_v35  ;;  %v960_v37 = vpop.xlane.xlu1 %959  ;;  %3629 = vmatprep.subr.bf16.mxu0 %v4317_v6 }
 0x924   :  { %3908 = vrcp.f32 %v960_v37  ;;  %3548 = vmatpush3.bf16.msra.mxu1 %v858_v36  ;;  %3549 = vmatprep.mubr.msk.bf16.mxu1 %vm4320_vm12, %v4317_v6 }
 0x925   :  { %3559 = vmatprep.subr.bf16.mxu1 %v4317_v6 }
 0x926   :  { %v3907_v11 = vpop.eup %3906 }
 0x927   :  { %v850_v38 = vmul.f32 %v3907_v11, %v3893_v0  ;;  %v1098_v44 = vpop.permute.xlu1 %1097 }
 0x928   :  { %v1103_v46 = vsel %vm632_vm14, %v1098_v44, 0 }
 0x929   :  { %v851_v40 = vpack.c.bf16 %v850_v38, %v850_v38 }
 0x92b   :  { %3550 = vmatmul.mubr.msk.bf16.vlgmr.msra.gmra.mrb[12].mxu1 %vm562_vm13, %v851_v40 }
 0x92c   :  { %3560 = vmatpush3.bf16.msra.mxu1 %v970_v41  ;;  %3561 = vmatprep.mubr.msk.bf16.mxu1 %vm4320_vm12, %v4317_v6 }
 0x92d   :  { %3571 = vmatprep.subr.bf16.mxu1 %v4317_v6 }
 0x92e   :  { %v3909_v42 = vpop.eup %3908 }
 0x92f   :  { %v962_v43 = vmul.f32 %v3909_v42, %v4837_v3 }
 0x931   :  { %v963_v45 = vpack.c.bf16 %v962_v43, %v962_v43 }
 0x933   :  { %3562 = vmatmul.mubr.msk.bf16.vlgmr.msra.gmra.mrb[16].mxu1 %vm562_vm13, %v963_v45 }
 0x934   :  { %3572 = vmatpush3.bf16.msra.mxu1 %v1103_v46  ;;  %3573 = vmatprep.mubr.msk.bf16.mxu1 %vm4320_vm12, %v4317_v6 }
 0x935   :  { %3583 = vmatprep.subr.bf16.mxu1 %v4317_v6 }
 0x950   :  { %v1093_v47 = vpop.xlane.xlu0 %1092 }
 0x951   :  { %3910 = vrcp.f32 %v1093_v47 }
 0x954   :  { %v1205_v48 = vpop.xlane.xlu0 %1204 }
 0x955   :  { %3912 = vrcp.f32 %v1205_v48 }
 0x958   :  { %v1429_v49 = vpop.xlane.xlu0 %1428  ;;  %v1317_v50 = vpop.xlane.xlu1 %1316 }
 0x959   :  { %3914 = vrcp.f32 %v1317_v50 }
 0x95a   :  { %3916 = vrcp.f32 %v1429_v49 }
 0x95b   :  { %v3911_v51 = vpop.eup %3910 }
 0x95c   :  { %v1095_v52 = vmul.f32 %v3911_v51, %v3897_v7  ;;  %v1210_v53 = vpop.permute.xlu0 %1209  ;;  %v1322_v59 = vpop.permute.xlu1 %1321 }
 0x95d   :  { %v1215_v57 = vsel %vm632_vm14, %v1210_v53, 0  ;;  %v1327_v0 = vsel %vm632_vm14, %v1322_v59, 0 }
 0x95e   :  { %v1096_v55 = vpack.c.bf16 %v1095_v52, %v1095_v52 }
 0x95f   :  { %v3913_v56 = vpop.eup %3912 }
 0x960   :  { %3574 = vmatmul.mubr.msk.bf16.vlgmr.msra.gmra.mrb[20].mxu1 %vm562_vm13, %v1096_v55  ;;  %v1207_v58 = vmul.f32 %v3913_v56, %v3899_v26  ;;  %v1434_v3 = vpop.permute.xlu1 %1433 }
 0x961   :  { %3584 = vmatpush3.bf16.msra.mxu1 %v1215_v57  ;;  %3585 = vmatprep.mubr.msk.bf16.mxu1 %vm4320_vm12, %v4317_v6  ;;  %v1439_v5 = vsel %vm632_vm14, %v1434_v3, 0 }
 0x962   :  { %3595 = vmatprep.subr.bf16.mxu1 %v4317_v6  ;;  %v1208_v60 = vpack.c.bf16 %v1207_v58, %v1207_v58 }
 0x963   :  { %v3915_v61 = vpop.eup %3914 }
 0x964   :  { %v1319_v2 = vmul.f32 %v3915_v61, %v4849_v27  ;;  %v3917_v4 = vpop.eup %3916  ;;  %v3309_v61 = vld [vmem:[#allocation10] ss:$0 sm:$0xff] }
 0x965   :  { %v1431_v9 = vmul.f32 %v3917_v4, %v4852_v8 }
 0x966   :  { %v1320_v1 = vpack.c.bf16 %v1319_v2, %v1319_v2 }
 0x967   :  { %v1432_v10 = vpack.c.bf16 %v1431_v9, %v1431_v9 }
 0x968   :  { %3586 = vmatmul.mubr.msk.bf16.vlgmr.msra.gmra.mrb[24].mxu1 %vm562_vm13, %v1208_v60 }
 0x969   :  { %3596 = vmatpush3.bf16.msra.mxu1 %v1327_v0  ;;  %3597 = vmatprep.mubr.msk.bf16.mxu1 %vm4320_vm12, %v4317_v6 }
 0x96a   :  { %3607 = vmatprep.subr.bf16.mxu1 %v4317_v6 }
 0x970   :  { %3598 = vmatmul.mubr.msk.bf16.vlgmr.msra.gmra.mrb[28].mxu1 %vm562_vm13, %v1320_v1 }
 0x971   :  { %3608 = vmatpush3.bf16.msra.mxu1 %v1439_v5  ;;  %3609 = vmatprep.mubr.msk.bf16.mxu1 %vm4320_vm12, %v4317_v6 }
 0x972   :  { %3621 = vmatprep.subr.bf16.mxu1 %v4317_v6 }
 0x978   :  { %3610 = vmatmul.mubr.msk.bf16.vlgmr.msra.gmra.mrb[32].mxu1 %vm562_vm13, %v1432_v10 }
 0x979   :  { %3625 = vmatprep.mubr.msk.bf16.mxu1 %vm4320_vm12, %v4317_v6 }
 0x9f6   :  { %v782_v12 = vpop.f32.mrb[8].mxu1 }
 0x9f7   :  { %v3539_v14 = vpop.f32.mrb[9].mxu1 }
 0x9f8   :  { %v785_v15 = vpop.f32.mrb[10].mxu1 }
 0x9f9   :  { %v3540_v18 = vpop.f32.mrb[11].mxu1 }
 0x9fe   :  { %v894_v19 = vpop.f32.mrb[12].mxu1 }
 0x9ff   :  { %v3551_v20 = vpop.f32.mrb[13].mxu1 }
 0xa00   :  { %v897_v21 = vpop.f32.mrb[14].mxu1 }
 0xa01   :  { %v3552_v22 = vpop.f32.mrb[15].mxu1 }
 0xa06   :  { %v1006_v23 = vpop.f32.mrb[16].mxu1 }
 0xa07   :  { %v3563_v24 = vpop.f32.mrb[17].mxu1 }
 0xa08   :  { %v1009_v7 = vpop.f32.mrb[18].mxu1 }
 0xa09   :  { %v3564_v25 = vpop.f32.mrb[19].mxu1  ;;  %v3865_v7 = vld [vmem:[%s5278_s14 + $0x8] sm:$0xff]  }
 0xa33   :  { %v1139_v26 = vpop.f32.mrb[20].mxu1 }
 0xa34   :  { %v3575_v27 = vpop.f32.mrb[21].mxu1 }
 0xa35   :  { %v1142_v28 = vpop.f32.mrb[22].mxu1 }
 0xa36   :  { %v3576_v8 = vpop.f32.mrb[23].mxu1 }
 0xa3b   :  { %v1251_v13 = vpop.f32.mrb[24].mxu1 }
 0xa3c   :  { %v3830_v30 = vpack.i.bf16 %v1251_v13, %v782_v12  ;;  %v3587_v31 = vpop.f32.mrb[25].mxu1 }
 0xa3d   :  { %v1254_v32 = vpop.f32.mrb[26].mxu1 }
 0xa3e   :  { %3831 = vrot.lane.b32.xlu1 %v3830_v30, %s4332_s13  ;;  %v3588_v33 = vpop.f32.mrb[27].mxu1  ;;  %v3313_v30 = vld [vmem:[#allocation11] ss:$0 sm:$0xff] }
 0xa43   :  { %v1363_v35 = vpop.f32.mrb[28].mxu1 }
 0xa44   :  { %v3835_v36 = vpack.i.bf16 %v1363_v35, %v894_v19  ;;  %v3599_v37 = vpop.f32.mrb[29].mxu1  ;;  %v3314_v35 = vld [vmem:[#allocation13] ss:$0 sm:$0xff] }
 0xa45   :  { %v1366_v11 = vpop.f32.mrb[30].mxu1 }
 0xa46   :  { %3836 = vrot.lane.b32.xlu1 %v3835_v36, %s4304_s30  ;;  %v3600_v38 = vpop.f32.mrb[31].mxu1 }
 0xa4b   :  { %v1475_v39 = vpop.f32.mrb[32].mxu1 }
 0xa4c   :  { %v3840_v40 = vpack.i.bf16 %v1475_v39, %v1006_v23  ;;  %v3611_v41 = vpop.f32.mrb[33].mxu1  ;;  %v3866_v39 = vld [vmem:[%s5280_s16] sm:$0xff]  }
 0xa4d   :  { %v1478_v42 = vpop.f32.mrb[34].mxu1  ;;  %v3868_v41 = vld [vmem:[%s5280_s16 + $0x10] sm:$0xff]  }
 0xa4e   :  { %3841 = vrot.lane.b32.xlu0 %v3840_v40, %s4333_s18  ;;  %v3612_v43 = vpop.f32.mrb[35].mxu1  ;;  %v3867_v40 = vld [vmem:[%s5280_s16 + $0x8] sm:$0xff]   ;;  %v3869_v42 = vld [vmem:[%s5280_s16 + $0x18] sm:$0xff]  }
 0xa4f   :  { %v3315_v43 = vld [vmem:[#allocation14] ss:$0 sm:$0xff] }
 0xab0   :  { %v3832_v44 = vpop.permute.xlu1 %3831 }
 0xab1   :  { %v3834_v46 = vunpack.i.h.bf16 %v3832_v44  ;;  %v3833_v47 = vunpack.i.l.bf16 %v3832_v44 }
 0xab3   :  { %v1493_v51 = vsel %vm562_vm13, %v1139_v26, %v3834_v46  ;;  %v1024_v52 = vsel %vm562_vm13, %v4812_v54, %v3833_v47 }
 0xab8   :  { %v3837_v45 = vpop.permute.xlu1 %3836 }
 0xab9   :  { %v3839_v48 = vunpack.i.h.bf16 %v3837_v45  ;;  %v3838_v49 = vunpack.i.l.bf16 %v3837_v45 }
 0xabb   :  { %v1494_v56 = vsel %vm1025_vm15, %v1493_v51, %v3839_v48  ;;  %v1026_v57 = vsel %vm1025_vm15, %v1024_v52, %v3838_v49 }
 0xac0   :  { %v3842_v50 = vpop.permute.xlu0 %3841 }
 0xac1   :  { %v3844_v53 = vunpack.i.h.bf16 %v3842_v50  ;;  %v3843_v55 = vunpack.i.l.bf16 %v3842_v50 }
 0xac3   :  { %v1495_v58 = vsel %vm1027_vm0, %v1494_v56, %v3844_v53  ;;  %v1028_v59 = vsel %vm1027_vm0, %v1026_v57, %v3843_v55 }
 0xac4   :  { %v1496_v60 = vpack.c.bf16 %v1495_v58, %v1028_v59 }
 0xac6   :  { %3618 = vmatmul.mubr.msk.bf16.vlgmr.msra.gmra.mrb[36].mxu0 %vm443_vm11, %v1496_v60 }
 0xac7   :  { %3637 = vmatprep.mubr.msk.bf16.mxu0 %vm4320_vm12, %v4317_v6  ;;  %3630 = vmatpush3.bf16.msra.mxu0 %v3866_v39 }
 0xac8   :  { %3631 = vmatprep.subr.bf16.mxu0 %v4317_v6 }
 0xacb   :  { %3632 = vmatpush3.bf16.msra.mxu0 %v3867_v40 }
 0xacc   :  { %3633 = vmatprep.subr.bf16.mxu0 %v4317_v6 }
 0xacf   :  { %3634 = vmatpush3.bf16.msra.mxu0 %v3868_v41 }
 0xad0   :  { %3635 = vmatprep.subr.bf16.mxu0 %v4317_v6 }
 0xad3   :  { %3636 = vmatpush3.bf16.msra.mxu0 %v3869_v42 }
 0xad4   :  { %3655 = vmatprep.subr.bf16.mxu0 %v4317_v6 }
 0xb99   :  { %v1557_v0 = vpop.f32.mrb[36].mxu0 }
 0xb9a   :  { %v1558_v2 = vadd.f32 %v3309_v61, %v1557_v0  ;;  %v3619_v54 = vpop.f32.mrb[37].mxu0 }
 0xb9b   :  { %v1560_v3 = vpop.f32.mrb[38].mxu0 }
 0xb9c   :  { %v1561_v1 = vadd.f32 %v3309_v61, %v1560_v3  ;;  %v3620_v4 = vpop.f32.mrb[39].mxu0  ;;  %v1564_v5 = vadd.f32 %v1558_v2, %v4715_v62 }
 0xb9e   :  { %v1568_v9 = vsel %vm443_vm11, %v1564_v5, 0.0  ;;  %v1565_v10 = vadd.f32 %v1561_v1, %v4717_v63  ;;  %v3864_v63 = vld [vmem:[%s5278_s14] sm:$0xff]  }
 0xb9f   :  { %1569 = vadd.xlane.f32.xlu1 %v1568_v9  ;;  %3622 = vmatpush3.bf16.msra.mxu1 %v3864_v63 }
 0xba0   :  { %v1571_v12 = vsel %vm443_vm11, %v1565_v10, 0.0  ;;  %3623 = vmatprep.subr.bf16.mxu1 %v4317_v6 }
 0xba1   :  { %1572 = vadd.xlane.f32.xlu0 %v1571_v12 }
 0xba3   :  { %3624 = vmatpush3.bf16.msra.mxu1 %v3865_v7 }
 0xba4   :  { %3641 = vmatprep.subr.bf16.mxu1 %v4317_v6 }
 0xc2c   :  { %v1570_v14 = vpop.xlane.xlu1 %1569 }
 0xc2d   :  { %v1574_v15 = vmul.f32 0.03125, %v1570_v14 }
 0xc2e   :  { %v1573_v18 = vpop.xlane.xlu0 %1572 }
 0xc2f   :  { %v1576_v19 = vsub.f32 %v1564_v5, %v1574_v15  ;;  %v1575_v20 = vmul.f32 0.03125, %v1573_v18 }
 0xc31   :  { %v1577_v21 = vsub.f32 %v1565_v10, %v1575_v20  ;;  %v1578_v22 = vmul.f32 %v1576_v19, %v1576_v19  ;;  %v3319_v10 = vld [vmem:[#allocation16] ss:$0 sm:$0xff] }
 0xc33   :  { %v1580_v23 = vsel %vm443_vm11, %v1578_v22, 0.0  ;;  %v1579_v24 = vmul.f32 %v1577_v21, %v1577_v21 }
 0xc34   :  { %1581 = vadd.xlane.f32.xlu0 %v1580_v23 }
 0xc35   :  { %v1583_v62 = vsel %vm443_vm11, %v1579_v24, 0.0 }
 0xc36   :  { %1584 = vadd.xlane.f32.xlu1 %v1583_v62 }
 0xcc1   :  { %v1582_v25 = vpop.xlane.xlu0 %1581 }
 0xcc2   :  { %v1586_v26 = vmul.f32 0.03125, %v1582_v25 }
 0xcc3   :  { %v1585_v27 = vpop.xlane.xlu1 %1584 }
 0xcc4   :  { %v1588_v28 = vadd.f32 1e-12, %v1586_v26  ;;  %v1587_v8 = vmul.f32 0.03125, %v1585_v27 }
 0xcc6   :  { %3918 = vrsqrt.f32 %v1588_v28  ;;  %v1589_v13 = vadd.f32 1e-12, %v1587_v8 }
 0xcc8   :  { %3920 = vrsqrt.f32 %v1589_v13 }
 0xcd0   :  { %v3919_v29 = vpop.eup %3918 }
 0xcd1   :  { %v1592_v31 = vmul.f32 %v3919_v29, %v1576_v19 }
 0xcd2   :  { %v3921_v32 = vpop.eup %3920 }
 0xcd3   :  { %v1600_v33 = vmul.f32 %v3313_v30, %v1592_v31  ;;  %v1593_v34 = vmul.f32 %v3921_v32, %v1577_v21  ;;  %v3871_v31 = vld [vmem:[%s5272_s8 + $0x18] sm:$0xff]  }
 0xcd5   :  { %v1601_v36 = vmul.f32 %v3313_v30, %v1593_v34  ;;  %v1608_v37 = vadd.f32 %v3314_v35, %v1600_v33  ;;  %v3870_v30 = vld [vmem:[%s5272_s8 + $0x10] sm:$0xff]  }
 0xcd7   :  { %v1609_v11 = vadd.f32 %v3314_v35, %v1601_v36 }
 0xcd9   :  { %v1610_v38 = vpack.c.bf16 %v1609_v11, %v1608_v37 }
 0xcdb   :  { %3626 = vmatmul.mubr.msk.bf16.vlgmr.msra.gmra.mrb[36].mxu1 %vm443_vm11, %v1610_v38  ;;  %v3325_v38 = vld [vmem:[#allocation17] ss:$0 sm:$0xff] }
 0xcdc   :  { %3645 = vmatprep.mubr.msk.bf16.mxu1 %vm4320_vm12, %v4317_v6  ;;  %3642 = vmatpush3.bf16.msra.mxu1 %v3870_v30 }
 0xcdd   :  { %3643 = vmatprep.subr.bf16.mxu1 %v4317_v6 }
 0xce0   :  { %3644 = vmatpush3.bf16.msra.mxu1 %v3871_v31 }
 0xce1   :  { %3649 = vmatprep.subr.bf16.mxu1 %v4317_v6 }
 0xdae   :  { %v1671_v44 = vpop.f32.mrb[36].mxu1 }
 0xdaf   :  { %v1672_v45 = vadd.f32 %v3315_v43, %v1671_v44  ;;  %v3627_v46 = vpop.f32.mrb[37].mxu1 }
 0xdb0   :  { %v1674_v47 = vpop.f32.mrb[38].mxu1 }
 0xdb1   :  { %v1680_v48 = vmul.f32 0.044715, %v1672_v45  ;;  %v1675_v49 = vadd.f32 %v3315_v43, %v1674_v47  ;;  %v3628_v50 = vpop.f32.mrb[39].mxu1  ;;  %v1678_v54 = vmul.f32 0.5, %v1672_v45  ;;  %v3326_v43 = vld [vmem:[#allocation19] ss:$0 sm:$0xff] }
 0xdb3   :  { %v1682_v51 = vmul.f32 %v1680_v48, %v1672_v45  ;;  %v1681_v52 = vmul.f32 0.044715, %v1675_v49  ;;  %v1679_v3 = vmul.f32 0.5, %v1675_v49  ;;  %v3331_v48 = vld [vmem:[#allocation8 + $0x1] ss:$0 sm:$0xff] }
 0xdb5   :  { %v1684_v53 = vmul.f32 %v1682_v51, %v1672_v45  ;;  %v1683_v55 = vmul.f32 %v1681_v52, %v1675_v49 }
 0xdb7   :  { %v1686_v56 = vadd.f32 %v1684_v53, %v1672_v45  ;;  %v1685_v57 = vmul.f32 %v1683_v55, %v1675_v49 }
 0xdb9   :  { %v1688_v58 = vmul.f32 0.7978846, %v1686_v56  ;;  %v1687_v59 = vadd.f32 %v1685_v57, %v1675_v49 }
 0xdbb   :  { %3922 = vtanh.f32 %v1688_v58  ;;  %v1689_v60 = vmul.f32 0.7978846, %v1687_v59 }
 0xdbd   :  { %3924 = vtanh.f32 %v1689_v60 }
 0xdc5   :  { %v3923_v61 = vpop.eup %3922 }
 0xdc6   :  { %v1692_v0 = vadd.f32 1.0, %v3923_v61 }
 0xdc7   :  { %v3925_v2 = vpop.eup %3924 }
 0xdc8   :  { %v1693_v1 = vadd.f32 1.0, %v3925_v2  ;;  %v1694_v4 = vmul.f32 %v1692_v0, %v1678_v54 }
 0xdca   :  { %v1695_v5 = vmul.f32 %v1693_v1, %v1679_v3 }
 0xdcc   :  { %v1696_v9 = vpack.c.bf16 %v1695_v5, %v1694_v4 }
 0xdce   :  { %3638 = vmatmul.mubr.msk.bf16.vlgmr.msra.gmra.mrb[40].mxu0 %vm1736_vm1, %v1696_v9 }
 0xdcf   :  { %3657 = vmatprep.mubr.msk.bf16.mxu0 %vm4320_vm12, %v4317_v6 }
 0xea1   :  { %v1774_v12 = vpop.f32.mrb[40].mxu0 }
 0xea2   :  { %v1775_v14 = vadd.f32 %v3319_v10, %v1774_v12  ;;  %v3639_v15 = vpop.f32.mrb[41].mxu0 }
 0xea3   :  { %v1777_v18 = vpop.f32.mrb[42].mxu0 }
 0xea4   :  { %v1778_v19 = vadd.f32 %v3319_v10, %v1777_v18  ;;  %v3640_v20 = vpop.f32.mrb[43].mxu0  ;;  %v1781_v21 = vadd.f32 %v1775_v14, %v1608_v37 }
 0xea6   :  { %v1785_v22 = vsel %vm443_vm11, %v1781_v21, 0.0  ;;  %v1782_v23 = vadd.f32 %v1778_v19, %v1609_v11 }
 0xea7   :  { %1786 = vadd.xlane.f32.xlu0 %v1785_v22 }
 0xea8   :  { %v1788_v24 = vsel %vm443_vm11, %v1782_v23, 0.0 }
 0xea9   :  { %1789 = vadd.xlane.f32.xlu1 %v1788_v24 }
 0xf34   :  { %v1787_v62 = vpop.xlane.xlu0 %1786 }
 0xf35   :  { %v1791_v63 = vmul.f32 0.03125, %v1787_v62 }
 0xf36   :  { %v1790_v7 = vpop.xlane.xlu1 %1789 }
 0xf37   :  { %v1793_v25 = vsub.f32 %v1781_v21, %v1791_v63  ;;  %v1792_v26 = vmul.f32 0.03125, %v1790_v7 }
 0xf39   :  { %v1794_v27 = vsub.f32 %v1782_v23, %v1792_v26  ;;  %v1795_v28 = vmul.f32 %v1793_v25, %v1793_v25 }
 0xf3b   :  { %v1797_v8 = vsel %vm443_vm11, %v1795_v28, 0.0  ;;  %v1796_v13 = vmul.f32 %v1794_v27, %v1794_v27 }
 0xf3c   :  { %1798 = vadd.xlane.f32.xlu0 %v1797_v8 }
 0xf3d   :  { %v1800_v29 = vsel %vm443_vm11, %v1796_v13, 0.0 }
 0xf3e   :  { %1801 = vadd.xlane.f32.xlu1 %v1800_v29 }
 0xfc9   :  { %v1799_v32 = vpop.xlane.xlu0 %1798 }
 0xfca   :  { %v1803_v33 = vmul.f32 0.03125, %v1799_v32 }
 0xfcb   :  { %v1802_v34 = vpop.xlane.xlu1 %1801 }
 0xfcc   :  { %v1805_v35 = vadd.f32 1e-12, %v1803_v33  ;;  %v1804_v36 = vmul.f32 0.03125, %v1802_v34 }
 0xfce   :  { %3926 = vrsqrt.f32 %v1805_v35  ;;  %v1806_v37 = vadd.f32 1e-12, %v1804_v36 }
 0xfd0   :  { %3928 = vrsqrt.f32 %v1806_v37 }
 0xfd8   :  { %v3927_v11 = vpop.eup %3926 }
 0xfd9   :  { %v1809_v39 = vmul.f32 %v3927_v11, %v1793_v25 }
 0xfda   :  { %v3929_v40 = vpop.eup %3928 }
 0xfdb   :  { %v1817_v41 = vmul.f32 %v3325_v38, %v1809_v39  ;;  %v1810_v42 = vmul.f32 %v3929_v40, %v1794_v27 }
 0xfdd   :  { %v1818_v44 = vmul.f32 %v3325_v38, %v1810_v42  ;;  %v4969_v45 = vadd.f32 %v3326_v43, %v1817_v41 }
 0xfdf   :  { %v4971_v46 = vadd.f32 %v3326_v43, %v1818_v44 }
 0xfe1   :  { %v1827_v47 = vpack.c.bf16 %v4971_v46, %v4969_v45 }
 0xfe3   :  { %3646 = vmatmul.mubr.msk.bf16.vlgmr.msra.gmra.mrb[40].mxu1 %vm443_vm11, %v1827_v47 }
 0xfe4   :  { %3651 = vmatprep.mubr.msk.bf16.mxu1 %vm4320_vm12, %v4317_v6 }
0x10b6   :  { %v1890_v49 = vpop.f32.mrb[40].mxu1 }
0x10b7   :  { %v1891_v50 = vadd.f32 %v3331_v48, %v1890_v49  ;;  %v3647_v51 = vpop.f32.mrb[41].mxu1 }
0x10b8   :  { %v1893_v52 = vpop.f32.mrb[42].mxu1 }
0x10b9   :  { %v4978_v53 = vpack.c.bf16 %v1891_v50, %v1891_v50  ;;  %v3648_v55 = vpop.f32.mrb[43].mxu1  ;;  %v1894_v56 = vadd.f32 %v3331_v48, %v1893_v52 }
0x10bb   :  { %2011 = vrot.lane.b32.xlu1 %v4978_v53, %s4322_s15  ;;  %1899 = vrot.lane.b32.xlu0 %v4978_v53, %s4321_s11  ;;  %v4992_v57 = vpack.c.bf16 %v1894_v56, %v1894_v56 }
0x10bf   :  { %2009 = vrot.lane.b32.xlu1 %v4978_v53, %s4323_s5  ;;  %2123 = vrot.lane.b32.xlu0 %v4978_v53, %s4324_s2 }
0x10c3   :  { %2121 = vrot.lane.b32.xlu1 %v4978_v53, %s4325_s12  ;;  %2235 = vrot.lane.b32.xlu0 %v4978_v53, %s4327_s25 }
0x10c7   :  { %2233 = vrot.lane.b32.xlu1 %v4978_v53, %s4326_s17  ;;  %2362 = vrot.lane.b32.xlu0 %v4992_v57, %s4321_s11 }
0x10cb   :  { %2474 = vrot.lane.b32.xlu1 %v4992_v57, %s4322_s15  ;;  %2472 = vrot.lane.b32.xlu0 %v4992_v57, %s4323_s5 }
0x10cf   :  { %2586 = vrot.lane.b32.xlu1 %v4992_v57, %s4324_s2  ;;  %2584 = vrot.lane.b32.xlu0 %v4992_v57, %s4325_s12 }
0x10d3   :  { %2698 = vrot.lane.b32.xlu1 %v4992_v57, %s4327_s25  ;;  %2696 = vrot.lane.b32.xlu0 %v4992_v57, %s4326_s17 }
0x112d   :  { %v1900_v58 = vpop.permute.xlu0 %1899  ;;  %v2012_v60 = vpop.permute.xlu1 %2011 }
0x112e   :  { %v1905_v59 = vsel %vm562_vm13, %v1900_v58, 0  ;;  %v2017_v61 = vsel %vm562_vm13, %v2012_v60, 0 }
0x112f   :  { %3650 = vmatpush3.bf16.xpose.msra.mxu1 %v1905_v59 }
0x1130   :  { %3661 = vmatprep.subr.bf16.mxu1 %v4317_v6 }
0x1131   :  { %v2124_v0 = vpop.permute.xlu0 %2123  ;;  %v2010_v2 = vpop.permute.xlu1 %2009 }
0x1132   :  { %v2129_v54 = vsel %vm562_vm13, %v2124_v0, 0 }
0x1135   :  { %v2236_v3 = vpop.permute.xlu0 %2235  ;;  %v2122_v1 = vpop.permute.xlu1 %2121 }
0x1136   :  { %3652 = vmatmul.mubr.msk.bf16.vlgmr.msra.gmra.mrb[44].mxu1 %vm562_vm13, %v4978_v53  ;;  %v2241_v4 = vsel %vm562_vm13, %v2236_v3, 0 }
0x1137   :  { %3662 = vmatpush3.bf16.xpose.msra.mxu1 %v2017_v61  ;;  %3663 = vmatprep.mubr.msk.bf16.mxu1 %vm4320_vm12, %v4317_v6 }
0x1138   :  { %3673 = vmatprep.subr.bf16.mxu1 %v4317_v6 }
0x1139   :  { %v2363_v5 = vpop.permute.xlu0 %2362  ;;  %v2234_v9 = vpop.permute.xlu1 %2233 }
0x113a   :  { %v2368_v10 = vsel %vm562_vm13, %v2363_v5, 0 }
0x113d   :  { %v2475_v12 = vpop.permute.xlu1 %2474  ;;  %v2473_v18 = vpop.permute.xlu0 %2472 }
0x113e   :  { %3664 = vmatmul.mubr.msk.bf16.vlgmr.msra.gmra.mrb[48].mxu1 %vm562_vm13, %v2010_v2  ;;  %v2480_v14 = vsel %vm562_vm13, %v2475_v12, 0 }
0x113f   :  { %3674 = vmatpush3.bf16.xpose.msra.mxu1 %v2129_v54  ;;  %3675 = vmatprep.mubr.msk.bf16.mxu1 %vm4320_vm12, %v4317_v6 }
0x1140   :  { %3685 = vmatprep.subr.bf16.mxu1 %v4317_v6 }
0x1141   :  { %v2587_v15 = vpop.permute.xlu1 %2586  ;;  %v2585_v21 = vpop.permute.xlu0 %2584 }
0x1142   :  { %v2592_v19 = vsel %vm562_vm13, %v2587_v15, 0 }
0x1145   :  { %v2699_v20 = vpop.permute.xlu1 %2698  ;;  %v2697_v23 = vpop.permute.xlu0 %2696 }
0x1146   :  { %3676 = vmatmul.mubr.msk.bf16.vlgmr.msra.gmra.mrb[52].mxu1 %vm562_vm13, %v2122_v1  ;;  %v2704_v22 = vsel %vm562_vm13, %v2699_v20, 0 }
0x1147   :  { %3686 = vmatpush3.bf16.xpose.msra.mxu1 %v2241_v4  ;;  %3687 = vmatprep.mubr.msk.bf16.mxu1 %vm4320_vm12, %v4317_v6 }
0x1148   :  { %3697 = vmatprep.subr.bf16.mxu1 %v4317_v6 }
0x114e   :  { %3688 = vmatmul.mubr.msk.bf16.vlgmr.msra.gmra.mrb[56].mxu1 %vm562_vm13, %v2234_v9 }
0x114f   :  { %3698 = vmatpush3.bf16.xpose.msra.mxu1 %v2368_v10  ;;  %3699 = vmatprep.mubr.msk.bf16.mxu1 %vm4320_vm12, %v4317_v6 }
0x1150   :  { %3709 = vmatprep.subr.bf16.mxu1 %v4317_v6 }
0x1156   :  { %3700 = vmatmul.mubr.msk.bf16.vlgmr.msra.gmra.mrb[60].mxu1 %vm562_vm13, %v4992_v57 }
0x1157   :  { %3710 = vmatpush3.bf16.xpose.msra.mxu1 %v2480_v14  ;;  %3711 = vmatprep.mubr.msk.bf16.mxu1 %vm4320_vm12, %v4317_v6 }
0x1158   :  { %3721 = vmatprep.subr.bf16.mxu1 %v4317_v6 }
0x115e   :  { %3712 = vmatmul.mubr.msk.bf16.vlgmr.msra.gmra.mrb[64].mxu1 %vm562_vm13, %v2473_v18 }
0x115f   :  { %3722 = vmatpush3.bf16.xpose.msra.mxu1 %v2592_v19  ;;  %3723 = vmatprep.mubr.msk.bf16.mxu1 %vm4320_vm12, %v4317_v6 }
0x1160   :  { %3733 = vmatprep.subr.bf16.mxu1 %v4317_v6 }
0x1166   :  { %3724 = vmatmul.mubr.msk.bf16.vlgmr.msra.gmra.mrb[68].mxu1 %vm562_vm13, %v2585_v21 }
0x1167   :  { %3734 = vmatpush3.bf16.xpose.msra.mxu1 %v2704_v22  ;;  %3735 = vmatprep.mubr.msk.bf16.mxu1 %vm4320_vm12, %v4317_v6 }
0x1168   :  { %3745 = vmatprep.subr.bf16.mxu1 %v4317_v6 }
0x116e   :  { %3736 = vmatmul.mubr.msk.bf16.vlgmr.msra.gmra.mrb[72].mxu1 %vm562_vm13, %v2697_v23 }
0x116f   :  { %3749 = vmatprep.mubr.msk.bf16.mxu1 %vm4320_vm12, %v4317_v6 }
0x1209   :  { %v1941_v24 = vpop.f32.mrb[44].mxu1 }
0x120a   :  { %v1947_v62 = vmul.f32 0.35355338, %v1941_v24  ;;  %v3653_v63 = vpop.f32.mrb[45].mxu1 }
0x120b   :  { %v1944_v7 = vpop.f32.mrb[46].mxu1 }
0x120c   :  { %v3654_v25 = vpop.f32.mrb[47].mxu1  ;;  %v5053_v26 = vadd.f32 %v1947_v62, %v4754_v17 }
0x120e   :  { %v1949_v27 = vsel %vm562_vm13, %v5053_v26, -inf }
0x120f   :  { %1950 = vmax.xlane.f32.xlu1 %v1949_v27 }
0x1211   :  { %v2053_v28 = vpop.f32.mrb[48].mxu1 }
0x1212   :  { %v2059_v8 = vmul.f32 0.35355338, %v2053_v28  ;;  %v3665_v13 = vpop.f32.mrb[49].mxu1 }
0x1213   :  { %v2056_v29 = vpop.f32.mrb[50].mxu1 }
0x1214   :  { %v3666_v30 = vpop.f32.mrb[51].mxu1  ;;  %v2060_v31 = vadd.f32 %v2059_v8, %v4754_v17 }
0x1216   :  { %v2061_v32 = vsel %vm562_vm13, %v2060_v31, -inf }
0x1217   :  { %2062 = vmax.xlane.f32.xlu0 %v2061_v32 }
0x1219   :  { %v2165_v33 = vpop.f32.mrb[52].mxu1 }
0x121a   :  { %v2171_v34 = vmul.f32 0.35355338, %v2165_v33  ;;  %v3677_v35 = vpop.f32.mrb[53].mxu1 }
0x121b   :  { %v2168_v36 = vpop.f32.mrb[54].mxu1 }
0x121c   :  { %v3678_v37 = vpop.f32.mrb[55].mxu1  ;;  %v2172_v11 = vadd.f32 %v2171_v34, %v4754_v17 }
0x121e   :  { %v2173_v38 = vsel %vm562_vm13, %v2172_v11, -inf }
0x121f   :  { %2174 = vmax.xlane.f32.xlu0 %v2173_v38 }
0x1221   :  { %v2277_v39 = vpop.f32.mrb[56].mxu1 }
0x1222   :  { %v2283_v40 = vmul.f32 0.35355338, %v2277_v39  ;;  %v3689_v41 = vpop.f32.mrb[57].mxu1 }
0x1223   :  { %v2280_v42 = vpop.f32.mrb[58].mxu1 }
0x1224   :  { %v3690_v43 = vpop.f32.mrb[59].mxu1  ;;  %v2284_v44 = vadd.f32 %v2283_v40, %v4754_v17 }
0x1226   :  { %v2285_v47 = vsel %vm562_vm13, %v2284_v44, -inf }
0x1227   :  { %2286 = vmax.xlane.f32.xlu1 %v2285_v47 }
0x1229   :  { %v2404_v48 = vpop.f32.mrb[60].mxu1 }
0x122a   :  { %v2410_v49 = vmul.f32 0.35355338, %v2404_v48  ;;  %v3701_v50 = vpop.f32.mrb[61].mxu1 }
0x122b   :  { %v2407_v51 = vpop.f32.mrb[62].mxu1 }
0x122c   :  { %v3702_v52 = vpop.f32.mrb[63].mxu1  ;;  %v2411_v55 = vadd.f32 %v2410_v49, %v4681_v16 }
0x122e   :  { %v2412_v56 = vsel %vm562_vm13, %v2411_v55, -inf }
0x122f   :  { %2413 = vmax.xlane.f32.xlu0 %v2412_v56 }
0x1231   :  { %v2516_v58 = vpop.f32.mrb[64].mxu1 }
0x1232   :  { %v2522_v59 = vmul.f32 0.35355338, %v2516_v58  ;;  %v3713_v60 = vpop.f32.mrb[65].mxu1 }
0x1233   :  { %v2519_v61 = vpop.f32.mrb[66].mxu1 }
0x1234   :  { %v3714_v0 = vpop.f32.mrb[67].mxu1  ;;  %v5066_v17 = vadd.f32 %v2522_v59, %v4681_v16 }
0x1236   :  { %v2524_v2 = vsel %vm562_vm13, %v5066_v17, -inf }
0x1237   :  { %2525 = vmax.xlane.f32.xlu1 %v2524_v2 }
0x1239   :  { %v2628_v54 = vpop.f32.mrb[68].mxu1 }
0x123a   :  { %v2634_v3 = vmul.f32 0.35355338, %v2628_v54  ;;  %v3725_v1 = vpop.f32.mrb[69].mxu1 }
0x123b   :  { %v2631_v4 = vpop.f32.mrb[70].mxu1 }
0x123c   :  { %v3726_v5 = vpop.f32.mrb[71].mxu1  ;;  %v2635_v9 = vadd.f32 %v2634_v3, %v4681_v16 }
0x123e   :  { %v2636_v10 = vsel %vm562_vm13, %v2635_v9, -inf }
0x123f   :  { %2637 = vmax.xlane.f32.xlu0 %v2636_v10 }
0x1241   :  { %v2740_v12 = vpop.f32.mrb[72].mxu1 }
0x1242   :  { %v3737_v14 = vpop.f32.mrb[73].mxu1  ;;  %v2746_v19 = vmul.f32 0.35355338, %v2740_v12 }
0x1243   :  { %v2743_v15 = vpop.f32.mrb[74].mxu1 }
0x1244   :  { %v3738_v18 = vpop.f32.mrb[75].mxu1  ;;  %v2747_v20 = vadd.f32 %v2746_v19, %v4681_v16 }
0x1246   :  { %v2748_v21 = vsel %vm562_vm13, %v2747_v20, -inf }
0x1248   :  { %2073 = vrot.lane.b32.xlu1 %v4978_v53, %s4329_s1 }
0x1255   :  { %1961 = vrot.lane.b32.xlu0 %v4978_v53, %s4328_s7 }
0x126c   :  { %2749 = vmax.xlane.f32.xlu1 %v2748_v21 }
0x127d   :  { %2185 = vrot.lane.b32.xlu1 %v4978_v53, %s4330_s27 }
0x129c   :  { %v1951_v22 = vpop.xlane.xlu1 %1950 }
0x129d   :  { %v1952_v23 = vsub.f32 %v5053_v26, %v1951_v22 }
0x129f   :  { %v1953_v24 = vmul.f32 1.442695, %v1952_v23 }
0x12a1   :  { %3930 = vpow2.f32 %v1953_v24 }
0x12a4   :  { %v2063_v62 = vpop.xlane.xlu0 %2062 }
0x12a5   :  { %v2064_v63 = vsub.f32 %v2060_v31, %v2063_v62 }
0x12a7   :  { %v2065_v7 = vmul.f32 1.442695, %v2064_v63 }
0x12a9   :  { %3932 = vpow2.f32 %v2065_v7 }
0x12ab   :  { %v5081_v25 = vpop.eup %3930 }
0x12ac   :  { %v2175_v27 = vpop.xlane.xlu0 %2174  ;;  %v1955_v16 = vsel %vm562_vm13, %v5081_v25, 0.0 }
0x12ad   :  { %v2176_v28 = vsub.f32 %v2172_v11, %v2175_v27  ;;  %1956 = vadd.xlane.f32.xlu0 %v1955_v16 }
0x12af   :  { %v2177_v8 = vmul.f32 1.442695, %v2176_v28 }
0x12b1   :  { %3934 = vpow2.f32 %v2177_v8 }
0x12b3   :  { %v5085_v13 = vpop.eup %3932 }
0x12b4   :  { %v2287_v29 = vpop.xlane.xlu1 %2286  ;;  %v2067_v26 = vsel %vm562_vm13, %v5085_v13, 0.0 }
0x12b5   :  { %v2288_v30 = vsub.f32 %v2284_v44, %v2287_v29  ;;  %2068 = vadd.xlane.f32.xlu1 %v2067_v26 }
0x12b7   :  { %v2289_v31 = vmul.f32 1.442695, %v2288_v30 }
0x12b9   :  { %3936 = vpow2.f32 %v2289_v31 }
0x12bb   :  { %v5089_v32 = vpop.eup %3934 }
0x12bc   :  { %v2414_v33 = vpop.xlane.xlu0 %2413  ;;  %v2179_v34 = vsel %vm562_vm13, %v5089_v32, 0.0 }
0x12bd   :  { %v2415_v35 = vsub.f32 %v2411_v55, %v2414_v33  ;;  %2180 = vadd.xlane.f32.xlu0 %v2179_v34 }
0x12bf   :  { %v2416_v36 = vmul.f32 1.442695, %v2415_v35 }
0x12c1   :  { %3938 = vpow2.f32 %v2416_v36 }
0x12c3   :  { %v5093_v37 = vpop.eup %3936 }
0x12c4   :  { %v2291_v11 = vsel %vm562_vm13, %v5093_v37, 0.0  ;;  %v2526_v47 = vpop.xlane.xlu1 %2525 }
0x12c5   :  { %2292 = vadd.xlane.f32.xlu1 %v2291_v11  ;;  %v2527_v49 = vsub.f32 %v5066_v17, %v2526_v47 }
0x12c7   :  { %v2528_v51 = vmul.f32 1.442695, %v2527_v49 }
0x12cb   :  { %v5097_v38 = vpop.eup %3938 }
0x12cc   :  { %v2638_v39 = vpop.xlane.xlu0 %2637  ;;  %v2418_v40 = vsel %vm562_vm13, %v5097_v38, 0.0 }
0x12cd   :  { %v2639_v41 = vsub.f32 %v2635_v9, %v2638_v39  ;;  %2419 = vadd.xlane.f32.xlu1 %v2418_v40 }
0x12cf   :  { %v2640_v42 = vmul.f32 1.442695, %v2639_v41 }
0x12d0   :  { %v1962_v43 = vpop.permute.xlu0 %1961 }
0x12d1   :  { %3940 = vpow2.f32 %v2640_v42  ;;  %v1967_v44 = vsel %vm632_vm14, %v1962_v43, 0 }
0x12d2   :  { %3656 = vmatpush3.bf16.msra.mxu0 %v1967_v44  ;;  %3942 = vpow2.f32 %v2528_v51 }
0x12d3   :  { %2297 = vrot.lane.b32.xlu0 %v4978_v53, %s4331_s9  ;;  %3667 = vmatprep.subr.bf16.mxu0 %v4317_v6  ;;  %v2074_v53 = vpop.permute.xlu1 %2073 }
0x12d4   :  { %v2079_v4 = vsel %vm632_vm14, %v2074_v53, 0 }
0x12db   :  { %v5105_v48 = vpop.eup %3940 }
0x12dc   :  { %v2642_v50 = vsel %vm562_vm13, %v5105_v48, 0.0  ;;  %v5110_v52 = vpop.eup %3942 }
0x12dd   :  { %2643 = vadd.xlane.f32.xlu1 %v2642_v50  ;;  %v2530_v55 = vsel %vm562_vm13, %v5110_v52, 0.0 }
0x12f2   :  { %2531 = vadd.xlane.f32.xlu0 %v2530_v55 }
0x12f9   :  { %v2750_v56 = vpop.xlane.xlu1 %2749 }
0x12fa   :  { %v2751_v58 = vsub.f32 %v2747_v20, %v2750_v56 }
0x12fc   :  { %v2752_v59 = vmul.f32 1.442695, %v2751_v58 }
0x12fd   :  { %v2186_v17 = vpop.permute.xlu1 %2185 }
0x12fe   :  { %3944 = vpow2.f32 %v2752_v59  ;;  %v2191_v12 = vsel %vm632_vm14, %v2186_v17, 0 }
0x1308   :  { %v5114_v60 = vpop.eup %3944  ;;  %2536 = vrot.lane.b32.xlu0 %v4992_v57, %s4329_s1 }
0x1309   :  { %v2754_v61 = vsel %vm562_vm13, %v5114_v60, 0.0 }
0x130a   :  { %2755 = vadd.xlane.f32.xlu1 %v2754_v61 }
0x130c   :  { %2648 = vrot.lane.b32.xlu0 %v4992_v57, %s4330_s27 }
0x1310   :  { %2760 = vrot.lane.b32.xlu0 %v4992_v57, %s4331_s9 }
0x131b   :  { %2424 = vrot.lane.b32.xlu1 %v4992_v57, %s4328_s7 }
0x133a   :  { %v1957_v0 = vpop.xlane.xlu0 %1956 }
0x133b   :  { %3946 = vrcp.f32 %v1957_v0 }
0x1342   :  { %v2069_v2 = vpop.xlane.xlu1 %2068 }
0x1343   :  { %3948 = vrcp.f32 %v2069_v2 }
0x1345   :  { %v3947_v54 = vpop.eup %3946 }
0x1346   :  { %v1959_v3 = vmul.f32 %v3947_v54, %v5081_v25 }
0x1348   :  { %v1960_v1 = vpack.c.bf16 %v1959_v3, %v1959_v3 }
0x134a   :  { %3658 = vmatmul.mubr.msk.bf16.vlgmr.msra.gmra.mrb[44].mxu0 %vm562_vm13, %v1960_v1  ;;  %v2181_v5 = vpop.xlane.xlu0 %2180  ;;  %v3872_v1 = vld [vmem:[%s5274_s10 + $0x10] sm:$0xff]  }
0x134b   :  { %3668 = vmatpush3.bf16.msra.mxu0 %v2079_v4  ;;  %3950 = vrcp.f32 %v2181_v5  ;;  %3669 = vmatprep.mubr.msk.bf16.mxu0 %vm4320_vm12, %v4317_v6 }
0x134c   :  { %3679 = vmatprep.subr.bf16.mxu0 %v4317_v6  ;;  %3746 = vmatpush3.bf16.msra.mxu1 %v3872_v1  ;;  %v3359_v1 = vld [vmem:[#allocation11 + $0x1] ss:$0 sm:$0xff] }
0x134d   :  { %v3949_v57 = vpop.eup %3948  ;;  %3747 = vmatprep.subr.bf16.mxu1 %v4317_v6 }
0x134e   :  { %v2071_v9 = vmul.f32 %v3949_v57, %v5085_v13  ;;  %v2298_v19 = vpop.permute.xlu0 %2297 }
0x134f   :  { %v2303_v21 = vsel %vm632_vm14, %v2298_v19, 0 }
0x1350   :  { %v2072_v10 = vpack.c.bf16 %v2071_v9, %v2071_v9 }
0x1352   :  { %3670 = vmatmul.mubr.msk.bf16.vlgmr.msra.gmra.mrb[48].mxu0 %vm562_vm13, %v2072_v10  ;;  %v2293_v14 = vpop.xlane.xlu1 %2292  ;;  %v3873_v10 = vld [vmem:[%s5274_s10 + $0x18] sm:$0xff]  }
0x1353   :  { %3680 = vmatpush3.bf16.msra.mxu0 %v2191_v12  ;;  %3952 = vrcp.f32 %v2293_v14  ;;  %3681 = vmatprep.mubr.msk.bf16.mxu0 %vm4320_vm12, %v4317_v6 }
0x1354   :  { %3691 = vmatprep.subr.bf16.mxu0 %v4317_v6  ;;  %3748 = vmatpush3.bf16.msra.mxu1 %v3873_v10 }
0x1355   :  { %v3951_v15 = vpop.eup %3950  ;;  %3761 = vmatprep.subr.bf16.mxu1 %v4317_v6 }
0x1356   :  { %v2183_v18 = vmul.f32 %v3951_v15, %v5089_v32 }
0x1358   :  { %v2184_v20 = vpack.c.bf16 %v2183_v18, %v2183_v18 }
0x135a   :  { %3682 = vmatmul.mubr.msk.bf16.vlgmr.msra.gmra.mrb[52].mxu0 %vm562_vm13, %v2184_v20  ;;  %v2420_v62 = vpop.xlane.xlu1 %2419 }
0x135b   :  { %3692 = vmatpush3.bf16.msra.mxu0 %v2303_v21  ;;  %3693 = vmatprep.mubr.msk.bf16.mxu0 %vm4320_vm12, %v4317_v6  ;;  %3954 = vrcp.f32 %v2420_v62 }
0x135c   :  { %3703 = vmatprep.subr.bf16.mxu0 %v4317_v6 }
0x135d   :  { %v3953_v22 = vpop.eup %3952 }
0x135e   :  { %v2295_v23 = vmul.f32 %v3953_v22, %v5093_v37 }
0x1360   :  { %v2296_v24 = vpack.c.bf16 %v2295_v23, %v2295_v23 }
0x1362   :  { %3694 = vmatmul.mubr.msk.bf16.vlgmr.msra.gmra.mrb[56].mxu0 %vm562_vm13, %v2296_v24 }
0x1363   :  { %3705 = vmatprep.mubr.msk.bf16.mxu0 %vm4320_vm12, %v4317_v6 }
0x1365   :  { %v3955_v25 = vpop.eup %3954 }
0x1366   :  { %v2422_v16 = vmul.f32 %v3955_v25, %v5097_v38 }
0x1368   :  { %v2423_v29 = vpack.c.bf16 %v2422_v16, %v2422_v16 }
0x136a   :  { %v2644_v7 = vpop.xlane.xlu1 %2643 }
0x137f   :  { %v2532_v63 = vpop.xlane.xlu0 %2531 }
0x1380   :  { %3956 = vrcp.f32 %v2532_v63 }
0x1381   :  { %3958 = vrcp.f32 %v2644_v7 }
0x1383   :  { %v2537_v13 = vpop.permute.xlu0 %2536 }
0x1384   :  { %v2542_v30 = vsel %vm632_vm14, %v2537_v13, 0 }
0x1387   :  { %v2649_v32 = vpop.permute.xlu0 %2648 }
0x1388   :  { %v2654_v35 = vsel %vm632_vm14, %v2649_v32, 0 }
0x138a   :  { %v3957_v26 = vpop.eup %3956 }
0x138b   :  { %v2534_v31 = vmul.f32 %v3957_v26, %v5110_v52  ;;  %v3959_v34 = vpop.eup %3958  ;;  %v2761_v37 = vpop.permute.xlu0 %2760 }
0x138c   :  { %v2646_v36 = vmul.f32 %v3959_v34, %v5105_v48  ;;  %v2766_v39 = vsel %vm632_vm14, %v2761_v37, 0 }
0x138d   :  { %v2535_v33 = vpack.c.bf16 %v2534_v31, %v2534_v31 }
0x138e   :  { %v2647_v11 = vpack.c.bf16 %v2646_v36, %v2646_v36 }
0x1397   :  { %v2756_v27 = vpop.xlane.xlu1 %2755 }
0x1398   :  { %3960 = vrcp.f32 %v2756_v27 }
0x139b   :  { %v2425_v28 = vpop.permute.xlu1 %2424 }
0x139c   :  { %v2430_v8 = vsel %vm632_vm14, %v2425_v28, 0 }
0x139d   :  { %3704 = vmatpush3.bf16.msra.mxu0 %v2430_v8 }
0x139e   :  { %3715 = vmatprep.subr.bf16.mxu0 %v4317_v6 }
0x13a0   :  { %3706 = vmatmul.mubr.msk.bf16.vlgmr.msra.gmra.mrb[60].mxu0 %vm562_vm13, %v2423_v29 }
0x13a1   :  { %3716 = vmatpush3.bf16.msra.mxu0 %v2542_v30  ;;  %3717 = vmatprep.mubr.msk.bf16.mxu0 %vm4320_vm12, %v4317_v6 }
0x13a2   :  { %3727 = vmatprep.subr.bf16.mxu0 %v4317_v6  ;;  %v3961_v38 = vpop.eup %3960 }
0x13a3   :  { %v2758_v40 = vmul.f32 %v3961_v38, %v5114_v60 }
0x13a5   :  { %v2759_v41 = vpack.c.bf16 %v2758_v40, %v2758_v40 }
0x13a8   :  { %3718 = vmatmul.mubr.msk.bf16.vlgmr.msra.gmra.mrb[64].mxu0 %vm562_vm13, %v2535_v33 }
0x13a9   :  { %3728 = vmatpush3.bf16.msra.mxu0 %v2654_v35  ;;  %3729 = vmatprep.mubr.msk.bf16.mxu0 %vm4320_vm12, %v4317_v6  ;;  %v3355_v35 = vld [vmem:[#allocation10 + $0x1] ss:$0 sm:$0xff] }
0x13aa   :  { %3739 = vmatprep.subr.bf16.mxu0 %v4317_v6 }
0x13b0   :  { %3730 = vmatmul.mubr.msk.bf16.vlgmr.msra.gmra.mrb[68].mxu0 %vm562_vm13, %v2647_v11 }
0x13b1   :  { %3740 = vmatpush3.bf16.msra.mxu0 %v2766_v39  ;;  %3741 = vmatprep.mubr.msk.bf16.mxu0 %vm4320_vm12, %v4317_v6 }
0x13b2   :  { %3753 = vmatprep.subr.bf16.mxu0 %v4317_v6 }
0x13b8   :  { %3742 = vmatmul.mubr.msk.bf16.vlgmr.msra.gmra.mrb[72].mxu0 %vm562_vm13, %v2759_v41 }
0x13b9   :  { %3757 = vmatprep.mubr.msk.bf16.mxu0 %vm4320_vm12, %v4317_v6 }
0x141d   :  { %v2003_v42 = vpop.f32.mrb[44].mxu0 }
0x141e   :  { %v3659_v43 = vpop.f32.mrb[45].mxu0 }
0x141f   :  { %v2006_v44 = vpop.f32.mrb[46].mxu0 }
0x1420   :  { %v3660_v47 = vpop.f32.mrb[47].mxu0 }
0x1425   :  { %v2115_v48 = vpop.f32.mrb[48].mxu0 }
0x1426   :  { %v3671_v49 = vpop.f32.mrb[49].mxu0 }
0x1427   :  { %v2118_v50 = vpop.f32.mrb[50].mxu0 }
0x1428   :  { %v3672_v51 = vpop.f32.mrb[51].mxu0 }
0x142d   :  { %v2227_v52 = vpop.f32.mrb[52].mxu0 }
0x142e   :  { %v3683_v55 = vpop.f32.mrb[53].mxu0 }
0x142f   :  { %v2230_v53 = vpop.f32.mrb[54].mxu0 }
0x1430   :  { %v3684_v56 = vpop.f32.mrb[55].mxu0 }
0x1435   :  { %v2339_v58 = vpop.f32.mrb[56].mxu0 }
0x1436   :  { %v3695_v59 = vpop.f32.mrb[57].mxu0 }
0x1437   :  { %v2342_v60 = vpop.f32.mrb[58].mxu0 }
0x1438   :  { %v3696_v61 = vpop.f32.mrb[59].mxu0 }
0x1473   :  { %v2466_v0 = vpop.f32.mrb[60].mxu0 }
0x1474   :  { %v3707_v17 = vpop.f32.mrb[61].mxu0 }
0x1475   :  { %v2469_v2 = vpop.f32.mrb[62].mxu0 }
0x1476   :  { %v3708_v54 = vpop.f32.mrb[63].mxu0 }
0x147b   :  { %v2578_v3 = vpop.f32.mrb[64].mxu0 }
0x147c   :  { %v3845_v4 = vpack.i.bf16 %v2578_v3, %v2115_v48  ;;  %v3719_v5 = vpop.f32.mrb[65].mxu0 }
0x147d   :  { %v2581_v57 = vpop.f32.mrb[66].mxu0 }
0x147e   :  { %3846 = vrot.lane.b32.xlu1 %v3845_v4, %s4332_s13  ;;  %v3720_v9 = vpop.f32.mrb[67].mxu0 }
0x147f   :  { %v3360_v9 = vld [vmem:[#allocation13 + $0x1] ss:$0 sm:$0xff] }
0x1483   :  { %v2690_v12 = vpop.f32.mrb[68].mxu0 }
0x1484   :  { %v3850_v14 = vpack.i.bf16 %v2690_v12, %v2227_v52  ;;  %v3731_v15 = vpop.f32.mrb[69].mxu0 }
0x1485   :  { %v2693_v18 = vpop.f32.mrb[70].mxu0 }
0x1486   :  { %3851 = vrot.lane.b32.xlu0 %v3850_v14, %s4304_s30  ;;  %v3732_v19 = vpop.f32.mrb[71].mxu0  ;;  %v3876_v18 = vld [vmem:[%s5280_s16 + $0x20] sm:$0xff]  }
0x1487   :  { %v3877_v19 = vld [vmem:[%s5280_s16 + $0x28] sm:$0xff]  }
0x148b   :  { %v2802_v20 = vpop.f32.mrb[72].mxu0 }
0x148c   :  { %v3855_v21 = vpack.i.bf16 %v2802_v20, %v2339_v58  ;;  %v3743_v22 = vpop.f32.mrb[73].mxu0  ;;  %v3875_v58 = vld [vmem:[%s5278_s14 + $0x18] sm:$0xff]   ;;  %v3878_v20 = vld [vmem:[%s5280_s16 + $0x30] sm:$0xff]  }
0x148d   :  { %v2805_v23 = vpop.f32.mrb[74].mxu0  ;;  %v3365_v22 = vld [vmem:[#allocation14 + $0x1] ss:$0 sm:$0xff] }
0x148e   :  { %3856 = vrot.lane.b32.xlu1 %v3855_v21, %s4333_s18  ;;  %v3744_v24 = vpop.f32.mrb[75].mxu0  ;;  %v3879_v21 = vld [vmem:[%s5280_s16 + $0x38] sm:$0xff]  }
0x14f0   :  { %v3847_v62 = vpop.permute.xlu1 %3846 }
0x14f1   :  { %v3849_v7 = vunpack.i.h.bf16 %v3847_v62  ;;  %v3848_v25 = vunpack.i.l.bf16 %v3847_v62 }
0x14f3   :  { %v2820_v8 = vsel %vm562_vm13, %v2466_v0, %v3849_v7  ;;  %v2357_v13 = vsel %vm562_vm13, %v2003_v42, %v3848_v25 }
0x14f8   :  { %v3852_v63 = vpop.permute.xlu0 %3851 }
0x14f9   :  { %v3854_v27 = vunpack.i.h.bf16 %v3852_v63  ;;  %v3853_v16 = vunpack.i.l.bf16 %v3852_v63 }
0x14fb   :  { %v2821_v30 = vsel %vm1025_vm15, %v2820_v8, %v3854_v27  ;;  %v2358_v31 = vsel %vm1025_vm15, %v2357_v13, %v3853_v16 }
0x1500   :  { %v3857_v28 = vpop.permute.xlu1 %3856 }
0x1501   :  { %v3859_v29 = vunpack.i.h.bf16 %v3857_v28  ;;  %v3858_v26 = vunpack.i.l.bf16 %v3857_v28 }
0x1503   :  { %v2822_v32 = vsel %vm1027_vm0, %v2821_v30, %v3859_v29  ;;  %v2359_v33 = vsel %vm1027_vm0, %v2358_v31, %v3858_v26 }
0x1504   :  { %v2823_v34 = vpack.c.bf16 %v2822_v32, %v2359_v33 }
0x1506   :  { %3750 = vmatmul.mubr.msk.bf16.vlgmr.msra.gmra.mrb[76].mxu1 %vm443_vm11, %v2823_v34 }
0x1507   :  { %3769 = vmatprep.mubr.msk.bf16.mxu1 %vm4320_vm12, %v4317_v6  ;;  %3762 = vmatpush3.bf16.msra.mxu1 %v3876_v18  ;;  %v3384_v18 = vld [vmem:[#allocation19 + $0x1] ss:$0 sm:$0xff] }
0x1508   :  { %3763 = vmatprep.subr.bf16.mxu1 %v4317_v6 }
0x150b   :  { %3764 = vmatpush3.bf16.msra.mxu1 %v3877_v19 }
0x150c   :  { %3765 = vmatprep.subr.bf16.mxu1 %v4317_v6 }
0x150f   :  { %3766 = vmatpush3.bf16.msra.mxu1 %v3878_v20 }
0x1510   :  { %3767 = vmatprep.subr.bf16.mxu1 %v4317_v6 }
0x1513   :  { %3768 = vmatpush3.bf16.msra.mxu1 %v3879_v21 }
0x15d9   :  { %v2886_v36 = vpop.f32.mrb[76].mxu1 }
0x15da   :  { %v2887_v37 = vadd.f32 %v3355_v35, %v2886_v36  ;;  %v3751_v11 = vpop.f32.mrb[77].mxu1 }
0x15db   :  { %v2889_v38 = vpop.f32.mrb[78].mxu1 }
0x15dc   :  { %v2893_v39 = vadd.f32 %v2887_v37, %v4969_v45  ;;  %v2890_v40 = vadd.f32 %v3355_v35, %v2889_v38  ;;  %v3752_v41 = vpop.f32.mrb[79].mxu1 }
0x15dd   :  { %v3377_v41 = vld [vmem:[#allocation16 + $0x1] ss:$0 sm:$0xff] }
0x15de   :  { %v2894_v42 = vadd.f32 %v2890_v40, %v4971_v46  ;;  %v2899_v43 = vsel %vm443_vm11, %v2893_v39, 0.0  ;;  %v3874_v46 = vld [vmem:[%s5278_s14 + $0x10] sm:$0xff]  }
0x15df   :  { %2900 = vadd.xlane.f32.xlu0 %v2899_v43  ;;  %3754 = vmatpush3.bf16.msra.mxu0 %v3874_v46 }
0x15e0   :  { %v2902_v44 = vsel %vm443_vm11, %v2894_v42, 0.0  ;;  %3755 = vmatprep.subr.bf16.mxu0 %v4317_v6 }
0x15e1   :  { %2903 = vadd.xlane.f32.xlu1 %v2902_v44 }
0x15e3   :  { %3756 = vmatpush3.bf16.msra.mxu0 %v3875_v58 }
0x15e4   :  { %3773 = vmatprep.subr.bf16.mxu0 %v4317_v6 }
0x166c   :  { %v2901_v47 = vpop.xlane.xlu0 %2900 }
0x166d   :  { %v2905_v48 = vmul.f32 0.03125, %v2901_v47 }
0x166e   :  { %v2904_v49 = vpop.xlane.xlu1 %2903 }
0x166f   :  { %v2907_v50 = vsub.f32 %v2893_v39, %v2905_v48  ;;  %v2906_v51 = vmul.f32 0.03125, %v2904_v49 }
0x1671   :  { %v2908_v52 = vsub.f32 %v2894_v42, %v2906_v51  ;;  %v2909_v55 = vmul.f32 %v2907_v50, %v2907_v50 }
0x1673   :  { %v2911_v53 = vsel %vm443_vm11, %v2909_v55, 0.0  ;;  %v2910_v45 = vmul.f32 %v2908_v52, %v2908_v52 }
0x1674   :  { %2912 = vadd.xlane.f32.xlu0 %v2911_v53 }
0x1675   :  { %v2914_v56 = vsel %vm443_vm11, %v2910_v45, 0.0 }
0x1678   :  { %2915 = vadd.xlane.f32.xlu0 %v2914_v56 }
0x1701   :  { %v2913_v59 = vpop.xlane.xlu0 %2912 }
0x1702   :  { %v2917_v60 = vmul.f32 0.03125, %v2913_v59 }
0x1704   :  { %v2919_v61 = vadd.f32 1e-12, %v2917_v60 }
0x1705   :  { %v2916_v0 = vpop.xlane.xlu0 %2915 }
0x1706   :  { %3962 = vrsqrt.f32 %v2919_v61  ;;  %v2918_v17 = vmul.f32 0.03125, %v2916_v0 }
0x1708   :  { %v2920_v2 = vadd.f32 1e-12, %v2918_v17 }
0x170a   :  { %3964 = vrsqrt.f32 %v2920_v2  ;;  %v3880_v2 = vld [vmem:[%s5284_s20] sm:$0xff]  }
0x1710   :  { %v3963_v54 = vpop.eup %3962 }
0x1711   :  { %v2923_v3 = vmul.f32 %v3963_v54, %v2907_v50  ;;  %v3881_v54 = vld [vmem:[%s5284_s20 + $0x8] sm:$0xff]   ;;  %s4334_s20 = smov [#allocation22]  }
0x1712   :  { %s3245_s4 = sshll.u32 %s4334_s20, 4  ;;  %s3246_s4 = int_to_ptr.vmem [resolvable:$true] %s3245_s4 }
0x1713   :  { %v2931_v5 = vmul.f32 %v3359_v1, %v2923_v3  ;;  %s4240_s29 = scalar_lea.vmem %s3246_s4, 256  ;;  %p4245_p13 = scmp.lt.s32.totalorder %s3246_s4, %s3246_s4 }
0x1714   :  { %v3965_v4 = vpop.eup %3964  ;;  %p4241_p12 = scmp.ne.s32.totalorder %s3246_s4, %s4240_s29  ;;  %p4246_p0 = scmp.lt.s32.totalorder %s4240_s29, %s4240_s29 }
0x1715   :  { %v2924_v57 = vmul.f32 %v3965_v4, %v2908_v52  ;;  %v2939_v12 = vadd.f32 %v3360_v9, %v2931_v5 }
0x1716   :  { %p4247_p1 = por %p4246_p0, %p4245_p13 }
0x1717   :  { %v2932_v10 = vmul.f32 %v3359_v1, %v2924_v57 }
0x1718   :  { %p4248_p2 = pnand %p4247_p1, %p4241_p12 }
0x1719   :  { %v2940_v14 = vadd.f32 %v3360_v9, %v2932_v10 }
0x171b   :  { %v2941_v15 = vpack.c.bf16 %v2940_v14, %v2939_v12 }
0x171d   :  { %3758 = vmatmul.mubr.msk.bf16.vlgmr.msra.gmra.mrb[76].mxu0 %vm443_vm11, %v2941_v15 }
0x171e   :  { %3777 = vmatprep.mubr.msk.bf16.mxu0 %vm4320_vm12, %v4317_v6  ;;  %3774 = vmatpush3.bf16.msra.mxu0 %v3880_v2 }
0x171f   :  { %3775 = vmatprep.subr.bf16.mxu0 %v4317_v6 }
0x1722   :  { %3776 = vmatpush3.bf16.msra.mxu0 %v3881_v54 }
0x17f0   :  { %v3004_v23 = vpop.f32.mrb[76].mxu0 }
0x17f1   :  { %v3005_v24 = vadd.f32 %v3365_v22, %v3004_v23  ;;  %v3759_v62 = vpop.f32.mrb[77].mxu0 }
0x17f2   :  { %v3007_v63 = vpop.f32.mrb[78].mxu0 }
0x17f3   :  { %v3013_v7 = vmul.f32 0.044715, %v3005_v24  ;;  %v3008_v25 = vadd.f32 %v3365_v22, %v3007_v63  ;;  %v3760_v27 = vpop.f32.mrb[79].mxu0  ;;  %v3011_v36 = vmul.f32 0.5, %v3005_v24 }
0x17f5   :  { %v3015_v16 = vmul.f32 %v3013_v7, %v3005_v24  ;;  %v3014_v28 = vmul.f32 0.044715, %v3008_v25  ;;  %v3012_v37 = vmul.f32 0.5, %v3008_v25 }
0x17f7   :  { %v3017_v8 = vmul.f32 %v3015_v16, %v3005_v24  ;;  %v3016_v13 = vmul.f32 %v3014_v28, %v3008_v25 }
0x17f9   :  { %v3019_v29 = vadd.f32 %v3017_v8, %v3005_v24  ;;  %v3018_v26 = vmul.f32 %v3016_v13, %v3008_v25 }
0x17fb   :  { %v3021_v30 = vmul.f32 0.7978846, %v3019_v29  ;;  %v3020_v31 = vadd.f32 %v3018_v26, %v3008_v25 }
0x17fd   :  { %3966 = vtanh.f32 %v3021_v30  ;;  %v3022_v32 = vmul.f32 0.7978846, %v3020_v31 }
0x17ff   :  { %3968 = vtanh.f32 %v3022_v32 }
0x1807   :  { %v3967_v33 = vpop.eup %3966 }
0x1808   :  { %v3025_v34 = vadd.f32 1.0, %v3967_v33 }
0x1809   :  { %v3969_v35 = vpop.eup %3968 }
0x180a   :  { %v3026_v11 = vadd.f32 1.0, %v3969_v35  ;;  %v3027_v38 = vmul.f32 %v3025_v34, %v3011_v36 }
0x180c   :  { %v3028_v39 = vmul.f32 %v3026_v11, %v3012_v37 }
0x180e   :  { %v3029_v40 = vpack.c.bf16 %v3028_v39, %v3027_v38 }
0x1810   :  { %3770 = vmatmul.mubr.msk.bf16.vlgmr.msra.gmra.mrb[80].mxu1 %vm1736_vm1, %v3029_v40 }
0x18e3   :  { %v3108_v42 = vpop.f32.mrb[80].mxu1 }
0x18e4   :  { %v3109_v43 = vadd.f32 %v3377_v41, %v3108_v42  ;;  %v3771_v44 = vpop.f32.mrb[81].mxu1 }
0x18e5   :  { %v3111_v47 = vpop.f32.mrb[82].mxu1 }
0x18e6   :  { %v3115_v48 = vadd.f32 %v3109_v43, %v2939_v12  ;;  %v3112_v49 = vadd.f32 %v3377_v41, %v3111_v47  ;;  %v3772_v50 = vpop.f32.mrb[83].mxu1  ;;  %v3383_v12 = vld [vmem:[#allocation17 + $0x1] ss:$0 sm:$0xff] }
0x18e8   :  { %v3116_v51 = vadd.f32 %v3112_v49, %v2940_v14  ;;  %v3121_v52 = vsel %vm443_vm11, %v3115_v48, 0.0 }
0x18e9   :  { %3122 = vadd.xlane.f32.xlu0 %v3121_v52 }
0x18ea   :  { %v3124_v55 = vsel %vm443_vm11, %v3116_v51, 0.0 }
0x18eb   :  { %3125 = vadd.xlane.f32.xlu1 %v3124_v55 }
0x1976   :  { %v3123_v53 = vpop.xlane.xlu0 %3122 }
0x1977   :  { %v3127_v45 = vmul.f32 0.03125, %v3123_v53 }
0x1978   :  { %v3126_v56 = vpop.xlane.xlu1 %3125 }
0x1979   :  { %v3129_v46 = vsub.f32 %v3115_v48, %v3127_v45  ;;  %v3128_v58 = vmul.f32 0.03125, %v3126_v56 }
0x197b   :  { %v3130_v59 = vsub.f32 %v3116_v51, %v3128_v58  ;;  %v3131_v60 = vmul.f32 %v3129_v46, %v3129_v46 }
0x197d   :  { %v3133_v61 = vsel %vm443_vm11, %v3131_v60, 0.0  ;;  %v3132_v0 = vmul.f32 %v3130_v59, %v3130_v59 }
0x197e   :  { %3134 = vadd.xlane.f32.xlu0 %v3133_v61 }
0x197f   :  { %v3136_v17 = vsel %vm443_vm11, %v3132_v0, 0.0 }
0x1980   :  { %3137 = vadd.xlane.f32.xlu1 %v3136_v17 }
0x1a0b   :  { %v3135_v3 = vpop.xlane.xlu0 %3134 }
0x1a0c   :  { %v3139_v1 = vmul.f32 0.03125, %v3135_v3 }
0x1a0d   :  { %v3138_v4 = vpop.xlane.xlu1 %3137 }
0x1a0e   :  { %v3141_v5 = vadd.f32 1e-12, %v3139_v1  ;;  %v3140_v57 = vmul.f32 0.03125, %v3138_v4 }
0x1a10   :  { %3970 = vrsqrt.f32 %v3141_v5  ;;  %v3142_v9 = vadd.f32 1e-12, %v3140_v57 }
0x1a12   :  { %3972 = vrsqrt.f32 %v3142_v9 }
0x1a1a   :  { %v3971_v10 = vpop.eup %3970 }
0x1a1b   :  { %v3145_v14 = vmul.f32 %v3971_v10, %v3129_v46 }
0x1a1c   :  { %v3973_v15 = vpop.eup %3972 }
0x1a1d   :  { %v3153_v19 = vmul.f32 %v3383_v12, %v3145_v14  ;;  %v3146_v6 = vmul.f32 %v3973_v15, %v3130_v59 }
0x1a1f   :  { %v3161_v20 = vadd.f32 %v3384_v18, %v3153_v19  ;;  %v3154_v21 = vmul.f32 %v3383_v12, %v3146_v6 }
0x1a21   :  { %3163 = vst.msk [vmem:[#allocation22] sm:$0xff] %vm443_vm11, %v3161_v20  ;;  %v3162_v22 = vadd.f32 %v3384_v18, %v3154_v21 }
0x1a23   :  { %3164 = vst.msk [vmem:[#allocation22 + $0x8] sm:$0xff] %vm443_vm11, %v3162_v22  ;;  %v3166_v23 = vrot.slane %v3162_v22, 7 }
0x1a25   :  { %v3169_v24 = vsel %vm3168_vm2, %v3161_v20, %v3166_v23 }
0x1a26   :  { %v3170_v62 = vpack.c.bf16 %v3169_v24, %v3169_v24 }
0x1a28   :  { %3778 = vmatmul.mubr.msk.bf16.vlgmr.msra.gmra.mrb[80].mxu0 %vm443_vm11, %v3170_v62 }
0x1a29   :  { %4251 = shalt.err (!%p4248_p2)
}
0x1a2a   :  { %s4252_s26 = scalar_lea.hbm %s5286_s22, 256 }
0x1a2b   :  { %p4253_p3 = scmp.ne.s32.totalorder %s5286_s22, %s4252_s26  ;;  %p4256_p4 = scmp.lt.u32.totalorder %s4252_s26, %s5286_s22 }
0x1a2d   :  { %p4258_p5 = pnand %p4256_p4, %p4253_p3 }
0x1a2f   :  { %4261 = shalt.err (!%p4258_p5)
}
0x1a30   :  { %s4335_s11 = smov 128   ;;  %v3385_v63 = vld [vmem:[#allocation20] ss:$0 sm:$0xff]  ;;  %s4336_s10 = smov [#allocation23]   ;;  %vm3238_vm3 = vcmask 254976  }
0x1a31   :  { %3251 = dma.vmem_to_hbm [thread:$0]  %s3246_s4, 256, %s5286_s22, [#allocation4], %s4335_s11, %s4335_s11, %s4332_s13  }
0x1a32   :  { %s3258_s30 = sshll.u32 %s4336_s10, 4  ;;  %s3259_s30 = int_to_ptr.vmem [resolvable:$true] %s3258_s30 }
0x1a33   :  { %s4262_s2 = scalar_lea.vmem %s3259_s30, 32  ;;  %p4267_p7 = scmp.lt.s32.totalorder %s3259_s30, %s3259_s30 }
0x1a34   :  { %p4263_p6 = scmp.ne.s32.totalorder %s3259_s30, %s4262_s2  ;;  %p4268_p8 = scmp.lt.s32.totalorder %s4262_s2, %s4262_s2 }
0x1a36   :  { %p4269_p9 = por %p4268_p8, %p4267_p7 }
0x1a38   :  { %p4270_p10 = pnand %p4269_p9, %p4263_p6 }
0x1afb   :  { %v3231_v7 = vpop.f32.mrb[80].mxu0 }
0x1afc   :  { %v3232_v25 = vadd.f32 %v3385_v63, %v3231_v7  ;;  %v3779_v27 = vpop.f32.mrb[81].mxu0 }
0x1afd   :  { %v3234_v16 = vpop.f32.mrb[82].mxu0 }
0x1afe   :  { %3974 = vtanh.f32 %v3232_v25  ;;  %v3780_v28 = vpop.f32.mrb[83].mxu0 }
0x1b08   :  { %v3975_v8 = vpop.eup %3974 }
0x1b09   :  { %3239 = vst.msk [vmem:[#allocation23] sm:$0x3] %vm3238_vm3, %v3975_v8 }
0x1b0a   :  { %4273 = shalt.err (!%p4270_p10)
}
0x1b0b   :  { %s5312_s12 = sld [smem:[#allocation42_spill]] }
0x1b11   :  { %s4274_s14 = scalar_lea.hbm %s5312_s12, 32 }
0x1b12   :  { %p4275_p11 = scmp.ne.s32.totalorder %s5312_s12, %s4274_s14  ;;  %p4278_p12 = scmp.lt.u32.totalorder %s4274_s14, %s5312_s12 }
0x1b14   :  { %p4280_p13 = pnand %p4278_p12, %p4275_p11 }
0x1b16   :  { %4283 = shalt.err (!%p4280_p13)
}
0x1b17   :  { %3261 = dma.vmem_to_hbm [thread:$0]  %s3259_s30, 32, %s5312_s12, [#allocation24]  }
0x1b18   :  { %4298 = dma.done.wait [#allocation4], 256  }
0x1b19   :  { %4299 = vsyncadd [#allocation4], 4294967040 }
0x1b1a   :  { %4300 = dma.done.wait [#allocation24], 32  }
0x1b1b   :  { %4301 = vsyncadd [#allocation24], 4294967264 }
0x1b1c   :  { %3268 = vsyncpa [#allocation3], 1 }
0x1b1d   :  { %3269 = vsyncpa [#allocation6], 1 }
0x1b1e   :  { %3270 = vsyncpa [#allocation9], 1 }
0x1b1f   :  { %3271 = vsyncpa [#allocation12], 1 }
0x1b20   :  { %3272 = vsyncpa [#allocation15], 1 }
0x1b21   :  { %3273 = vsyncpa [#allocation18], 1 }
0x1b22   :  { %3274 = vsyncpa [#allocation21], 1 }
0x1b23   :  { %3275 = vsyncpa [#allocation4], 1 }
0x1b24   :  { %3276 = vsyncpa [#allocation24], 1 }

</bundles_post_ra>
